<compile_context>
chip_gen: v7x
topology: tpu7x:2x2x1
jax: 0.10.0
libtpu: 0.0.40
codegen_flags: <defaults>
</compile_context>

<pallas_src>
import jax
import jax.numpy as jnp
from jax.experimental import pallas as pl
from jax.experimental.pallas import tpu as pltpu

NEG_SLOPE = 0.01   # nn.LeakyReLU() default
BN_EPS = 1e-5      # nn.BatchNorm1d default


# ----------------------------------------------------------------------------
# In-kernel building blocks (trace-time helpers, all static shapes)
# ----------------------------------------------------------------------------
def _leaky_relu(x):
    return jnp.where(x > 0, x, NEG_SLOPE * x)


def _conv_bn_lrelu(x, w, scale, shift):
    """Conv1d(k=3, pad=1) + BatchNorm1d(eval) + LeakyReLU, channel-last.

    x:     (B, N, Cin)  f32 activation (VMEM value)
    w:     (3, Cin, Cout) conv weight (tap 0 = p-1, tap 1 = p, tap 2 = p+1)
    scale: (1, Cout) folded BN scale,  shift: (1, Cout) folded BN shift
    returns (B, N, Cout)
    """
    B, N, Cin = x.shape
    Cout = w.shape[-1]

    # Zero-padded shifted views built in-kernel (no HBM padding copies).
    z = jnp.zeros((B, 1, Cin), x.dtype)
    prev = jnp.concatenate([z, x[:, :N - 1, :]], axis=1)   # x[p-1], zero at p=0
    nxt = jnp.concatenate([x[:, 1:, :], z], axis=1)        # x[p+1], zero at p=N-1

    if Cin >= 64:
        # im2col: one MXU matmul, K = 3*Cin, batch folded into M = B*N.
        slab = jnp.concatenate([prev, x, nxt], axis=-1).reshape(B * N, 3 * Cin)
        y = jnp.dot(slab, w.reshape(3 * Cin, Cout),
                    preferred_element_type=jnp.float32)
    else:
        # Cin=3 (conv1): K too small for a useful lane concat; three taps.
        y = jnp.dot(prev.reshape(B * N, Cin), w[0],
                    preferred_element_type=jnp.float32)
        y = y + jnp.dot(x.reshape(B * N, Cin), w[1],
                        preferred_element_type=jnp.float32)
        y = y + jnp.dot(nxt.reshape(B * N, Cin), w[2],
                        preferred_element_type=jnp.float32)

    y = y * scale + shift           # folded eval-mode BatchNorm (+conv bias)
    y = _leaky_relu(y)
    return y.reshape(B, N, Cout)


# ----------------------------------------------------------------------------
# Single fused kernel: conv1..conv5 + maxpool + fc1 + fc2 + fc3
# ----------------------------------------------------------------------------
def _ggnet_kernel(x_ref,
                  cw1, cs1, cb1, cw2, cs2, cb2, cw3, cs3, cb3,
                  cw4, cs4, cb4, cw5, cs5, cb5,
                  fw1, fs1, fb1, fw2, fs2, fb2, fw3, fb3,
                  out_ref):
    x = x_ref[...]                                            # (B, N, 3) channel-last
    x = _conv_bn_lrelu(x, cw1[...], cs1[...], cb1[...])       # (B, N, 64)
    x = _conv_bn_lrelu(x, cw2[...], cs2[...], cb2[...])       # (B, N, 128)
    x = _conv_bn_lrelu(x, cw3[...], cs3[...], cb3[...])       # (B, N, 256)
    x = _conv_bn_lrelu(x, cw4[...], cs4[...], cb4[...])       # (B, N, 256)
    x = _conv_bn_lrelu(x, cw5[...], cs5[...], cb5[...])       # (B, N, num_point)

    pooled = jnp.max(x, axis=1)                               # max_pool1d over full N

    h = jnp.dot(pooled, fw1[...], preferred_element_type=jnp.float32)
    h = _leaky_relu(h * fs1[...] + fb1[...])
    # TODO(synk): F.dropout(p=0.3) in the reference runs in train mode; treated
    # as identity (inference semantics) here.
    h = jnp.dot(h, fw2[...], preferred_element_type=jnp.float32)
    h = _leaky_relu(h * fs2[...] + fb2[...])

    out_ref[...] = (jnp.dot(h, fw3[...], preferred_element_type=jnp.float32)
                    + fb3[...])


def ggnet_forward(x, params):
    """x: (B, num_point, 3) -> logits (B, num_classes). One pallas_call."""
    B, N, _ = x.shape
    num_classes = params["fc3"][0].shape[-1]

    # PyTorch `x.view(B, 3, num_point)` on a contiguous (B, N, 3) tensor is a
    # raw memory reinterpretation -- reproduce it exactly, then go channel-last.
    x_cl = jnp.transpose(jnp.reshape(x, (B, 3, N)), (0, 2, 1))   # (B, N, 3)

    args = [x_cl]
    for (w, s, b) in params["convs"]:
        args.extend([w, s, b])
    w1, s1, b1 = params["fc1"]
    w2, s2, b2 = params["fc2"]
    w3, b3 = params["fc3"]
    args.extend([w1, s1, b1, w2, s2, b2, w3, b3])

    # Advisory cost hint for XLA's scheduler around this custom call.
    m = B * N
    flops = 2 * m * (3 * 3 * 64 + 3 * 64 * 128 + 3 * 128 * 256
                     + 3 * 256 * 256 + 3 * 256 * N)
    flops += 2 * B * (N * 512 + 512 * 256 + 256 * num_classes)
    bytes_accessed = sum(int(a.size) * 4 for a in args) + B * num_classes * 4

    vmem = pl.BlockSpec(memory_space=pltpu.MemorySpace.VMEM)
    return pl.pallas_call(
        _ggnet_kernel,
        out_shape=jax.ShapeDtypeStruct((B, num_classes), jnp.float32),
        in_specs=[vmem] * len(args),
        out_specs=vmem,
        cost_estimate=pl.CostEstimate(flops=flops, transcendentals=0,
                                      bytes_accessed=bytes_accessed),
    )(*args)


# ----------------------------------------------------------------------------
# Parameter setup (deterministic, matches the module's initialize_weights)
# ----------------------------------------------------------------------------
def _fold_bn(bias, gamma, beta):
    # eval-mode BN with fresh running stats (mean=0, var=1); conv/linear bias
    # folded in.  NOTE: with trained weights, recompute from real running
    # mean/var instead.
    scale = gamma / jnp.sqrt(1.0 + BN_EPS)
    shift = bias * scale + beta
    return scale[None, :], shift[None, :]


def make_conv_params(key, cin, cout):
    k1, k2, k3 = jax.random.split(key, 3)
    w = jax.random.normal(k1, (3, cin, cout), jnp.float32) * 0.01   # Conv1d ~ N(0, 0.01)
    b = jnp.zeros((cout,), jnp.float32)                              # conv bias zeroed
    gamma = jax.random.normal(k2, (cout,), jnp.float32) * 0.01       # BN weight ~ N(0, 0.01)
    beta = jax.random.normal(k3, (cout,), jnp.float32) * 0.01        # BN bias   ~ N(0, 0.01)
    scale, shift = _fold_bn(b, gamma, beta)
    return w, scale, shift


def make_fc_bn_params(key, fin, fout):
    k1, k2, k3 = jax.random.split(key, 3)
    w = jax.random.normal(k1, (fin, fout), jnp.float32) * 0.01       # Linear ~ N(0, 0.01)
    b = jnp.zeros((fout,), jnp.float32)
    gamma = jax.random.normal(k2, (fout,), jnp.float32) * 0.01
    beta = jax.random.normal(k3, (fout,), jnp.float32) * 0.01
    scale, shift = _fold_bn(b, gamma, beta)
    return w, scale, shift


def init_params(key, num_point, num_classes):
    ks = jax.random.split(key, 8)
    convs = [
        make_conv_params(ks[0], 3, 64),
        make_conv_params(ks[1], 64, 128),
        make_conv_params(ks[2], 128, 256),
        make_conv_params(ks[3], 256, 256),
        make_conv_params(ks[4], 256, num_point),
    ]
    fc1 = make_fc_bn_params(ks[5], num_point, 512)
    fc2 = make_fc_bn_params(ks[6], 512, 256)
    w3 = jax.random.normal(ks[7], (256, num_classes), jnp.float32) * 0.01
    b3 = jnp.zeros((1, num_classes), jnp.float32)
    return {"convs": convs, "fc1": fc1, "fc2": fc2, "fc3": (w3, b3)}


if __name__ == "__main__":
    B = 2
    NUM_POINT = 64      # config.num_point (small, consistent with forward)
    NUM_CLASSES = 40    # config.num_classes (docstring: output B x 40)

    key = jax.random.PRNGKey(0)
    kx, kp = jax.random.split(key)
    x = jax.random.normal(kx, (B, NUM_POINT, 3), jnp.float32)   # B x N x 3
    params = init_params(kp, NUM_POINT, NUM_CLASSES)

    out = ggnet_forward(x, params)
    out = jax.block_until_ready(out)
    assert out.shape == (B, NUM_CLASSES)
    assert jnp.all(jnp.isfinite(out))
    print("KERNEL_OK")
</pallas_src>

<mosaic_0001>
module attributes {stable_mosaic.version = 11 : i64} {
  func.func @_ggnet_kernel(%arg0: memref<2x64x3xf32, #tpu.memory_space<vmem>>, %arg1: memref<3x3x64xf32, #tpu.memory_space<vmem>>, %arg2: memref<1x64xf32, #tpu.memory_space<vmem>>, %arg3: memref<1x64xf32, #tpu.memory_space<vmem>>, %arg4: memref<3x64x128xf32, #tpu.memory_space<vmem>>, %arg5: memref<1x128xf32, #tpu.memory_space<vmem>>, %arg6: memref<1x128xf32, #tpu.memory_space<vmem>>, %arg7: memref<3x128x256xf32, #tpu.memory_space<vmem>>, %arg8: memref<1x256xf32, #tpu.memory_space<vmem>>, %arg9: memref<1x256xf32, #tpu.memory_space<vmem>>, %arg10: memref<3x256x256xf32, #tpu.memory_space<vmem>>, %arg11: memref<1x256xf32, #tpu.memory_space<vmem>>, %arg12: memref<1x256xf32, #tpu.memory_space<vmem>>, %arg13: memref<3x256x64xf32, #tpu.memory_space<vmem>>, %arg14: memref<1x64xf32, #tpu.memory_space<vmem>>, %arg15: memref<1x64xf32, #tpu.memory_space<vmem>>, %arg16: memref<64x512xf32, #tpu.memory_space<vmem>>, %arg17: memref<1x512xf32, #tpu.memory_space<vmem>>, %arg18: memref<1x512xf32, #tpu.memory_space<vmem>>, %arg19: memref<512x256xf32, #tpu.memory_space<vmem>>, %arg20: memref<1x256xf32, #tpu.memory_space<vmem>>, %arg21: memref<1x256xf32, #tpu.memory_space<vmem>>, %arg22: memref<256x40xf32, #tpu.memory_space<vmem>>, %arg23: memref<1x40xf32, #tpu.memory_space<vmem>>, %arg24: memref<2x40xf32, #tpu.memory_space<vmem>>) attributes {dimension_semantics = [], scalar_prefetch = 0 : i64, scratch_operands = 0 : i64, tpu.core_type = #tpu.core_type<tc>} {
    %c0 = arith.constant 0 : index
    %c0_0 = arith.constant 0 : index
    %c0_1 = arith.constant 0 : index
    %0 = vector.load %arg0[%c0, %c0_0, %c0_1] : memref<2x64x3xf32, #tpu.memory_space<vmem>>, vector<2x64x3xf32>
    %c0_2 = arith.constant 0 : index
    %c0_3 = arith.constant 0 : index
    %c0_4 = arith.constant 0 : index
    %1 = vector.load %arg1[%c0_2, %c0_3, %c0_4] : memref<3x3x64xf32, #tpu.memory_space<vmem>>, vector<3x3x64xf32>
    %c0_5 = arith.constant 0 : index
    %c0_6 = arith.constant 0 : index
    %2 = vector.load %arg2[%c0_5, %c0_6] : memref<1x64xf32, #tpu.memory_space<vmem>>, vector<1x64xf32>
    %c0_7 = arith.constant 0 : index
    %c0_8 = arith.constant 0 : index
    %3 = vector.load %arg3[%c0_7, %c0_8] : memref<1x64xf32, #tpu.memory_space<vmem>>, vector<1x64xf32>
    %cst = arith.constant 0.000000e+00 : f32
    %4 = vector.broadcast %cst : f32 to vector<2x1x3xf32>
    %5 = vector.extract_strided_slice %0 {offsets = [0, 0, 0], sizes = [2, 63, 3], strides = [1, 1, 1]} : vector<2x64x3xf32> to vector<2x63x3xf32>
    %6 = tpu.concatenate %4, %5 in 1 : vector<2x1x3xf32>, vector<2x63x3xf32> -> vector<2x64x3xf32>
    %7 = vector.extract_strided_slice %0 {offsets = [0, 1, 0], sizes = [2, 63, 3], strides = [1, 1, 1]} : vector<2x64x3xf32> to vector<2x63x3xf32>
    %8 = tpu.concatenate %7, %4 in 1 : vector<2x63x3xf32>, vector<2x1x3xf32> -> vector<2x64x3xf32>
    %9 = vector.shape_cast %6 : vector<2x64x3xf32> to vector<128x3xf32>
    %10 = vector.extract_strided_slice %1 {offsets = [0, 0, 0], sizes = [1, 3, 64], strides = [1, 1, 1]} : vector<3x3x64xf32> to vector<1x3x64xf32>
    %11 = vector.shape_cast %10 : vector<1x3x64xf32> to vector<3x64xf32>
    %cst_9 = arith.constant dense<0.000000e+00> : vector<128x64xf32>
    %12 = tpu.matmul %9, %11, %cst_9 {dimension_numbers = #tpu.dot_dimension_numbers<[1], [0], [0], [1], [0, 0, 1, 1], [], []>} : vector<128x3xf32>, vector<3x64xf32>, vector<128x64xf32> -> vector<128x64xf32>
    %13 = vector.shape_cast %0 : vector<2x64x3xf32> to vector<128x3xf32>
    %14 = vector.extract_strided_slice %1 {offsets = [1, 0, 0], sizes = [1, 3, 64], strides = [1, 1, 1]} : vector<3x3x64xf32> to vector<1x3x64xf32>
    %15 = vector.shape_cast %14 : vector<1x3x64xf32> to vector<3x64xf32>
    %cst_10 = arith.constant dense<0.000000e+00> : vector<128x64xf32>
    %16 = tpu.matmul %13, %15, %cst_10 {dimension_numbers = #tpu.dot_dimension_numbers<[1], [0], [0], [1], [0, 0, 1, 1], [], []>} : vector<128x3xf32>, vector<3x64xf32>, vector<128x64xf32> -> vector<128x64xf32>
    %17 = arith.addf %12, %16 : vector<128x64xf32>
    %18 = vector.shape_cast %8 : vector<2x64x3xf32> to vector<128x3xf32>
    %19 = vector.extract_strided_slice %1 {offsets = [2, 0, 0], sizes = [1, 3, 64], strides = [1, 1, 1]} : vector<3x3x64xf32> to vector<1x3x64xf32>
    %20 = vector.shape_cast %19 : vector<1x3x64xf32> to vector<3x64xf32>
    %cst_11 = arith.constant dense<0.000000e+00> : vector<128x64xf32>
    %21 = tpu.matmul %18, %20, %cst_11 {dimension_numbers = #tpu.dot_dimension_numbers<[1], [0], [0], [1], [0, 0, 1, 1], [], []>} : vector<128x3xf32>, vector<3x64xf32>, vector<128x64xf32> -> vector<128x64xf32>
    %22 = arith.addf %17, %21 : vector<128x64xf32>
    %23 = vector.broadcast %2 : vector<1x64xf32> to vector<128x64xf32>
    %24 = arith.mulf %22, %23 : vector<128x64xf32>
    %25 = vector.broadcast %3 : vector<1x64xf32> to vector<128x64xf32>
    %26 = arith.addf %24, %25 : vector<128x64xf32>
    %cst_12 = arith.constant 0.000000e+00 : f32
    %27 = vector.broadcast %cst_12 : f32 to vector<128x64xf32>
    %28 = arith.cmpf ogt, %26, %27 : vector<128x64xf32>
    %cst_13 = arith.constant 0.00999999977 : f32
    %29 = vector.broadcast %cst_13 : f32 to vector<128x64xf32>
    %30 = arith.mulf %29, %26 : vector<128x64xf32>
    %31 = arith.select %28, %26, %30 : vector<128x64xi1>, vector<128x64xf32>
    %32 = vector.shape_cast %31 : vector<128x64xf32> to vector<2x64x64xf32>
    %c0_14 = arith.constant 0 : index
    %c0_15 = arith.constant 0 : index
    %c0_16 = arith.constant 0 : index
    %33 = vector.load %arg4[%c0_14, %c0_15, %c0_16] : memref<3x64x128xf32, #tpu.memory_space<vmem>>, vector<3x64x128xf32>
    %c0_17 = arith.constant 0 : index
    %c0_18 = arith.constant 0 : index
    %34 = vector.load %arg5[%c0_17, %c0_18] : memref<1x128xf32, #tpu.memory_space<vmem>>, vector<1x128xf32>
    %c0_19 = arith.constant 0 : index
    %c0_20 = arith.constant 0 : index
    %35 = vector.load %arg6[%c0_19, %c0_20] : memref<1x128xf32, #tpu.memory_space<vmem>>, vector<1x128xf32>
    %cst_21 = arith.constant 0.000000e+00 : f32
    %36 = vector.broadcast %cst_21 : f32 to vector<2x1x64xf32>
    %37 = vector.extract_strided_slice %32 {offsets = [0, 0, 0], sizes = [2, 63, 64], strides = [1, 1, 1]} : vector<2x64x64xf32> to vector<2x63x64xf32>
    %38 = tpu.concatenate %36, %37 in 1 : vector<2x1x64xf32>, vector<2x63x64xf32> -> vector<2x64x64xf32>
    %39 = vector.extract_strided_slice %32 {offsets = [0, 1, 0], sizes = [2, 63, 64], strides = [1, 1, 1]} : vector<2x64x64xf32> to vector<2x63x64xf32>
    %40 = tpu.concatenate %39, %36 in 1 : vector<2x63x64xf32>, vector<2x1x64xf32> -> vector<2x64x64xf32>
    %41 = tpu.concatenate %38, %32, %40 in 2 : vector<2x64x64xf32>, vector<2x64x64xf32>, vector<2x64x64xf32> -> vector<2x64x192xf32>
    %42 = vector.shape_cast %41 : vector<2x64x192xf32> to vector<128x192xf32>
    %43 = vector.shape_cast %33 : vector<3x64x128xf32> to vector<192x128xf32>
    %cst_22 = arith.constant dense<0.000000e+00> : vector<128x128xf32>
    %44 = tpu.matmul %42, %43, %cst_22 {dimension_numbers = #tpu.dot_dimension_numbers<[1], [0], [0], [1], [0, 0, 1, 1], [], []>} : vector<128x192xf32>, vector<192x128xf32>, vector<128x128xf32> -> vector<128x128xf32>
    %45 = vector.broadcast %34 : vector<1x128xf32> to vector<128x128xf32>
    %46 = arith.mulf %44, %45 : vector<128x128xf32>
    %47 = vector.broadcast %35 : vector<1x128xf32> to vector<128x128xf32>
    %48 = arith.addf %46, %47 : vector<128x128xf32>
    %cst_23 = arith.constant 0.000000e+00 : f32
    %49 = vector.broadcast %cst_23 : f32 to vector<128x128xf32>
    %50 = arith.cmpf ogt, %48, %49 : vector<128x128xf32>
    %cst_24 = arith.constant 0.00999999977 : f32
    %51 = vector.broadcast %cst_24 : f32 to vector<128x128xf32>
    %52 = arith.mulf %51, %48 : vector<128x128xf32>
    %53 = arith.select %50, %48, %52 : vector<128x128xi1>, vector<128x128xf32>
    %54 = vector.shape_cast %53 : vector<128x128xf32> to vector<2x64x128xf32>
    %c0_25 = arith.constant 0 : index
    %c0_26 = arith.constant 0 : index
    %c0_27 = arith.constant 0 : index
    %55 = vector.load %arg7[%c0_25, %c0_26, %c0_27] : memref<3x128x256xf32, #tpu.memory_space<vmem>>, vector<3x128x256xf32>
    %c0_28 = arith.constant 0 : index
    %c0_29 = arith.constant 0 : index
    %56 = vector.load %arg8[%c0_28, %c0_29] : memref<1x256xf32, #tpu.memory_space<vmem>>, vector<1x256xf32>
    %c0_30 = arith.constant 0 : index
    %c0_31 = arith.constant 0 : index
    %57 = vector.load %arg9[%c0_30, %c0_31] : memref<1x256xf32, #tpu.memory_space<vmem>>, vector<1x256xf32>
    %cst_32 = arith.constant 0.000000e+00 : f32
    %58 = vector.broadcast %cst_32 : f32 to vector<2x1x128xf32>
    %59 = vector.extract_strided_slice %54 {offsets = [0, 0, 0], sizes = [2, 63, 128], strides = [1, 1, 1]} : vector<2x64x128xf32> to vector<2x63x128xf32>
    %60 = tpu.concatenate %58, %59 in 1 : vector<2x1x128xf32>, vector<2x63x128xf32> -> vector<2x64x128xf32>
    %61 = vector.extract_strided_slice %54 {offsets = [0, 1, 0], sizes = [2, 63, 128], strides = [1, 1, 1]} : vector<2x64x128xf32> to vector<2x63x128xf32>
    %62 = tpu.concatenate %61, %58 in 1 : vector<2x63x128xf32>, vector<2x1x128xf32> -> vector<2x64x128xf32>
    %63 = tpu.concatenate %60, %54, %62 in 2 : vector<2x64x128xf32>, vector<2x64x128xf32>, vector<2x64x128xf32> -> vector<2x64x384xf32>
    %64 = vector.shape_cast %63 : vector<2x64x384xf32> to vector<128x384xf32>
    %65 = vector.shape_cast %55 : vector<3x128x256xf32> to vector<384x256xf32>
    %cst_33 = arith.constant dense<0.000000e+00> : vector<128x256xf32>
    %66 = tpu.matmul %64, %65, %cst_33 {dimension_numbers = #tpu.dot_dimension_numbers<[1], [0], [0], [1], [0, 0, 1, 1], [], []>} : vector<128x384xf32>, vector<384x256xf32>, vector<128x256xf32> -> vector<128x256xf32>
    %67 = vector.broadcast %56 : vector<1x256xf32> to vector<128x256xf32>
    %68 = arith.mulf %66, %67 : vector<128x256xf32>
    %69 = vector.broadcast %57 : vector<1x256xf32> to vector<128x256xf32>
    %70 = arith.addf %68, %69 : vector<128x256xf32>
    %cst_34 = arith.constant 0.000000e+00 : f32
    %71 = vector.broadcast %cst_34 : f32 to vector<128x256xf32>
    %72 = arith.cmpf ogt, %70, %71 : vector<128x256xf32>
    %cst_35 = arith.constant 0.00999999977 : f32
    %73 = vector.broadcast %cst_35 : f32 to vector<128x256xf32>
    %74 = arith.mulf %73, %70 : vector<128x256xf32>
    %75 = arith.select %72, %70, %74 : vector<128x256xi1>, vector<128x256xf32>
    %76 = vector.shape_cast %75 : vector<128x256xf32> to vector<2x64x256xf32>
    %c0_36 = arith.constant 0 : index
    %c0_37 = arith.constant 0 : index
    %c0_38 = arith.constant 0 : index
    %77 = vector.load %arg10[%c0_36, %c0_37, %c0_38] : memref<3x256x256xf32, #tpu.memory_space<vmem>>, vector<3x256x256xf32>
    %c0_39 = arith.constant 0 : index
    %c0_40 = arith.constant 0 : index
    %78 = vector.load %arg11[%c0_39, %c0_40] : memref<1x256xf32, #tpu.memory_space<vmem>>, vector<1x256xf32>
    %c0_41 = arith.constant 0 : index
    %c0_42 = arith.constant 0 : index
    %79 = vector.load %arg12[%c0_41, %c0_42] : memref<1x256xf32, #tpu.memory_space<vmem>>, vector<1x256xf32>
    %cst_43 = arith.constant 0.000000e+00 : f32
    %80 = vector.broadcast %cst_43 : f32 to vector<2x1x256xf32>
    %81 = vector.extract_strided_slice %76 {offsets = [0, 0, 0], sizes = [2, 63, 256], strides = [1, 1, 1]} : vector<2x64x256xf32> to vector<2x63x256xf32>
    %82 = tpu.concatenate %80, %81 in 1 : vector<2x1x256xf32>, vector<2x63x256xf32> -> vector<2x64x256xf32>
    %83 = vector.extract_strided_slice %76 {offsets = [0, 1, 0], sizes = [2, 63, 256], strides = [1, 1, 1]} : vector<2x64x256xf32> to vector<2x63x256xf32>
    %84 = tpu.concatenate %83, %80 in 1 : vector<2x63x256xf32>, vector<2x1x256xf32> -> vector<2x64x256xf32>
    %85 = tpu.concatenate %82, %76, %84 in 2 : vector<2x64x256xf32>, vector<2x64x256xf32>, vector<2x64x256xf32> -> vector<2x64x768xf32>
    %86 = vector.shape_cast %85 : vector<2x64x768xf32> to vector<128x768xf32>
    %87 = vector.shape_cast %77 : vector<3x256x256xf32> to vector<768x256xf32>
    %cst_44 = arith.constant dense<0.000000e+00> : vector<128x256xf32>
    %88 = tpu.matmul %86, %87, %cst_44 {dimension_numbers = #tpu.dot_dimension_numbers<[1], [0], [0], [1], [0, 0, 1, 1], [], []>} : vector<128x768xf32>, vector<768x256xf32>, vector<128x256xf32> -> vector<128x256xf32>
    %89 = vector.broadcast %78 : vector<1x256xf32> to vector<128x256xf32>
    %90 = arith.mulf %88, %89 : vector<128x256xf32>
    %91 = vector.broadcast %79 : vector<1x256xf32> to vector<128x256xf32>
    %92 = arith.addf %90, %91 : vector<128x256xf32>
    %cst_45 = arith.constant 0.000000e+00 : f32
    %93 = vector.broadcast %cst_45 : f32 to vector<128x256xf32>
    %94 = arith.cmpf ogt, %92, %93 : vector<128x256xf32>
    %cst_46 = arith.constant 0.00999999977 : f32
    %95 = vector.broadcast %cst_46 : f32 to vector<128x256xf32>
    %96 = arith.mulf %95, %92 : vector<128x256xf32>
    %97 = arith.select %94, %92, %96 : vector<128x256xi1>, vector<128x256xf32>
    %98 = vector.shape_cast %97 : vector<128x256xf32> to vector<2x64x256xf32>
    %c0_47 = arith.constant 0 : index
    %c0_48 = arith.constant 0 : index
    %c0_49 = arith.constant 0 : index
    %99 = vector.load %arg13[%c0_47, %c0_48, %c0_49] : memref<3x256x64xf32, #tpu.memory_space<vmem>>, vector<3x256x64xf32>
    %c0_50 = arith.constant 0 : index
    %c0_51 = arith.constant 0 : index
    %100 = vector.load %arg14[%c0_50, %c0_51] : memref<1x64xf32, #tpu.memory_space<vmem>>, vector<1x64xf32>
    %c0_52 = arith.constant 0 : index
    %c0_53 = arith.constant 0 : index
    %101 = vector.load %arg15[%c0_52, %c0_53] : memref<1x64xf32, #tpu.memory_space<vmem>>, vector<1x64xf32>
    %cst_54 = arith.constant 0.000000e+00 : f32
    %102 = vector.broadcast %cst_54 : f32 to vector<2x1x256xf32>
    %103 = vector.extract_strided_slice %98 {offsets = [0, 0, 0], sizes = [2, 63, 256], strides = [1, 1, 1]} : vector<2x64x256xf32> to vector<2x63x256xf32>
    %104 = tpu.concatenate %102, %103 in 1 : vector<2x1x256xf32>, vector<2x63x256xf32> -> vector<2x64x256xf32>
    %105 = vector.extract_strided_slice %98 {offsets = [0, 1, 0], sizes = [2, 63, 256], strides = [1, 1, 1]} : vector<2x64x256xf32> to vector<2x63x256xf32>
    %106 = tpu.concatenate %105, %102 in 1 : vector<2x63x256xf32>, vector<2x1x256xf32> -> vector<2x64x256xf32>
    %107 = tpu.concatenate %104, %98, %106 in 2 : vector<2x64x256xf32>, vector<2x64x256xf32>, vector<2x64x256xf32> -> vector<2x64x768xf32>
    %108 = vector.shape_cast %107 : vector<2x64x768xf32> to vector<128x768xf32>
    %109 = vector.shape_cast %99 : vector<3x256x64xf32> to vector<768x64xf32>
    %cst_55 = arith.constant dense<0.000000e+00> : vector<128x64xf32>
    %110 = tpu.matmul %108, %109, %cst_55 {dimension_numbers = #tpu.dot_dimension_numbers<[1], [0], [0], [1], [0, 0, 1, 1], [], []>} : vector<128x768xf32>, vector<768x64xf32>, vector<128x64xf32> -> vector<128x64xf32>
    %111 = vector.broadcast %100 : vector<1x64xf32> to vector<128x64xf32>
    %112 = arith.mulf %110, %111 : vector<128x64xf32>
    %113 = vector.broadcast %101 : vector<1x64xf32> to vector<128x64xf32>
    %114 = arith.addf %112, %113 : vector<128x64xf32>
    %cst_56 = arith.constant 0.000000e+00 : f32
    %115 = vector.broadcast %cst_56 : f32 to vector<128x64xf32>
    %116 = arith.cmpf ogt, %114, %115 : vector<128x64xf32>
    %cst_57 = arith.constant 0.00999999977 : f32
    %117 = vector.broadcast %cst_57 : f32 to vector<128x64xf32>
    %118 = arith.mulf %117, %114 : vector<128x64xf32>
    %119 = arith.select %116, %114, %118 : vector<128x64xi1>, vector<128x64xf32>
    %120 = vector.shape_cast %119 : vector<128x64xf32> to vector<2x64x64xf32>
    %cst_58 = arith.constant dense<0xFF800000> : vector<2x64xf32>
    %121 = vector.multi_reduction <maximumf>, %120, %cst_58 [1] : vector<2x64x64xf32> to vector<2x64xf32>
    %c0_59 = arith.constant 0 : index
    %c0_60 = arith.constant 0 : index
    %122 = vector.load %arg16[%c0_59, %c0_60] : memref<64x512xf32, #tpu.memory_space<vmem>>, vector<64x512xf32>
    %cst_61 = arith.constant dense<0.000000e+00> : vector<2x512xf32>
    %123 = tpu.matmul %121, %122, %cst_61 {dimension_numbers = #tpu.dot_dimension_numbers<[1], [0], [0], [1], [0, 0, 1, 1], [], []>} : vector<2x64xf32>, vector<64x512xf32>, vector<2x512xf32> -> vector<2x512xf32>
    %c0_62 = arith.constant 0 : index
    %c0_63 = arith.constant 0 : index
    %124 = vector.load %arg17[%c0_62, %c0_63] : memref<1x512xf32, #tpu.memory_space<vmem>>, vector<1x512xf32>
    %125 = vector.broadcast %124 : vector<1x512xf32> to vector<2x512xf32>
    %126 = arith.mulf %123, %125 : vector<2x512xf32>
    %c0_64 = arith.constant 0 : index
    %c0_65 = arith.constant 0 : index
    %127 = vector.load %arg18[%c0_64, %c0_65] : memref<1x512xf32, #tpu.memory_space<vmem>>, vector<1x512xf32>
    %128 = vector.broadcast %127 : vector<1x512xf32> to vector<2x512xf32>
    %129 = arith.addf %126, %128 : vector<2x512xf32>
    %cst_66 = arith.constant 0.000000e+00 : f32
    %130 = vector.broadcast %cst_66 : f32 to vector<2x512xf32>
    %131 = arith.cmpf ogt, %129, %130 : vector<2x512xf32>
    %cst_67 = arith.constant 0.00999999977 : f32
    %132 = vector.broadcast %cst_67 : f32 to vector<2x512xf32>
    %133 = arith.mulf %132, %129 : vector<2x512xf32>
    %134 = arith.select %131, %129, %133 : vector<2x512xi1>, vector<2x512xf32>
    %c0_68 = arith.constant 0 : index
    %c0_69 = arith.constant 0 : index
    %135 = vector.load %arg19[%c0_68, %c0_69] : memref<512x256xf32, #tpu.memory_space<vmem>>, vector<512x256xf32>
    %cst_70 = arith.constant dense<0.000000e+00> : vector<2x256xf32>
    %136 = tpu.matmul %134, %135, %cst_70 {dimension_numbers = #tpu.dot_dimension_numbers<[1], [0], [0], [1], [0, 0, 1, 1], [], []>} : vector<2x512xf32>, vector<512x256xf32>, vector<2x256xf32> -> vector<2x256xf32>
    %c0_71 = arith.constant 0 : index
    %c0_72 = arith.constant 0 : index
    %137 = vector.load %arg20[%c0_71, %c0_72] : memref<1x256xf32, #tpu.memory_space<vmem>>, vector<1x256xf32>
    %138 = vector.broadcast %137 : vector<1x256xf32> to vector<2x256xf32>
    %139 = arith.mulf %136, %138 : vector<2x256xf32>
    %c0_73 = arith.constant 0 : index
    %c0_74 = arith.constant 0 : index
    %140 = vector.load %arg21[%c0_73, %c0_74] : memref<1x256xf32, #tpu.memory_space<vmem>>, vector<1x256xf32>
    %141 = vector.broadcast %140 : vector<1x256xf32> to vector<2x256xf32>
    %142 = arith.addf %139, %141 : vector<2x256xf32>
    %cst_75 = arith.constant 0.000000e+00 : f32
    %143 = vector.broadcast %cst_75 : f32 to vector<2x256xf32>
    %144 = arith.cmpf ogt, %142, %143 : vector<2x256xf32>
    %cst_76 = arith.constant 0.00999999977 : f32
    %145 = vector.broadcast %cst_76 : f32 to vector<2x256xf32>
    %146 = arith.mulf %145, %142 : vector<2x256xf32>
    %147 = arith.select %144, %142, %146 : vector<2x256xi1>, vector<2x256xf32>
    %c0_77 = arith.constant 0 : index
    %c0_78 = arith.constant 0 : index
    %148 = vector.load %arg22[%c0_77, %c0_78] : memref<256x40xf32, #tpu.memory_space<vmem>>, vector<256x40xf32>
    %cst_79 = arith.constant dense<0.000000e+00> : vector<2x40xf32>
    %149 = tpu.matmul %147, %148, %cst_79 {dimension_numbers = #tpu.dot_dimension_numbers<[1], [0], [0], [1], [0, 0, 1, 1], [], []>} : vector<2x256xf32>, vector<256x40xf32>, vector<2x40xf32> -> vector<2x40xf32>
    %c0_80 = arith.constant 0 : index
    %c0_81 = arith.constant 0 : index
    %150 = vector.load %arg23[%c0_80, %c0_81] : memref<1x40xf32, #tpu.memory_space<vmem>>, vector<1x40xf32>
    %151 = vector.broadcast %150 : vector<1x40xf32> to vector<2x40xf32>
    %152 = arith.addf %149, %151 : vector<2x40xf32>
    %c0_82 = arith.constant 0 : index
    %c0_83 = arith.constant 0 : index
    %153 = vector.load %arg24[%c0_82, %c0_83] : memref<2x40xf32, #tpu.memory_space<vmem>>, vector<2x40xf32>
    tpu.vector_store %arg24[%c0_82, %c0_83], %152 {strides = array<i32>} : memref<2x40xf32, #tpu.memory_space<vmem>>, vector<2x40xf32>,
    return
  }
}

</mosaic_0001>

<bundles_post_ra>
// kernel: tpu_custom_call.1
= control target key start
LH: loop header
LB: loop body
LE: loop exit
PB: predicated region body
PF: predicated region fallthrough
CT: control target
= control target key end

     0   :  { %s8970_s0 = inlined_call_operand.vmem [shape: f32[2,64,3], index: 0, kind: input, shape index: {}]   ;;  %s8971_s1 = inlined_call_operand.vmem [shape: f32[3,3,64], index: 1, kind: input, shape index: {}]   ;;  %s8972_s2 = inlined_call_operand.vmem [shape: f32[1,64], index: 2, kind: input, shape index: {}]   ;;  %s8973_s3 = inlined_call_operand.vmem [shape: f32[1,64], index: 3, kind: input, shape index: {}]   ;;  %s8974_s4 = inlined_call_operand.hbm [shape: f32[3,64,128], index: 4, kind: input, shape index: {}]   ;;  %s8975_s5 = inlined_call_operand.vmem [shape: f32[1,128], index: 5, kind: input, shape index: {}]   ;;  %s8976_s6 = inlined_call_operand.vmem [shape: f32[1,128], index: 6, kind: input, shape index: {}]   ;;  %s8977_s7 = inlined_call_operand.hbm [shape: f32[3,128,256], index: 7, kind: input, shape index: {}]   ;;  %s8978_s8 = inlined_call_operand.vmem [shape: f32[1,256], index: 8, kind: input, shape index: {}]   ;;  %s8979_s9 = inlined_call_operand.vmem [shape: f32[1,256], index: 9, kind: input, shape index: {}]   ;;  %s8980_s10 = inlined_call_operand.vmem [shape: f32[3,256,256], index: 10, kind: input, shape index: {}]   ;;  %s8981_s11 = inlined_call_operand.vmem [shape: f32[1,256], index: 11, kind: input, shape index: {}]   ;;  %s8982_s12 = inlined_call_operand.vmem [shape: f32[1,256], index: 12, kind: input, shape index: {}]   ;;  %s8983_s13 = inlined_call_operand.vmem [shape: f32[3,256,64], index: 13, kind: input, shape index: {}]   ;;  %s8984_s14 = inlined_call_operand.vmem [shape: f32[1,64], index: 14, kind: input, shape index: {}]   ;;  %s8985_s15 = inlined_call_operand.vmem [shape: f32[1,64], index: 15, kind: input, shape index: {}]   ;;  %s8986_s16 = inlined_call_operand.hbm [shape: f32[64,512], index: 16, kind: input, shape index: {}]   ;;  %s8987_s17 = inlined_call_operand.vmem [shape: f32[1,512], index: 17, kind: input, shape index: {}]   ;;  %s8988_s18 = inlined_call_operand.vmem [shape: f32[1,512], index: 18, kind: input, shape index: {}]   ;;  %s8989_s19 = inlined_call_operand.hbm [shape: f32[512,256], index: 19, kind: input, shape index: {}]   ;;  %s8990_s20 = inlined_call_operand.vmem [shape: f32[1,256], index: 20, kind: input, shape index: {}]   ;;  %s8991_s21 = inlined_call_operand.vmem [shape: f32[1,256], index: 21, kind: input, shape index: {}]   ;;  %s8992_s22 = inlined_call_operand.vmem [shape: f32[256,40], index: 22, kind: input, shape index: {}]   ;;  %s8993_s23 = inlined_call_operand.vmem [shape: f32[1,40], index: 23, kind: input, shape index: {}]   ;;  %s8994_s24 = inlined_call_operand.hbm [shape: f32[2,40], index: 24, kind: output, shape index: {}]  }
   0x1   :  { %9003 = sst [smem:[#allocation15_spill]] %s8970_s0 }
   0x2   :  { %9004 = sst [smem:[#allocation16_spill]] %s8971_s1 }
   0x3   :  { %9005 = sst [smem:[#allocation17_spill]] %s8972_s2 }
   0x4   :  { %9006 = sst [smem:[#allocation18_spill]] %s8973_s3 }
   0x5   :  { %9007 = sst [smem:[#allocation19_spill]] %s8974_s4 }
   0x6   :  { %9008 = sst [smem:[#allocation20_spill]] %s8975_s5 }
   0x7   :  { %9009 = sst [smem:[#allocation21_spill]] %s8976_s6 }
   0x8   :  { %9010 = sst [smem:[#allocation22_spill]] %s8977_s7 }
   0x9   :  { %9011 = sst [smem:[#allocation23_spill]] %s8978_s8 }
   0xa   :  { %9012 = sst [smem:[#allocation24_spill]] %s8993_s23 }
   0xb   :  { %9013 = sst [smem:[#allocation25_spill]] %s8994_s24 }
   0xc   :  { %29 = vsyncpa [#allocation3], 0 }
   0xd   :  { %30 = vsyncpa [#allocation6], 0 }
   0xe   :  { %31 = vsyncpa [#allocation9], 0 }
   0xf   :  { %32 = vsyncpa [#allocation4], 0  ;;  %s6102_s5 = smov [#allocation5]   ;;  %s9014_s6 = sld [smem:[#allocation22_spill]] }
  0x10   :  { %s62_s26 = sshll.u32 %s6102_s5, 4  ;;  %s63_s26 = int_to_ptr.vmem [resolvable:$true] %s62_s26 }
  0x15   :  { %s5984_s2 = scalar_lea.hbm %s9014_s6, 12288 }
  0x16   :  { %p5985_p0 = scmp.ne.s32.totalorder %s9014_s6, %s5984_s2  ;;  %p5988_p1 = scmp.lt.u32.totalorder %s5984_s2, %s9014_s6 }
  0x18   :  { %p5990_p2 = pnand %p5988_p1, %p5985_p0 }
  0x1a   :  { %5993 = shalt.err (!%p5990_p2)
}
  0x1b   :  { %s5994_s3 = scalar_lea.vmem %s63_s26, 12288  ;;  %p5999_p4 = scmp.lt.s32.totalorder %s63_s26, %s63_s26 }
  0x1c   :  { %p5995_p3 = scmp.ne.s32.totalorder %s63_s26, %s5994_s3  ;;  %p6000_p5 = scmp.lt.s32.totalorder %s5994_s3, %s5994_s3 }
  0x1e   :  { %p6001_p6 = por %p6000_p5, %p5999_p4 }
  0x20   :  { %p6002_p7 = pnand %p6001_p6, %p5995_p3 }
  0x22   :  { %6005 = shalt.err (!%p6002_p7)
}
  0x23   :  { %s9000_s25 = smov 256   ;;  %s6104_s8 = smov 16  }
  0x24   :  { %68 = dma.hbm_to_vmem [thread:$0]  %s9014_s6, 12288, %s63_s26, [#allocation6], %s9000_s25, %s9000_s25, %s6104_s8  }
  0x25   :  { %s6105_s5 = smov [#allocation2]   ;;  %s9015_s29 = sld [smem:[#allocation19_spill]] }
  0x26   :  { %s46_s27 = sshll.u32 %s6105_s5, 4  ;;  %s47_s27 = int_to_ptr.vmem [resolvable:$true] %s46_s27 }
  0x2b   :  { %s6006_s0 = scalar_lea.hbm %s9015_s29, 3072 }
  0x2c   :  { %p6007_p8 = scmp.ne.s32.totalorder %s9015_s29, %s6006_s0  ;;  %p6010_p9 = scmp.lt.u32.totalorder %s6006_s0, %s9015_s29 }
  0x2e   :  { %p6012_p10 = pnand %p6010_p9, %p6007_p8 }
  0x30   :  { %6015 = shalt.err (!%p6012_p10)
}
  0x31   :  { %s6016_s23 = scalar_lea.vmem %s47_s27, 3072  ;;  %p6021_p12 = scmp.lt.s32.totalorder %s47_s27, %s47_s27 }
  0x32   :  { %p6017_p11 = scmp.ne.s32.totalorder %s47_s27, %s6016_s23  ;;  %p6022_p13 = scmp.lt.s32.totalorder %s6016_s23, %s6016_s23 }
  0x34   :  { %p6023_p0 = por %p6022_p13, %p6021_p12 }
  0x36   :  { %p6024_p1 = pnand %p6023_p0, %p6017_p11 }
  0x38   :  { %6027 = shalt.err (!%p6024_p1)
}
  0x39   :  { %s6106_s26 = smov 128   ;;  %s6107_s6 = smov 8  }
  0x3a   :  { %52 = dma.hbm_to_vmem [thread:$0]  %s9015_s29, 3072, %s47_s27, [#allocation3], %s6106_s26, %s6106_s26, %s6107_s6  }
  0x3b   :  { %s6108_s5 = smov [#allocation7]   ;;  %s6028_s0 = scalar_lea.hbm %s8986_s16, 4096 }
  0x3c   :  { %s90_s28 = sshll.u32 %s6108_s5, 4  ;;  %p6029_p2 = scmp.ne.s32.totalorder %s8986_s16, %s6028_s0  ;;  %s91_s28 = int_to_ptr.vmem [resolvable:$true] %s90_s28 }
  0x3d   :  { %p6032_p3 = scmp.lt.u32.totalorder %s6028_s0, %s8986_s16 }
  0x3f   :  { %p6034_p4 = pnand %p6032_p3, %p6029_p2 }
  0x41   :  { %6037 = shalt.err (!%p6034_p4)
}
  0x42   :  { %s6038_s25 = scalar_lea.vmem %s91_s28, 4096  ;;  %p6043_p6 = scmp.lt.s32.totalorder %s91_s28, %s91_s28 }
  0x43   :  { %p6039_p5 = scmp.ne.s32.totalorder %s91_s28, %s6038_s25  ;;  %p6044_p7 = scmp.lt.s32.totalorder %s6038_s25, %s6038_s25 }
  0x45   :  { %p6045_p8 = por %p6044_p7, %p6043_p6 }
  0x47   :  { %p6046_p9 = pnand %p6045_p8, %p6039_p5 }
  0x49   :  { %6049 = shalt.err (!%p6046_p9)
}
  0x4a   :  { %s6109_s27 = smov 512   ;;  %s6110_s29 = smov 32  }
  0x4b   :  { %96 = dma.hbm_to_vmem [thread:$0]  %s8986_s16, 4096, %s91_s28, [#allocation6], %s6109_s27, %s6109_s27, %s6110_s29  }
  0x4c   :  { %s6111_s4 = smov [#allocation8]   ;;  %s6050_s2 = scalar_lea.hbm %s8989_s19, 16384 }
  0x4d   :  { %s106_s1 = sshll.u32 %s6111_s4, 4  ;;  %p6051_p10 = scmp.ne.s32.totalorder %s8989_s19, %s6050_s2  ;;  %s107_s1 = int_to_ptr.vmem [resolvable:$true] %s106_s1 }
  0x4e   :  { %p6054_p11 = scmp.lt.u32.totalorder %s6050_s2, %s8989_s19 }
  0x50   :  { %p6056_p12 = pnand %p6054_p11, %p6051_p10 }
  0x52   :  { %6059 = shalt.err (!%p6056_p12)
}
  0x53   :  { %s6060_s23 = scalar_lea.vmem %s107_s1, 16384  ;;  %p6065_p0 = scmp.lt.s32.totalorder %s107_s1, %s107_s1 }
  0x54   :  { %p6061_p13 = scmp.ne.s32.totalorder %s107_s1, %s6060_s23  ;;  %p6066_p1 = scmp.lt.s32.totalorder %s6060_s23, %s6060_s23 }
  0x56   :  { %p6067_p2 = por %p6066_p1, %p6065_p0 }
  0x58   :  { %p6068_p3 = pnand %p6067_p2, %p6061_p13 }
  0x5a   :  { %6071 = shalt.err (!%p6068_p3)
}
  0x5b   :  { %s9016_s16 = smov 256  }
  0x5c   :  { %112 = dma.hbm_to_vmem [thread:$0]  %s8989_s19, 16384, %s107_s1, [#allocation9], %s9016_s16, %s9016_s16, %s6104_s8  }
  0x5d   :  { %6094 = dma.done.wait [#allocation3], 3072  }
  0x5e   :  { %6095 = vsyncadd [#allocation3], 4294964224 }
  0x5f   :  { %6096 = dma.done.wait [#allocation6], 16384  }
  0x60   :  { %6097 = vsyncadd [#allocation6], 4294950912 }
  0x61   :  { %6098 = dma.done.wait [#allocation9], 16384  }
  0x62   :  { %6099 = vsyncadd [#allocation9], 4294950912  ;;  %vm273_vm0 = vcmask 1042432   ;;  %vm170_vm1 = vcmask 1040384   ;;  %s9017_s26 = sld [smem:[#allocation16_spill]]  ;;  %s9018_s5 = sld [smem:[#allocation15_spill]] }
  0x63   :  { %vm240_vm2 = vcmask 23552   ;;  %vm205_vm3 = vcmask 1046528   ;;  %s9019_s24 = sld [smem:[#allocation17_spill]]  ;;  %s6113_s1 = smov 64   ;;  %vm1066_vm6 = vcmask 523264  }
  0x64   :  { %s9021_s7 = sld [smem:[#allocation20_spill]]  ;;  %s9022_s23 = sld [smem:[#allocation21_spill]] }
  0x65   :  { %s9025_s28 = sld [smem:[#allocation23_spill]] }
  0x68   :  { %v149_v0 = vld [vmem:[%s9017_s26] sm:$0x7]  ;;  %v151_v2 = vld [vmem:[%s9017_s26 + $0x8] sm:$0x7]  ;;  %v6316_v5 = vld [vmem:[%s9018_s5 + $0x10] sm:$0xff] }
  0x69   :  { %v6301_v1 = vld [vmem:[%s9018_s5] sm:$0xff]  ;;  %5176 = vmatprep.subr.msk.mxu0 %vm273_vm0, %v149_v0  ;;  %v6311_v4 = vld [vmem:[%s9018_s5 + $0x8] sm:$0xff]  ;;  %v6321_v6 = vld [vmem:[%s9018_s5 + $0x18] sm:$0xff]  ;;  %v174_v8 = vrot.slane %v6316_v5, 7  ;;  %v209_v52 = vrot.slane %v6316_v5, 1 }
  0x6a   :  { %v171_v3 = vrot.slane %v6301_v1, 7  ;;  %5152 = vmatprep.mubr.msk.f32.mxu1 %vm240_vm2, %v6301_v1  ;;  %5177 = vmatpush3.msk.msra.mxu0 %vm273_vm0, %v149_v0  ;;  %v172_v7 = vrot.slane %v6311_v4, 7  ;;  %v176_v9 = vrot.slane %v6321_v6, 7  ;;  %v6332_v10 = vld [vmem:[%s9018_s5 + $0x20] sm:$0xff]  ;;  %v6340_v13 = vld [vmem:[%s9018_s5 + $0x28] sm:$0xff]  ;;  %v6348_v16 = vld [vmem:[%s9018_s5 + $0x30] sm:$0xff] }
  0x6b   :  { %5202 = vmatprep.subr.msk.mxu0 %vm273_vm0, %v151_v2  ;;  %v178_v12 = vrot.slane %v6332_v10, 7  ;;  %v180_v18 = vrot.slane %v6340_v13, 7  ;;  %v150_v19 = vld [vmem:[%s9017_s26 + $0x4] sm:$0x7]  ;;  %v182_v21 = vrot.slane %v6348_v16, 7  ;;  %v6363_v22 = vld [vmem:[%s9018_s5 + $0x38] sm:$0xff] }
  0x6c   :  { %v203_v11 = vsel %vm170_vm1, 0.0, %v171_v3  ;;  %v173_v14 = vsel %vm170_vm1, %v171_v3, %v172_v7  ;;  %v175_v15 = vsel %vm170_vm1, %v172_v7, %v174_v8  ;;  %v177_v17 = vsel %vm170_vm1, %v174_v8, %v176_v9  ;;  %5150 = vmatprep.subr.msk.mxu1 %vm273_vm0, %v150_v19  ;;  %v6369_v23 = vld [vmem:[%s9018_s5 + $0x40] sm:$0xff]  ;;  %v6385_v28 = vld [vmem:[%s9018_s5 + $0x48] sm:$0xff]  ;;  %v6390_v29 = vld [vmem:[%s9018_s5 + $0x50] sm:$0xff]  ;;  %s9020_s26 = sld [smem:[#allocation18_spill]] }
  0x6d   :  { %5178 = vmatprep.mubr.msk.f32.mxu0 %vm240_vm2, %v203_v11  ;;  %v179_v20 = vsel %vm170_vm1, %v176_v9, %v178_v12  ;;  %5151 = vmatpush3.msk.msra.mxu1 %vm273_vm0, %v150_v19  ;;  %v181_v24 = vsel %vm170_vm1, %v178_v12, %v180_v18  ;;  %v184_v25 = vrot.slane %v6363_v22, 7  ;;  %v183_v26 = vsel %vm170_vm1, %v180_v18, %v182_v21  ;;  %v6405_v34 = vld [vmem:[%s9018_s5 + $0x58] sm:$0xff]  ;;  %v6410_v35 = vld [vmem:[%s9018_s5 + $0x60] sm:$0xff]  ;;  %v6425_v40 = vld [vmem:[%s9018_s5 + $0x68] sm:$0xff] }
  0x6e   :  { %5179 = vmatmul.mubr.msk.f32.vlgmr.msra.gmra.mrb[0].mxu0 %vm240_vm2, %v173_v14  ;;  %5153 = vmatmul.mubr.msk.f32.vlgmr.msra.gmra.mrb[0].mxu1 %vm240_vm2, %v6311_v4  ;;  %v186_v27 = vrot.slane %v6369_v23, 7  ;;  %v187_v31 = vrot.slane %v6385_v28, 7  ;;  %v189_v33 = vrot.slane %v6390_v29, 7  ;;  %v191_v37 = vrot.slane %v6405_v34, 7  ;;  %v6430_v41 = vld [vmem:[%s9018_s5 + $0x70] sm:$0xff]  ;;  %v6445_v46 = vld [vmem:[%s9018_s5 + $0x78] sm:$0xff] }
  0x6f   :  { %5203 = vmatpush3.msk.msra.mxu0 %vm273_vm0, %v151_v2  ;;  %5181 = vmatprep.mubr.msk.f32.mxu0 %vm240_vm2, %v175_v15  ;;  %v185_v30 = vsel %vm170_vm1, %v182_v21, %v184_v25  ;;  %v193_v39 = vrot.slane %v6410_v35, 7  ;;  %v195_v43 = vrot.slane %v6425_v40, 7  ;;  %v197_v45 = vrot.slane %v6430_v41, 7  ;;  %v894_v19 = vld [vmem:[#allocation2] sm:$0xff]  ;;  %v896_v21 = vld [vmem:[#allocation2 + $0x10] sm:$0xff] }
  0x70   :  { %5155 = vmatprep.mubr.msk.f32.mxu1 %vm240_vm2, %v6316_v5  ;;  %v204_v32 = vsel %vm170_vm1, 0.0, %v186_v27  ;;  %v188_v36 = vsel %vm170_vm1, %v186_v27, %v187_v31  ;;  %v190_v38 = vsel %vm170_vm1, %v187_v31, %v189_v33  ;;  %v192_v42 = vsel %vm170_vm1, %v189_v33, %v191_v37  ;;  %v899_v27 = vld [vmem:[#allocation2 + $0x28] sm:$0xff] }
  0x71   :  { %v194_v44 = vsel %vm170_vm1, %v191_v37, %v193_v39  ;;  %v196_v47 = vsel %vm170_vm1, %v193_v39, %v195_v43  ;;  %v199_v48 = vrot.slane %v6445_v46, 7  ;;  %v206_v49 = vrot.slane %v6301_v1, 1  ;;  %v903_v33 = vld [vmem:[#allocation2 + $0x48] sm:$0xff] }
  0x72   :  { %5182 = vmatmul.mubr.msk.f32.gmra.mrb[2].mxu0 %vm240_vm2, %v177_v17  ;;  %5156 = vmatmul.mubr.msk.f32.gmra.mrb[2].mxu1 %vm240_vm2, %v6321_v6  ;;  %v198_v50 = vsel %vm170_vm1, %v195_v43, %v197_v45  ;;  %v207_v51 = vrot.slane %v6311_v4, 1  ;;  %v211_v55 = vrot.slane %v6321_v6, 1  ;;  %v213_v57 = vrot.slane %v6332_v10, 1  ;;  %v907_v39 = vld [vmem:[#allocation2 + $0x68] sm:$0xff] }
  0x73   :  { %5184 = vmatprep.mubr.msk.f32.mxu0 %vm240_vm2, %v179_v20  ;;  %5158 = vmatprep.mubr.msk.f32.mxu1 %vm240_vm2, %v6332_v10  ;;  %v200_v53 = vsel %vm170_vm1, %v197_v45, %v199_v48  ;;  %v215_v59 = vrot.slane %v6340_v13, 1  ;;  %v217_v61 = vrot.slane %v6348_v16, 1  ;;  %v219_v63 = vrot.slane %v6363_v22, 1  ;;  %v895_v20 = vld [vmem:[#allocation2 + $0x8] sm:$0xff]  ;;  %v913_v48 = vld [vmem:[#allocation2 + $0x98] sm:$0xff] }
  0x74   :  { %v208_v54 = vsel %vm205_vm3, %v206_v49, %v207_v51  ;;  %v210_v56 = vsel %vm205_vm3, %v207_v51, %v209_v52  ;;  %v212_v58 = vsel %vm205_vm3, %v209_v52, %v211_v55  ;;  %v214_v60 = vsel %vm205_vm3, %v211_v55, %v213_v57  ;;  %v911_v45 = vld [vmem:[#allocation2 + $0x88] sm:$0xff] }
  0x75   :  { %v216_v62 = vsel %vm205_vm3, %v213_v57, %v215_v59  ;;  %v218_v0 = vsel %vm205_vm3, %v215_v59, %v217_v61  ;;  %v220_v1 = vsel %vm205_vm3, %v217_v61, %v219_v63  ;;  %v221_v2 = vrot.slane %v6369_v23, 1  ;;  %v915_v51 = vld [vmem:[#allocation2 + $0xa8] sm:$0xff] }
  0x76   :  { %5185 = vmatmul.mubr.msk.f32.gmra.mrb[4].mxu0 %vm240_vm2, %v181_v24  ;;  %5159 = vmatmul.mubr.msk.f32.gmra.mrb[4].mxu1 %vm240_vm2, %v6340_v13  ;;  %v222_v3 = vrot.slane %v6385_v28, 1  ;;  %v238_v4 = vsel %vm205_vm3, %v219_v63, 0.0  ;;  %v224_v5 = vrot.slane %v6390_v29, 1  ;;  %v226_v7 = vrot.slane %v6405_v34, 1  ;;  %v897_v24 = vld [vmem:[#allocation2 + $0x18] sm:$0xff] }
  0x77   :  { %5187 = vmatprep.mubr.msk.f32.mxu0 %vm240_vm2, %v183_v26  ;;  %5161 = vmatprep.mubr.msk.f32.mxu1 %vm240_vm2, %v6348_v16  ;;  %v228_v9 = vrot.slane %v6410_v35, 1  ;;  %v230_v11 = vrot.slane %v6425_v40, 1  ;;  %v232_v13 = vrot.slane %v6430_v41, 1  ;;  %v234_v15 = vrot.slane %v6445_v46, 1  ;;  %v898_v26 = vld [vmem:[#allocation2 + $0x20] sm:$0xff] }
  0x78   :  { %v223_v6 = vsel %vm205_vm3, %v221_v2, %v222_v3  ;;  %v225_v8 = vsel %vm205_vm3, %v222_v3, %v224_v5  ;;  %v227_v10 = vsel %vm205_vm3, %v224_v5, %v226_v7  ;;  %v5232_v25 = vpack.c.bf16 %v897_v24, %v896_v21 }
  0x79   :  { %v229_v12 = vsel %vm205_vm3, %v226_v7, %v228_v9  ;;  %v231_v14 = vsel %vm205_vm3, %v228_v9, %v230_v11  ;;  %v233_v16 = vsel %vm205_vm3, %v230_v11, %v232_v13  ;;  %v235_v17 = vsel %vm205_vm3, %v232_v13, %v234_v15 }
  0x7a   :  { %5188 = vmatmul.mubr.msk.f32.gmra.mrb[6].mxu0 %vm240_vm2, %v185_v30  ;;  %5162 = vmatmul.mubr.msk.f32.gmra.mrb[6].mxu1 %vm240_vm2, %v6363_v22  ;;  %v239_v18 = vsel %vm205_vm3, %v234_v15, 0.0  ;;  %v6112_v22 = vmov 0.0|0.0   ;;  %v901_v30 = vld [vmem:[#allocation2 + $0x38] sm:$0xff] }
  0x7b   :  { %5190 = vmatprep.mubr.msk.f32.mxu0 %vm240_vm2, %v204_v32  ;;  %5164 = vmatprep.mubr.msk.f32.mxu1 %vm240_vm2, %v6369_v23  ;;  %v5229_v23 = vpack.c.bf16 %v895_v20, %v894_v19  ;;  %v902_v32 = vld [vmem:[#allocation2 + $0x40] sm:$0xff] }
  0x7c   :  { %5228 = vmatprep.subr.bf16.mxu1 %v6112_v22 }
  0x7d   :  { %5230 = vmatpush1.bf16.msra.mxu1 %v5229_v23 }
  0x7e   :  { %5191 = vmatmul.mubr.msk.f32.gmra.mrb[8].mxu0 %vm240_vm2, %v188_v36  ;;  %5165 = vmatmul.mubr.msk.f32.gmra.mrb[8].mxu1 %vm240_vm2, %v6385_v28  ;;  %v5235_v28 = vpack.c.bf16 %v899_v27, %v898_v26  ;;  %v905_v36 = vld [vmem:[#allocation2 + $0x58] sm:$0xff] }
  0x7f   :  { %5193 = vmatprep.mubr.msk.f32.mxu0 %vm240_vm2, %v190_v38  ;;  %5167 = vmatprep.mubr.msk.f32.mxu1 %vm240_vm2, %v6390_v29  ;;  %v900_v29 = vld [vmem:[#allocation2 + $0x30] sm:$0xff]  ;;  %v906_v38 = vld [vmem:[#allocation2 + $0x60] sm:$0xff] }
  0x80   :  { %5231 = vmatprep.subr.bf16.mxu1 %v6112_v22  ;;  %v5238_v31 = vpack.c.bf16 %v901_v30, %v900_v29 }
  0x81   :  { %5233 = vmatpush1.bf16.msra.mxu1 %v5232_v25 }
  0x82   :  { %5194 = vmatmul.mubr.msk.f32.gmra.mrb[10].mxu0 %vm240_vm2, %v192_v42  ;;  %5168 = vmatmul.mubr.msk.f32.gmra.mrb[10].mxu1 %vm240_vm2, %v6405_v34  ;;  %v5241_v34 = vpack.c.bf16 %v903_v33, %v902_v32  ;;  %v909_v42 = vld [vmem:[#allocation2 + $0x78] sm:$0xff] }
  0x83   :  { %5196 = vmatprep.mubr.msk.f32.mxu0 %vm240_vm2, %v194_v44  ;;  %5170 = vmatprep.mubr.msk.f32.mxu1 %vm240_vm2, %v6410_v35  ;;  %v904_v35 = vld [vmem:[#allocation2 + $0x50] sm:$0xff]  ;;  %v910_v44 = vld [vmem:[#allocation2 + $0x80] sm:$0xff] }
  0x84   :  { %5234 = vmatprep.subr.bf16.mxu1 %v6112_v22  ;;  %v5244_v37 = vpack.c.bf16 %v905_v36, %v904_v35 }
  0x85   :  { %5236 = vmatpush1.bf16.msra.mxu1 %v5235_v28 }
  0x86   :  { %5197 = vmatmul.mubr.msk.f32.gmra.mrb[12].mxu0 %vm240_vm2, %v196_v47  ;;  %5171 = vmatmul.mubr.msk.f32.gmra.mrb[12].mxu1 %vm240_vm2, %v6425_v40  ;;  %v5247_v40 = vpack.c.bf16 %v907_v39, %v906_v38  ;;  %v912_v47 = vld [vmem:[#allocation2 + $0x90] sm:$0xff] }
  0x87   :  { %5199 = vmatprep.mubr.msk.f32.mxu0 %vm240_vm2, %v198_v50  ;;  %5173 = vmatprep.mubr.msk.f32.mxu1 %vm240_vm2, %v6430_v41  ;;  %v908_v41 = vld [vmem:[#allocation2 + $0x70] sm:$0xff]  ;;  %v5256_v49 = vpack.c.bf16 %v913_v48, %v912_v47  ;;  %v914_v50 = vld [vmem:[#allocation2 + $0xa0] sm:$0xff] }
  0x88   :  { %5237 = vmatprep.subr.bf16.mxu1 %v6112_v22  ;;  %v5250_v43 = vpack.c.bf16 %v909_v42, %v908_v41  ;;  %v5259_v52 = vpack.c.bf16 %v915_v51, %v914_v50 }
  0x89   :  { %5239 = vmatpush1.bf16.msra.mxu1 %v5238_v31 }
  0x8a   :  { %5200 = vmatmul.mubr.msk.f32.gmra.mrb[14].mxu0 %vm240_vm2, %v200_v53  ;;  %5174 = vmatmul.mubr.msk.f32.gmra.mrb[14].mxu1 %vm240_vm2, %v6445_v46  ;;  %v5253_v46 = vpack.c.bf16 %v911_v45, %v910_v44  ;;  %v916_v53 = vld [vmem:[#allocation2 + $0xb0] sm:$0xff] }
  0x8b   :  { %5204 = vmatprep.mubr.msk.f32.mxu0 %vm240_vm2, %v208_v54  ;;  %5240 = vmatprep.subr.bf16.mxu1 %v6112_v22  ;;  %v917_v54 = vld [vmem:[#allocation2 + $0xb8] sm:$0xff] }
  0x8c   :  { %v5262_v55 = vpack.c.bf16 %v917_v54, %v916_v53 }
  0x8d   :  { %5242 = vmatpush1.bf16.msra.mxu1 %v5241_v34 }
  0x8e   :  { %5205 = vmatmul.mubr.msk.f32.vlgmr.msra.gmra.mrb[0].mxu0 %vm240_vm2, %v210_v56  ;;  %5243 = vmatprep.subr.bf16.mxu1 %v6112_v22 }
  0x8f   :  { %5207 = vmatprep.mubr.msk.f32.mxu0 %vm240_vm2, %v212_v58 }
  0x91   :  { %5245 = vmatpush1.bf16.msra.mxu1 %v5244_v37 }
  0x92   :  { %5208 = vmatmul.mubr.msk.f32.gmra.mrb[2].mxu0 %vm240_vm2, %v214_v60  ;;  %5246 = vmatprep.subr.bf16.mxu1 %v6112_v22 }
  0x93   :  { %5210 = vmatprep.mubr.msk.f32.mxu0 %vm240_vm2, %v216_v62 }
  0x95   :  { %5248 = vmatpush1.bf16.msra.mxu1 %v5247_v40 }
  0x96   :  { %5211 = vmatmul.mubr.msk.f32.gmra.mrb[4].mxu0 %vm240_vm2, %v218_v0  ;;  %5249 = vmatprep.subr.bf16.mxu1 %v6112_v22 }
  0x97   :  { %5213 = vmatprep.mubr.msk.f32.mxu0 %vm240_vm2, %v220_v1 }
  0x99   :  { %5251 = vmatpush1.bf16.msra.mxu1 %v5250_v43 }
  0x9a   :  { %5214 = vmatmul.mubr.msk.f32.gmra.mrb[6].mxu0 %vm240_vm2, %v238_v4  ;;  %5252 = vmatprep.subr.bf16.mxu1 %v6112_v22 }
  0x9b   :  { %5216 = vmatprep.mubr.msk.f32.mxu0 %vm240_vm2, %v223_v6  ;;  %v6533_v6 = vld [vmem:[%s9019_s24] ss:$0 sm:$0xff] }
  0x9d   :  { %5254 = vmatpush1.bf16.msra.mxu1 %v5253_v46 }
  0x9e   :  { %5217 = vmatmul.mubr.msk.f32.gmra.mrb[8].mxu0 %vm240_vm2, %v225_v8  ;;  %5255 = vmatprep.subr.bf16.mxu1 %v6112_v22 }
  0x9f   :  { %5219 = vmatprep.mubr.msk.f32.mxu0 %vm240_vm2, %v227_v10 }
  0xa1   :  { %5257 = vmatpush1.bf16.msra.mxu1 %v5256_v49 }
  0xa2   :  { %5220 = vmatmul.mubr.msk.f32.gmra.mrb[10].mxu0 %vm240_vm2, %v229_v12  ;;  %5258 = vmatprep.subr.bf16.mxu1 %v6112_v22  ;;  %v6542_v12 = vld [vmem:[%s9020_s26] ss:$0 sm:$0xff] }
  0xa3   :  { %5222 = vmatprep.mubr.msk.f32.mxu0 %vm240_vm2, %v231_v14 }
  0xa5   :  { %5260 = vmatpush1.bf16.msra.mxu1 %v5259_v52 }
  0xa6   :  { %5223 = vmatmul.mubr.msk.f32.gmra.mrb[12].mxu0 %vm240_vm2, %v233_v16  ;;  %5261 = vmatprep.subr.bf16.mxu1 %v6112_v22 }
  0xa7   :  { %5225 = vmatprep.mubr.msk.f32.mxu0 %vm240_vm2, %v235_v17 }
  0xa9   :  { %5263 = vmatpush1.bf16.msra.mxu1 %v5262_v55 }
  0xaa   :  { %5226 = vmatmul.mubr.msk.f32.gmra.mrb[14].mxu0 %vm240_vm2, %v239_v18 }
 0x141   :  { %v5154_v56 = vpop.f32.mrb[0].mxu1 }
 0x142   :  { %v343_v57 = vpop.f32.mrb[1].mxu1 }
 0x145   :  { %v5157_v58 = vpop.f32.mrb[2].mxu1 }
 0x146   :  { %v353_v59 = vpop.f32.mrb[3].mxu1 }
 0x149   :  { %v5160_v60 = vpop.f32.mrb[4].mxu1 }
 0x14a   :  { %v363_v61 = vpop.f32.mrb[5].mxu1 }
 0x14d   :  { %v5163_v62 = vpop.f32.mrb[6].mxu1 }
 0x14e   :  { %v373_v63 = vpop.f32.mrb[7].mxu1 }
 0x151   :  { %v6518_v0 = vpop.f32.mrb[8].mxu1 }
 0x152   :  { %v6520_v1 = vpop.f32.mrb[9].mxu1 }
 0x155   :  { %v6522_v2 = vpop.f32.mrb[10].mxu1 }
 0x156   :  { %v6524_v3 = vpop.f32.mrb[11].mxu1 }
 0x159   :  { %v6526_v4 = vpop.f32.mrb[12].mxu1 }
 0x15a   :  { %v6528_v5 = vpop.f32.mrb[13].mxu1 }
 0x15d   :  { %v6535_v8 = vpop.f32.mrb[14].mxu1 }
 0x15e   :  { %v6537_v11 = vpop.f32.mrb[15].mxu1 }
 0x161   :  { %v5206_v7 = vpop.f32.mrb[0].mxu0 }
 0x162   :  { %v5840_v9 = vadd.f32 %v5206_v7, %v5154_v56  ;;  %v707_v10 = vpop.f32.mrb[1].mxu0 }
 0x163   :  { %v5841_v13 = vadd.f32 %v707_v10, %v343_v57 }
 0x164   :  { %v809_v14 = vmul.f32 %v5840_v9, %v6533_v6 }
 0x165   :  { %v808_v15 = vmul.f32 %v5841_v13, %v6533_v6  ;;  %v5209_v16 = vpop.f32.mrb[2].mxu0 }
 0x166   :  { %v831_v17 = vadd.f32 %v6542_v12, %v809_v14  ;;  %v5842_v18 = vadd.f32 %v5209_v16, %v5157_v58  ;;  %v717_v19 = vpop.f32.mrb[3].mxu0 }
 0x167   :  { %v830_v20 = vadd.f32 %v6542_v12, %v808_v15  ;;  %v5843_v21 = vadd.f32 %v717_v19, %v353_v59 }
 0x168   :  { %vm847_vm4 = vcmp.gt.f32.partialorder %v831_v17, 0.0  ;;  %v863_v22 = vmul.f32 0.01, %v831_v17  ;;  %v811_v23 = vmul.f32 %v5842_v18, %v6533_v6 }
 0x169   :  { %v810_v24 = vmul.f32 %v5843_v21, %v6533_v6  ;;  %v5212_v25 = vpop.f32.mrb[4].mxu0  ;;  %vm846_vm5 = vcmp.gt.f32.partialorder %v830_v20, 0.0  ;;  %v862_v26 = vmul.f32 0.01, %v830_v20 }
 0x16a   :  { %v6550_v27 = vsel %vm847_vm4, %v831_v17, %v863_v22  ;;  %v833_v28 = vadd.f32 %v6542_v12, %v811_v23  ;;  %v5844_v29 = vadd.f32 %v5212_v25, %v5160_v60  ;;  %v727_v30 = vpop.f32.mrb[5].mxu0 }
 0x16b   :  { %v832_v31 = vadd.f32 %v6542_v12, %v810_v24  ;;  %v5845_v32 = vadd.f32 %v727_v30, %v363_v61  ;;  %v6554_v33 = vsel %vm846_vm5, %v830_v20, %v862_v26  ;;  %v985_v34 = vrot.slane %v6550_v27, 1 }
 0x16c   :  { %v813_v35 = vmul.f32 %v5844_v29, %v6533_v6  ;;  %1018 = vrot.lane.b32.xlu0 %v6554_v33, %s6113_s1  ;;  %v984_v36 = vrot.slane %v6554_v33, 1  ;;  %vm849_vm7 = vcmp.gt.f32.partialorder %v833_v28, 0.0  ;;  %v865_v40 = vmul.f32 0.01, %v833_v28 }
 0x16d   :  { %v812_v37 = vmul.f32 %v5845_v32, %v6533_v6  ;;  %v5215_v38 = vpop.f32.mrb[6].mxu0  ;;  %vm848_vm8 = vcmp.gt.f32.partialorder %v832_v31, 0.0  ;;  %v864_v39 = vmul.f32 0.01, %v832_v31  ;;  %v936_v49 = vrot.slane %v6554_v33, 7  ;;  %v1362_v33 = vld [vmem:[#allocation5 + $0x40] sm:$0xff] }
 0x16e   :  { %v835_v41 = vadd.f32 %v6542_v12, %v813_v35  ;;  %v5846_v42 = vadd.f32 %v5215_v38, %v5163_v62  ;;  %v737_v43 = vpop.f32.mrb[7].mxu0  ;;  %v986_v44 = vsel %vm205_vm3, %v984_v36, %v985_v34  ;;  %v6568_v48 = vsel %vm849_vm7, %v833_v28, %v865_v40 }
 0x16f   :  { %v834_v45 = vadd.f32 %v6542_v12, %v812_v37  ;;  %v5847_v46 = vadd.f32 %v737_v43, %v373_v63  ;;  %4771 = vmatprep.mubr.msk.f32.mxu1 %vm1066_vm6, %v986_v44  ;;  %v6566_v47 = vsel %vm848_vm8, %v832_v31, %v864_v39  ;;  %v941_v55 = vrot.slane %v6568_v48, 7 }
 0x170   :  { %v815_v50 = vmul.f32 %v5846_v42, %v6533_v6  ;;  %1020 = vrot.lane.b32.xlu0 %v6550_v27, %s6113_s1  ;;  %1022 = vrot.lane.b32.xlu1 %v6566_v47, %s6113_s1  ;;  %v939_v51 = vrot.slane %v6566_v47, 7  ;;  %v987_v52 = vrot.slane %v6566_v47, 1  ;;  %vm851_vm10 = vcmp.gt.f32.partialorder %v835_v41, 0.0 }
 0x171   :  { %v814_v53 = vmul.f32 %v5847_v46, %v6533_v6  ;;  %v5218_v54 = vpop.f32.mrb[8].mxu0  ;;  %vm850_vm9 = vcmp.gt.f32.partialorder %v834_v45, 0.0  ;;  %v866_v56 = vmul.f32 0.01, %v834_v45  ;;  %v867_v60 = vmul.f32 0.01, %v835_v41 }
 0x172   :  { %v837_v57 = vadd.f32 %v6542_v12, %v815_v50  ;;  %v5848_v58 = vadd.f32 %v5218_v54, %v6518_v0  ;;  %v747_v59 = vpop.f32.mrb[9].mxu0  ;;  %v6589_v7 = vsel %vm205_vm3, %v985_v34, %v987_v52  ;;  %v989_v10 = vrot.slane %v6568_v48, 1 }
 0x173   :  { %v836_v61 = vadd.f32 %v6542_v12, %v814_v53  ;;  %v5849_v62 = vadd.f32 %v747_v59, %v6520_v1  ;;  %v6584_v63 = vsel %vm850_vm9, %v834_v45, %v866_v56  ;;  %v6598_v1 = vsel %vm851_vm10, %v835_v41, %v867_v60  ;;  %vm6880_vm9 = vmneg %vm170_vm1 }
 0x174   :  { %v817_v9 = vmul.f32 %v5848_v58, %v6533_v6  ;;  %1024 = vrot.lane.b32.xlu1 %v6568_v48, %s6113_s1  ;;  %1026 = vrot.lane.b32.xlu0 %v6584_v63, %s6113_s1  ;;  %v943_v0 = vrot.slane %v6584_v63, 7  ;;  %v991_v14 = vrot.slane %v6584_v63, 1  ;;  %v945_v16 = vrot.slane %v6598_v1, 7 }
 0x175   :  { %v816_v13 = vmul.f32 %v5849_v62, %v6533_v6  ;;  %v5221_v15 = vpop.f32.mrb[10].mxu0  ;;  %vm852_vm11 = vcmp.gt.f32.partialorder %v836_v61, 0.0  ;;  %v868_v20 = vmul.f32 0.01, %v836_v61  ;;  %vm853_vm12 = vcmp.gt.f32.partialorder %v837_v57, 0.0 }
 0x176   :  { %v839_v17 = vadd.f32 %v6542_v12, %v817_v9  ;;  %v5850_v18 = vadd.f32 %v5221_v15, %v6522_v2  ;;  %v757_v19 = vpop.f32.mrb[11].mxu0  ;;  %v993_v23 = vrot.slane %v6598_v1, 1  ;;  %v869_v24 = vmul.f32 0.01, %v837_v57 }
 0x177   :  { %v838_v21 = vadd.f32 %v6542_v12, %v816_v13  ;;  %v5851_v22 = vadd.f32 %v757_v19, %v6524_v3  ;;  %v6611_v26 = vsel %vm852_vm11, %v836_v61, %v868_v20  ;;  %v937_v2 = vrot.slane %v6550_v27, 7 }
 0x178   :  { %v819_v25 = vmul.f32 %v5850_v18, %v6533_v6  ;;  %1028 = vrot.lane.b32.xlu1 %v6598_v1, %s6113_s1  ;;  %v871_v28 = vmul.f32 0.01, %v839_v17  ;;  %1030 = vrot.lane.b32.xlu0 %v6611_v26, %s6113_s1  ;;  %v947_v3 = vrot.slane %v6611_v26, 7  ;;  %v6618_v31 = vsel %vm853_vm12, %v837_v57, %v869_v24 }
 0x179   :  { %v818_v29 = vmul.f32 %v5851_v22, %v6533_v6  ;;  %v5224_v30 = vpop.f32.mrb[12].mxu0  ;;  %vm855_vm13 = vcmp.gt.f32.partialorder %v839_v17, 0.0  ;;  %v995_v34 = vrot.slane %v6611_v26, 1  ;;  %v949_v37 = vrot.slane %v6618_v31, 7 }
 0x17a   :  { %v841_v32 = vadd.f32 %v6542_v12, %v819_v25  ;;  %v5852_v35 = vadd.f32 %v5224_v30, %v6526_v4  ;;  %v767_v36 = vpop.f32.mrb[13].mxu0  ;;  %vm854_vm14 = vcmp.gt.f32.partialorder %v838_v21, 0.0  ;;  %v870_v40 = vmul.f32 0.01, %v838_v21 }
 0x17b   :  { %v840_v38 = vadd.f32 %v6542_v12, %v818_v29  ;;  %v5853_v39 = vadd.f32 %v767_v36, %v6528_v5  ;;  %v997_v42 = vrot.slane %v6618_v31, 1  ;;  %v6630_v43 = vsel %vm855_vm13, %v839_v17, %v871_v28 }
 0x17c   :  { %v821_v41 = vmul.f32 %v5852_v35, %v6533_v6  ;;  %1032 = vrot.lane.b32.xlu1 %v6618_v31, %s6113_s1  ;;  %v873_v44 = vmul.f32 0.01, %v841_v32  ;;  %v6633_v45 = vsel %vm854_vm14, %v838_v21, %v870_v40  ;;  %v952_v50 = vrot.slane %v6630_v43, 7 }
 0x17d   :  { %v820_v4 = vmul.f32 %v5853_v39, %v6533_v6  ;;  %v5227_v46 = vpop.f32.mrb[14].mxu0  ;;  %vm857_vm15 = vcmp.gt.f32.partialorder %v841_v32, 0.0  ;;  %1034 = vrot.lane.b32.xlu0 %v6633_v45, %s6113_s1  ;;  %v951_v53 = vrot.slane %v6633_v45, 7  ;;  %v1000_v57 = vrot.slane %v6630_v43, 1 }
 0x17e   :  { %v843_v5 = vadd.f32 %v6542_v12, %v821_v41  ;;  %v5854_v54 = vadd.f32 %v5227_v46, %v6535_v8  ;;  %v777_v56 = vpop.f32.mrb[15].mxu0  ;;  %vm856_vm0 = vcmp.gt.f32.partialorder %v840_v38, 0.0  ;;  %v872_v60 = vmul.f32 0.01, %v840_v38 }
 0x17f   :  { %v842_v58 = vadd.f32 %v6542_v12, %v820_v4  ;;  %v5855_v59 = vadd.f32 %v777_v56, %v6537_v11  ;;  %v889_v62 = vsel %vm857_vm15, %v841_v32, %v873_v44  ;;  %v999_v13 = vrot.slane %v6633_v45, 1  ;;  %v1394_v45 = vld [vmem:[#allocation5 + $0x140] sm:$0xff] }
 0x180   :  { %v823_v61 = vmul.f32 %v5854_v54, %v6533_v6  ;;  %1036 = vrot.lane.b32.xlu1 %v6630_v43, %s6113_s1  ;;  %vm859_vm2 = vcmp.gt.f32.partialorder %v843_v5, 0.0  ;;  %v875_v9 = vmul.f32 0.01, %v843_v5  ;;  %v888_v15 = vsel %vm856_vm0, %v840_v38, %v872_v60  ;;  %v1354_v60 = vld [vmem:[#allocation5] sm:$0xff] }
 0x181   :  { %v822_v8 = vmul.f32 %v5855_v59, %v6533_v6  ;;  %v956_v17 = vrot.slane %v889_v62, 7  ;;  %1038 = vrot.lane.b32.xlu0 %v888_v15, %s6113_s1  ;;  %v954_v11 = vrot.slane %v888_v15, 7  ;;  %v1004_v19 = vrot.slane %v889_v62, 1 }
 0x182   :  { %v845_v18 = vadd.f32 %v6542_v12, %v823_v61  ;;  %vm858_vm4 = vcmp.gt.f32.partialorder %v842_v58, 0.0  ;;  %v874_v21 = vmul.f32 0.01, %v842_v58  ;;  %v891_v22 = vsel %vm859_vm2, %v843_v5, %v875_v9  ;;  %v1356_v61 = vld [vmem:[#allocation5 + $0x10] sm:$0xff]  ;;  %v1361_v9 = vld [vmem:[#allocation5 + $0x38] sm:$0xff] }
 0x183   :  { %v844_v20 = vadd.f32 %v6542_v12, %v822_v8  ;;  %v6657_v24 = vsel %vm170_vm1, %v936_v49, %v937_v2  ;;  %v1002_v6 = vrot.slane %v888_v15, 1  ;;  %v960_v25 = vrot.slane %v891_v22, 7 }
 0x184   :  { %1040 = vrot.lane.b32.xlu1 %v889_v62, %s6113_s1  ;;  %vm861_vm5 = vcmp.gt.f32.partialorder %v845_v18, 0.0  ;;  %v877_v28 = vmul.f32 0.01, %v845_v18  ;;  %v890_v29 = vsel %vm858_vm4, %v842_v58, %v874_v21  ;;  %v6665_v12 = vsel %vm205_vm3, %v987_v52, %v989_v10  ;;  %v1357_v58 = vld [vmem:[#allocation5 + $0x18] sm:$0xff]  ;;  %v1359_v62 = vld [vmem:[#allocation5 + $0x28] sm:$0xff] }
 0x185   :  { %vm860_vm7 = vcmp.gt.f32.partialorder %v844_v20, 0.0  ;;  %v876_v30 = vmul.f32 0.01, %v844_v20  ;;  %1042 = vrot.lane.b32.xlu0 %v890_v29, %s6113_s1  ;;  %v958_v32 = vrot.slane %v890_v29, 7  ;;  %v1008_v35 = vrot.slane %v891_v22, 1  ;;  %v1365_v21 = vld [vmem:[#allocation5 + $0x58] sm:$0xff] }
 0x186   :  { %v6668_v36 = vsel %vm861_vm5, %v845_v18, %v877_v28  ;;  %v6675_v38 = vsel %vm170_vm1, %v937_v2, %v939_v51  ;;  %v1006_v39 = vrot.slane %v890_v29, 1  ;;  %v6683_v52 = vsel %vm205_vm3, %v989_v10, %v991_v14  ;;  %v1358_v18 = vld [vmem:[#allocation5 + $0x20] sm:$0xff]  ;;  %v1364_v29 = vld [vmem:[#allocation5 + $0x50] sm:$0xff] }
 0x187   :  { %v892_v40 = vsel %vm860_vm7, %v844_v20, %v876_v30  ;;  %v964_v41 = vrot.slane %v6668_v36, 7  ;;  %v1012_v4 = vrot.slane %v6668_v36, 1  ;;  %v6692_v27 = vsel %vm170_vm1, %v939_v51, %v941_v55  ;;  %v1363_v20 = vld [vmem:[#allocation5 + $0x48] sm:$0xff] }
 0x188   :  { %1044 = vrot.lane.b32.xlu1 %v891_v22, %s6113_s1  ;;  %v1010_v44 = vrot.slane %v892_v40, 1  ;;  %v6699_v2 = vsel %vm205_vm3, %v991_v14, %v993_v23  ;;  %v6706_v10 = vsel %vm170_vm1, %v941_v55, %v943_v0  ;;  %v6713_v47 = vsel %vm205_vm3, %v993_v23, %v995_v34  ;;  %v1367_v30 = vld [vmem:[#allocation5 + $0x68] sm:$0xff] }
 0x189   :  { %v6720_v51 = vsel %vm170_vm1, %v943_v0, %v945_v16  ;;  %v6727_v48 = vsel %vm205_vm3, %v995_v34, %v997_v42  ;;  %1046 = vrot.lane.b32.xlu0 %v892_v40, %s6113_s1  ;;  %v962_v55 = vrot.slane %v892_v40, 7  ;;  %v6735_v14 = vsel %vm170_vm1, %v945_v16, %v947_v3  ;;  %v1368_v40 = vld [vmem:[#allocation5 + $0x70] sm:$0xff] }
 0x18a   :  { %v6742_v63 = vsel %vm170_vm1, %v947_v3, %v949_v37  ;;  %v6745_v0 = vsel %vm205_vm3, %v999_v13, %v1000_v57  ;;  %v6748_v23 = vsel %vm205_vm3, %v1000_v57, %v1002_v6  ;;  %v6755_v1 = vsel %vm170_vm1, %v951_v53, %v952_v50  ;;  %v1355_v57 = vld [vmem:[#allocation5 + $0x8] sm:$0xff] }
 0x18b   :  { %v6758_v16 = vsel %vm205_vm3, %v1002_v6, %v1004_v19  ;;  %v6765_v26 = vsel %vm170_vm1, %v952_v50, %v954_v11  ;;  %v6768_v3 = vsel %vm205_vm3, %v1004_v19, %v1006_v39  ;;  %v6771_v34 = vsel %vm170_vm1, %v954_v11, %v956_v17  ;;  %v1360_v11 = vld [vmem:[#allocation5 + $0x30] sm:$0xff] }
 0x18c   :  { %1048 = vrot.lane.b32.xlu1 %v6668_v36, %s6113_s1  ;;  %v6774_v37 = vsel %vm205_vm3, %v1006_v39, %v1008_v35  ;;  %v6777_v46 = vsel %vm170_vm1, %v956_v17, %v958_v32  ;;  %v6780_v5 = vsel %vm205_vm3, %v1008_v35, %v1010_v44  ;;  %v6783_v43 = vsel %vm170_vm1, %v958_v32, %v960_v25  ;;  %v1369_v32 = vld [vmem:[#allocation5 + $0x78] sm:$0xff]  ;;  %v1366_v39 = vld [vmem:[#allocation5 + $0x60] sm:$0xff] }
 0x18d   :  { %v6788_v50 = vsel %vm205_vm3, %v1010_v44, %v1012_v4  ;;  %v6791_v54 = vsel %vm170_vm1, %v960_v25, %v962_v55  ;;  %v6794_v56 = vsel %vm170_vm1, %v962_v55, %v964_v41  ;;  %v5264_v59 = vpack.c.bf16 %v1357_v58, %v1355_v57  ;;  %v1371_v44 = vld [vmem:[#allocation5 + $0x88] sm:$0xff]  ;;  %v1373_v55 = vld [vmem:[#allocation5 + $0x98] sm:$0xff]  ;;  %v1370_v58 = vld [vmem:[#allocation5 + $0x80] sm:$0xff] }
 0x18e   :  { %v5266_v13 = vpack.c.bf16 %v1356_v61, %v1354_v60  ;;  %v982_v15 = vsel %vm170_vm1, 0.0, %v936_v49  ;;  %v5268_v17 = vpack.c.bf16 %v1361_v9, %v1359_v62  ;;  %v5270_v22 = vpack.c.bf16 %v1360_v11, %v1358_v18  ;;  %v1375_v61 = vld [vmem:[#allocation5 + $0xa8] sm:$0xff]  ;;  %v1377_v62 = vld [vmem:[#allocation5 + $0xb8] sm:$0xff] }
 0x18f   :  { %5265 = vmatprep.subr.bf16.mxu1 %v5264_v59  ;;  %v5272_v28 = vpack.c.bf16 %v1365_v21, %v1363_v20  ;;  %v5274_v35 = vpack.c.bf16 %v1364_v29, %v1362_v33  ;;  %v1372_v59 = vld [vmem:[#allocation5 + $0x90] sm:$0xff]  ;;  %v1381_v18 = vld [vmem:[#allocation5 + $0xd8] sm:$0xff] }
 0x190   :  { %v1380_v20 = vld [vmem:[#allocation5 + $0xd0] sm:$0xff] }
 0x191   :  { %v1384_v33 = vld [vmem:[#allocation5 + $0xf0] sm:$0xff] }
 0x1de   :  { %v1019_v8 = vpop.permute.xlu0 %1018 }
 0x1df   :  { %v1067_v19 = vsel %vm1066_vm6, %v982_v15, %v1019_v8  ;;  %v1376_v8 = vld [vmem:[#allocation5 + $0xb0] sm:$0xff] }
 0x1e0   :  { %1182 = vmatmul.mubr.f32.vlgmr.msra.gmra.mrb[16].mxu1 %v1067_v19  ;;  %v1378_v19 = vld [vmem:[#allocation5 + $0xc0] sm:$0xff] }
 0x1e1   :  { %4772 = vmatprep.mubr.msk.f32.mxu1 %vm1066_vm6, %v6589_v7  ;;  %5267 = vmatpush1.bf16.msra.mxu1 %v5266_v13  ;;  %v5276_v7 = vpack.c.bf16 %v1369_v32, %v1367_v30  ;;  %v1374_v13 = vld [vmem:[#allocation5 + $0xa0] sm:$0xff]  ;;  %v1389_v30 = vld [vmem:[#allocation5 + $0x118] sm:$0xff] }
 0x1e2   :  { %v1021_v6 = vpop.permute.xlu0 %1020  ;;  %v1023_v25 = vpop.permute.xlu1 %1022  ;;  %5269 = vmatprep.subr.bf16.mxu1 %v5268_v17  ;;  %v1379_v17 = vld [vmem:[#allocation5 + $0xc8] sm:$0xff] }
 0x1e3   :  { %v1068_v49 = vsel %vm1066_vm6, %v6657_v24, %v1021_v6  ;;  %v1069_v41 = vsel %vm1066_vm6, %v6675_v38, %v1023_v25  ;;  %v5278_v24 = vpack.c.bf16 %v1368_v40, %v1366_v39  ;;  %v5282_v38 = vpack.c.bf16 %v1372_v59, %v1370_v58  ;;  %v1385_v6 = vld [vmem:[#allocation5 + $0xf8] sm:$0xff]  ;;  %v1388_v39 = vld [vmem:[#allocation5 + $0x110] sm:$0xff] }
 0x1e4   :  { %1187 = vmatmul.mubr.f32.gmra.mrb[18].mxu1 %v1068_v49  ;;  %v1387_v49 = vld [vmem:[#allocation5 + $0x108] sm:$0xff]  ;;  %v1397_v58 = vld [vmem:[#allocation5 + $0x158] sm:$0xff] }
 0x1e5   :  { %4773 = vmatprep.mubr.msk.f32.mxu1 %vm1066_vm6, %v6665_v12  ;;  %5271 = vmatpush1.bf16.msra.mxu1 %v5270_v22  ;;  %v5280_v12 = vpack.c.bf16 %v1373_v55, %v1371_v44  ;;  %v1383_v22 = vld [vmem:[#allocation5 + $0xe8] sm:$0xff] }
 0x1e6   :  { %5273 = vmatprep.subr.bf16.mxu1 %v5272_v28  ;;  %v1025_v57 = vpop.permute.xlu1 %1024  ;;  %v1027_v9 = vpop.permute.xlu0 %1026  ;;  %v1382_v28 = vld [vmem:[#allocation5 + $0xe0] sm:$0xff] }
 0x1e7   :  { %v1070_v60 = vsel %vm1066_vm6, %v6692_v27, %v1025_v57  ;;  %v1071_v15 = vsel %vm1066_vm6, %v6706_v10, %v1027_v9  ;;  %v5286_v27 = vpack.c.bf16 %v1376_v8, %v1374_v13  ;;  %v5290_v10 = vpack.c.bf16 %v1380_v20, %v1378_v19  ;;  %v1390_v57 = vld [vmem:[#allocation5 + $0x120] sm:$0xff]  ;;  %v1401_v9 = vld [vmem:[#allocation5 + $0x178] sm:$0xff]  ;;  %v1400_v8 = vld [vmem:[#allocation5 + $0x170] sm:$0xff] }
 0x1e8   :  { %1192 = vmatmul.mubr.f32.gmra.mrb[20].mxu1 %v1069_v41  ;;  %v1393_v41 = vld [vmem:[#allocation5 + $0x138] sm:$0xff]  ;;  %v1398_v13 = vld [vmem:[#allocation5 + $0x160] sm:$0xff]  ;;  %v1407_v20 = vld [vmem:[#allocation5 + $0x1a8] sm:$0xff] }
 0x1e9   :  { %4774 = vmatprep.mubr.msk.f32.mxu1 %vm1066_vm6, %v6683_v52  ;;  %5275 = vmatpush1.bf16.msra.mxu1 %v5274_v35  ;;  %v5284_v52 = vpack.c.bf16 %v1377_v62, %v1375_v61  ;;  %v5296_v35 = vpack.c.bf16 %v1389_v30, %v1387_v49  ;;  %v1396_v61 = vld [vmem:[#allocation5 + $0x150] sm:$0xff]  ;;  %v1399_v62 = vld [vmem:[#allocation5 + $0x168] sm:$0xff]  ;;  %v1413_v49 = vld [vmem:[#allocation5 + $0x1d8] sm:$0xff] }
 0x1ea   :  { %5277 = vmatprep.subr.bf16.mxu1 %v5276_v7  ;;  %v1029_v11 = vpop.permute.xlu1 %1028  ;;  %v1031_v25 = vpop.permute.xlu0 %1030  ;;  %v1386_v7 = vld [vmem:[#allocation5 + $0x100] sm:$0xff] }
 0x1eb   :  { %v1072_v21 = vsel %vm1066_vm6, %v6720_v51, %v1029_v11  ;;  %v1073_v29 = vsel %vm1066_vm6, %v6735_v14, %v1031_v25  ;;  %v1016_v51 = vsel %vm205_vm3, %v997_v42, 0.0  ;;  %v1391_v14 = vld [vmem:[#allocation5 + $0x128] sm:$0xff]  ;;  %v5298_v31 = vpack.c.bf16 %v1388_v39, %v1386_v7  ;;  %v1408_v25 = vld [vmem:[#allocation5 + $0x1b0] sm:$0xff]  ;;  %v1410_v30 = vld [vmem:[#allocation5 + $0x1c0] sm:$0xff] }
 0x1ec   :  { %1197 = vmatmul.mubr.f32.gmra.mrb[22].mxu1 %v1070_v60  ;;  %v983_v42 = vsel %vm170_vm1, 0.0, %v951_v53  ;;  %v5300_v55 = vpack.c.bf16 %v1393_v41, %v1391_v14  ;;  %v1416_v7 = vld [vmem:[#allocation5 + $0x1f0] sm:$0xff]  ;;  %v1419_v39 = vld [vmem:[#allocation5 + $0x208] sm:$0xff] }
 0x1ed   :  { %4775 = vmatprep.mubr.msk.f32.mxu1 %vm1066_vm6, %v6699_v2  ;;  %5279 = vmatpush1.bf16.msra.mxu1 %v5278_v24  ;;  %v5288_v2 = vpack.c.bf16 %v1381_v18, %v1379_v17  ;;  %v1392_v24 = vld [vmem:[#allocation5 + $0x130] sm:$0xff]  ;;  %v1403_v17 = vld [vmem:[#allocation5 + $0x188] sm:$0xff]  ;;  %v1405_v18 = vld [vmem:[#allocation5 + $0x198] sm:$0xff] }
 0x1ee   :  { %5281 = vmatprep.subr.bf16.mxu1 %v5280_v12  ;;  %v1033_v32 = vpop.permute.xlu1 %1032  ;;  %v6869_v14 = vld [vmem:[%s9021_s7] ss:$0 sm:$0xff] }
 0x1ef   :  { %v1074_v40 = vsel %vm1066_vm6, %v6742_v63, %v1033_v32  ;;  %v1035_v44 = vpop.permute.xlu0 %1034  ;;  %v1395_v63 = vld [vmem:[#allocation5 + $0x148] sm:$0xff]  ;;  %v1412_v32 = vld [vmem:[#allocation5 + $0x1d0] sm:$0xff] }
 0x1f0   :  { %1202 = vmatmul.mubr.f32.gmra.mrb[24].mxu1 %v1071_v15  ;;  %v1075_v12 = vsel %vm1066_vm6, %v983_v42, %v1035_v44  ;;  %v5304_v60 = vpack.c.bf16 %v1397_v58, %v1395_v63  ;;  %v6874_v41 = vld [vmem:[%s9022_s23] ss:$0 sm:$0xff] }
 0x1f1   :  { %4776 = vmatprep.mubr.msk.f32.mxu1 %vm1066_vm6, %v6713_v47  ;;  %5283 = vmatpush1.bf16.msra.mxu1 %v5282_v38  ;;  %v5292_v47 = vpack.c.bf16 %v1385_v6, %v1383_v22  ;;  %v1406_v6 = vld [vmem:[#allocation5 + $0x1a0] sm:$0xff] }
 0x1f2   :  { %5285 = vmatprep.subr.bf16.mxu1 %v5284_v52  ;;  %v1037_v59 = vpop.permute.xlu1 %1036  ;;  %v5306_v52 = vpack.c.bf16 %v1396_v61, %v1394_v45  ;;  %v6884_v61 = vld [vmem:[#allocation5 + $0x220] sm:$0xff] }
 0x1f3   :  { %v1076_v53 = vsel %vm1066_vm6, %v6755_v1, %v1037_v59  ;;  %v1039_v38 = vpop.permute.xlu0 %1038  ;;  %v5310_v1 = vpack.c.bf16 %v1400_v8, %v1398_v13  ;;  %v2069_v13 = vld [vmem:[%s8980_s10 + $0x8] sm:$0xff]  ;;  %v2071_v8 = vld [vmem:[%s8980_s10 + $0x18] sm:$0xff] }
 0x1f4   :  { %1207 = vmatmul.mubr.f32.gmra.mrb[26].mxu1 %v1072_v21  ;;  %v1077_v15 = vsel %vm1066_vm6, %v6765_v26, %v1039_v38  ;;  %v1409_v21 = vld [vmem:[#allocation5 + $0x1b8] sm:$0xff] }
 0x1f5   :  { %4777 = vmatprep.mubr.msk.f32.mxu1 %vm1066_vm6, %v6727_v48  ;;  %5287 = vmatpush1.bf16.msra.mxu1 %v5286_v27  ;;  %v5294_v48 = vpack.c.bf16 %v1384_v33, %v1382_v28  ;;  %v1402_v27 = vld [vmem:[#allocation5 + $0x180] sm:$0xff] }
 0x1f6   :  { %5289 = vmatprep.subr.bf16.mxu1 %v5288_v2  ;;  %v1041_v11 = vpop.permute.xlu1 %1040  ;;  %v1404_v2 = vld [vmem:[#allocation5 + $0x190] sm:$0xff] }
 0x1f7   :  { %v1078_v19 = vsel %vm1066_vm6, %v6771_v34, %v1041_v11  ;;  %v1043_v22 = vpop.permute.xlu0 %1042  ;;  %v5314_v26 = vpack.c.bf16 %v1404_v2, %v1402_v27  ;;  %v5318_v34 = vpack.c.bf16 %v1408_v25, %v1406_v6  ;;  %v2073_v27 = vld [vmem:[%s8980_s10 + $0x28] sm:$0xff]  ;;  %v2075_v2 = vld [vmem:[%s8980_s10 + $0x38] sm:$0xff] }
 0x1f8   :  { %1212 = vmatmul.mubr.f32.gmra.mrb[28].mxu1 %v1073_v29  ;;  %v1411_v29 = vld [vmem:[#allocation5 + $0x1c8] sm:$0xff]  ;;  %v5364_v25 = vpack.c.bf16 %v2075_v2, %v2073_v27 }
 0x1f9   :  { %4778 = vmatprep.mubr.msk.f32.mxu1 %vm1066_vm6, %v1016_v51  ;;  %5291 = vmatpush1.bf16.msra.mxu1 %v5290_v10  ;;  %v1079_v10 = vsel %vm1066_vm6, %v6777_v46, %v1043_v22  ;;  %v5322_v51 = vpack.c.bf16 %v1412_v32, %v1410_v30  ;;  %v2078_v32 = vld [vmem:[%s8980_s10 + $0x50] sm:$0xff] }
 0x1fa   :  { %5293 = vmatprep.subr.bf16.mxu1 %v5292_v47  ;;  %v1045_v47 = vpop.permute.xlu1 %1044 }
 0x1fb   :  { %v1047_v28 = vpop.permute.xlu0 %1046 }
 0x1fc   :  { %1217 = vmatmul.mubr.f32.gmra.mrb[30].mxu1 %v1074_v40  ;;  %v1081_v46 = vsel %vm1066_vm6, %v6791_v54, %v1047_v28  ;;  %v1415_v54 = vld [vmem:[#allocation5 + $0x1e8] sm:$0xff]  ;;  %v1421_v40 = vld [vmem:[#allocation5 + $0x218] sm:$0xff]  ;;  %v6929_v28 = vld [vmem:[#allocation5 + $0x240] sm:$0xff] }
 0x1fd   :  { %4779 = vmatprep.mubr.msk.f32.mxu1 %vm1066_vm6, %v6745_v0  ;;  %5295 = vmatpush1.bf16.msra.mxu1 %v5294_v48  ;;  %v5302_v0 = vpack.c.bf16 %v1392_v24, %v1390_v57  ;;  %v1417_v48 = vld [vmem:[#allocation5 + $0x1f8] sm:$0xff]  ;;  %v1418_v24 = vld [vmem:[#allocation5 + $0x200] sm:$0xff] }
 0x1fe   :  { %5297 = vmatprep.subr.bf16.mxu1 %v5296_v35  ;;  %v1049_v33 = vpop.permute.xlu1 %1048  ;;  %v1414_v35 = vld [vmem:[#allocation5 + $0x1e0] sm:$0xff]  ;;  %v5324_v36 = vpack.c.bf16 %v1417_v48, %v1415_v54 }
 0x200   :  { %1222 = vmatmul.mubr.f32.gmra.mrb[32].mxu1 %v1075_v12  ;;  %v1420_v12 = vld [vmem:[#allocation5 + $0x210] sm:$0xff] }
 0x201   :  { %4780 = vmatprep.mubr.msk.f32.mxu1 %vm1066_vm6, %v6748_v23  ;;  %5299 = vmatpush1.bf16.msra.mxu1 %v5298_v31  ;;  %v5308_v23 = vpack.c.bf16 %v1401_v9, %v1399_v62  ;;  %v5330_v38 = vpack.c.bf16 %v1420_v12, %v1418_v24 }
 0x202   :  { %5301 = vmatprep.subr.bf16.mxu1 %v5300_v55 }
 0x204   :  { %1227 = vmatmul.mubr.f32.gmra.mrb[34].mxu1 %v1076_v53  ;;  %v6886_v53 = vld [vmem:[#allocation5 + $0x230] sm:$0xff] }
 0x205   :  { %4781 = vmatprep.mubr.msk.f32.mxu1 %vm1066_vm6, %v6758_v16  ;;  %5303 = vmatpush1.bf16.msra.mxu1 %v5302_v0  ;;  %v5312_v16 = vpack.c.bf16 %v1405_v18, %v1403_v17  ;;  %v1423_v0 = vld [vmem:[#allocation5 + $0x228] sm:$0xff]  ;;  %v5334_v6 = vpack.c.bf16 %v6886_v53, %v6884_v61 }
 0x206   :  { %5305 = vmatprep.subr.bf16.mxu1 %v5304_v60  ;;  %v1425_v60 = vld [vmem:[#allocation5 + $0x238] sm:$0xff] }
 0x207   :  { %v5332_v11 = vpack.c.bf16 %v1425_v60, %v1423_v0  ;;  %v2080_v0 = vld [vmem:[%s8980_s10 + $0x60] sm:$0xff]  ;;  %v2082_v60 = vld [vmem:[%s8980_s10 + $0x70] sm:$0xff] }
 0x208   :  { %1232 = vmatmul.mubr.f32.gmra.mrb[36].mxu1 %v1077_v15  ;;  %v2068_v15 = vld [vmem:[%s8980_s10] sm:$0xff] }
 0x209   :  { %4782 = vmatprep.mubr.msk.f32.mxu1 %vm1066_vm6, %v6768_v3  ;;  %5307 = vmatpush1.bf16.msra.mxu1 %v5306_v52  ;;  %v5316_v3 = vpack.c.bf16 %v1409_v21, %v1407_v20  ;;  %v6889_v52 = vld [vmem:[#allocation5 + $0x248] sm:$0xff] }
 0x20a   :  { %5309 = vmatprep.subr.bf16.mxu1 %v5308_v23  ;;  %v6891_v23 = vld [vmem:[#allocation5 + $0x258] sm:$0xff] }
 0x20b   :  { %v5336_v30 = vpack.c.bf16 %v6891_v23, %v6889_v52 }
 0x20c   :  { %1237 = vmatmul.mubr.f32.gmra.mrb[38].mxu1 %v1078_v19 }
 0x20d   :  { %4783 = vmatprep.mubr.msk.f32.mxu1 %vm1066_vm6, %v6774_v37  ;;  %5311 = vmatpush1.bf16.msra.mxu1 %v5310_v1  ;;  %v1080_v37 = vsel %vm1066_vm6, %v6783_v43, %v1045_v47  ;;  %v1082_v43 = vsel %vm1066_vm6, %v6794_v56, %v1049_v33  ;;  %v5328_v56 = vpack.c.bf16 %v1421_v40, %v1419_v39  ;;  %v2079_v47 = vld [vmem:[%s8980_s10 + $0x58] sm:$0xff]  ;;  %v2081_v40 = vld [vmem:[%s8980_s10 + $0x68] sm:$0xff] }
 0x20e   :  { %5313 = vmatprep.subr.bf16.mxu1 %v5312_v16  ;;  %v5360_v1 = vpack.c.bf16 %v2071_v8, %v2069_v13  ;;  %v2070_v16 = vld [vmem:[%s8980_s10 + $0x10] sm:$0xff]  ;;  %v2085_v8 = vld [vmem:[%s8980_s10 + $0x88] sm:$0xff] }
 0x20f   :  { %v5362_v22 = vpack.c.bf16 %v2070_v16, %v2068_v15  ;;  %v2087_v15 = vld [vmem:[%s8980_s10 + $0x98] sm:$0xff] }
 0x210   :  { %1242 = vmatmul.mubr.f32.gmra.mrb[40].mxu1 %v1079_v10  ;;  %5361 = vmatprep.subr.bf16.mxu0 %v5360_v1  ;;  %v2077_v10 = vld [vmem:[%s8980_s10 + $0x48] sm:$0xff]  ;;  %v5374_v1 = vpack.c.bf16 %v2082_v60, %v2080_v0 }
 0x211   :  { %4784 = vmatprep.mubr.msk.f32.mxu1 %vm1066_vm6, %v6780_v5  ;;  %5315 = vmatpush1.bf16.msra.mxu1 %v5314_v26  ;;  %v1017_v5 = vsel %vm205_vm3, %v1012_v4, 0.0  ;;  %v5326_v4 = vpack.c.bf16 %v1416_v7, %v1414_v35  ;;  %v2072_v26 = vld [vmem:[%s8980_s10 + $0x20] sm:$0xff]  ;;  %v1431_v35 = vld [vmem:[#allocation5 + $0x268] sm:$0xff]  ;;  %v5368_v7 = vpack.c.bf16 %v2079_v47, %v2077_v10  ;;  %v1441_v47 = vld [vmem:[#allocation5 + $0x2b8] sm:$0xff] }
 0x212   :  { %5317 = vmatprep.subr.bf16.mxu1 %v5316_v3  ;;  %v2074_v3 = vld [vmem:[%s8980_s10 + $0x30] sm:$0xff]  ;;  %5363 = vmatpush1.bf16.msra.mxu0 %v5362_v22  ;;  %v2084_v22 = vld [vmem:[%s8980_s10 + $0x80] sm:$0xff]  ;;  %v1439_v10 = vld [vmem:[#allocation5 + $0x2a8] sm:$0xff] }
 0x213   :  { %v5366_v33 = vpack.c.bf16 %v2074_v3, %v2072_v26  ;;  %5365 = vmatprep.subr.bf16.mxu0 %v5364_v25  ;;  %v2086_v26 = vld [vmem:[%s8980_s10 + $0x90] sm:$0xff] }
 0x214   :  { %1247 = vmatmul.mubr.f32.gmra.mrb[42].mxu1 %v1080_v37 }
 0x215   :  { %4785 = vmatprep.mubr.msk.f32.mxu1 %vm1066_vm6, %v6788_v50  ;;  %5319 = vmatpush1.bf16.msra.mxu1 %v5318_v34  ;;  %v5320_v50 = vpack.c.bf16 %v1413_v49, %v1411_v29 }
 0x216   :  { %5367 = vmatpush1.bf16.msra.mxu0 %v5366_v33  ;;  %v2091_v33 = vld [vmem:[%s8980_s10 + $0xb8] sm:$0xff] }
 0x217   :  { %5321 = vmatprep.subr.bf16.mxu1 %v5320_v50  ;;  %v2076_v50 = vld [vmem:[%s8980_s10 + $0x40] sm:$0xff]  ;;  %5369 = vmatprep.subr.bf16.mxu0 %v5368_v7 }
 0x218   :  { %1252 = vmatmul.mubr.f32.gmra.mrb[44].mxu1 %v1081_v46  ;;  %v6931_v46 = vld [vmem:[#allocation5 + $0x250] sm:$0xff] }
 0x219   :  { %4786 = vmatprep.mubr.msk.f32.mxu1 %vm1066_vm6, %v1017_v5  ;;  %5323 = vmatpush1.bf16.msra.mxu1 %v5322_v51 }
 0x21a   :  { %5325 = vmatprep.subr.bf16.mxu1 %v5324_v36  ;;  %v1433_v36 = vld [vmem:[#allocation5 + $0x278] sm:$0xff] }
 0x21c   :  { %1257 = vmatmul.mubr.f32.gmra.mrb[46].mxu1 %v1082_v43 }
 0x21d   :  { %5327 = vmatpush1.bf16.msra.mxu1 %v5326_v4 }
 0x21e   :  { %5329 = vmatprep.subr.bf16.mxu1 %v5328_v56  ;;  %v2083_v56 = vld [vmem:[%s8980_s10 + $0x78] sm:$0xff] }
 0x21f   :  { %v5372_v52 = vpack.c.bf16 %v2083_v56, %v2081_v40  ;;  %v1443_v56 = vld [vmem:[#allocation5 + $0x2c8] sm:$0xff] }
 0x2b3   :  { %v1183_v44 = vpop.f32.mrb[16].mxu1 }
 0x2b4   :  { %v1268_v31 = vmul.f32 %v6869_v14, %v1183_v44  ;;  %v1185_v42 = vpop.f32.mrb[17].mxu1 }
 0x2b5   :  { %v6953_v42 = vld [vmem:[#allocation5 + $0x260] sm:$0xff] }
 0x2b6   :  { %v1290_v55 = vadd.f32 %v6874_v41, %v1268_v31 }
 0x2b7   :  { %v1188_v57 = vpop.f32.mrb[18].mxu1 }
 0x2b8   :  { %v1269_v63 = vmul.f32 %v6869_v14, %v1188_v57  ;;  %v1190_v58 = vpop.f32.mrb[19].mxu1  ;;  %vm1306_vm8 = vcmp.gt.f32.partialorder %v1290_v55, 0.0  ;;  %v1322_v59 = vmul.f32 0.01, %v1290_v55 }
 0x2b9   :  { %v5340_v58 = vpack.c.bf16 %v1433_v36, %v1431_v35  ;;  %v2088_v35 = vld [vmem:[%s8980_s10 + $0xa0] sm:$0xff]  ;;  %v2090_v36 = vld [vmem:[%s8980_s10 + $0xb0] sm:$0xff] }
 0x2ba   :  { %v1291_v62 = vadd.f32 %v6874_v41, %v1269_v63  ;;  %v1338_v9 = vsel %vm1306_vm8, %v1290_v55, %v1322_v59  ;;  %v5370_v55 = vpack.c.bf16 %v2078_v32, %v2076_v50  ;;  %v5338_v63 = vpack.c.bf16 %v6931_v46, %v6929_v28  ;;  %v1432_v59 = vld [vmem:[#allocation5 + $0x270] sm:$0xff]  ;;  %v2089_v46 = vld [vmem:[%s8980_s10 + $0xa8] sm:$0xff] }
 0x2bb   :  { %v1193_v17 = vpop.f32.mrb[20].mxu1  ;;  %v1468_v18 = vrot.slane %v1338_v9, 7  ;;  %1628 = vmatprep.mubr.f32.mxu1 %v1338_v9  ;;  %v1516_v5 = vrot.slane %v1338_v9, 1  ;;  %v1435_v9 = vld [vmem:[#allocation5 + $0x288] sm:$0xff] }
 0x2bc   :  { %v1270_v19 = vmul.f32 %v6869_v14, %v1193_v17  ;;  %v1195_v20 = vpop.f32.mrb[21].mxu1  ;;  %vm1307_vm10 = vcmp.gt.f32.partialorder %v1291_v62, 0.0  ;;  %v1323_v21 = vmul.f32 0.01, %v1291_v62  ;;  %5371 = vmatpush1.bf16.msra.mxu0 %v5370_v55 }
 0x2bd   :  { %4790 = vmatmul.mubr.msk.f32.vlgmr.msra.gmra.mrb[48].mxu1 %vm6880_vm9, %v1468_v18  ;;  %5373 = vmatprep.subr.bf16.mxu0 %v5372_v52  ;;  %v2094_v52 = vld [vmem:[%s8980_s10 + $0xd0] sm:$0xff] }
 0x2be   :  { %v1292_v34 = vadd.f32 %v6874_v41, %v1270_v19  ;;  %5331 = vmatpush1.bf16.msra.mxu1 %v5330_v38  ;;  %v1339_v37 = vsel %vm1307_vm10, %v1291_v62, %v1323_v21  ;;  %v1437_v38 = vld [vmem:[#allocation5 + $0x298] sm:$0xff]  ;;  %v5342_v19 = vpack.c.bf16 %v1432_v59, %v6953_v42  ;;  %v1436_v21 = vld [vmem:[#allocation5 + $0x290] sm:$0xff]  ;;  %v5382_v59 = vpack.c.bf16 %v2090_v36, %v2088_v35 }
 0x2bf   :  { %v1198_v43 = vpop.f32.mrb[22].mxu1  ;;  %v1469_v29 = vrot.slane %v1339_v37, 7  ;;  %v1517_v49 = vrot.slane %v1339_v37, 1  ;;  %1634 = vmatprep.mubr.f32.mxu1 %v1339_v37  ;;  %5333 = vmatprep.subr.bf16.mxu1 %v5332_v11  ;;  %v6975_v11 = vld [vmem:[#allocation5 + $0x280] sm:$0xff]  ;;  %v5344_v20 = vpack.c.bf16 %v1437_v38, %v1435_v9  ;;  %v1444_v9 = vld [vmem:[#allocation5 + $0x2d0] sm:$0xff] }
 0x2c0   :  { %v1271_v51 = vmul.f32 %v6869_v14, %v1198_v43  ;;  %v1200_v54 = vpop.f32.mrb[23].mxu1  ;;  %vm1308_vm11 = vcmp.gt.f32.partialorder %v1292_v34, 0.0  ;;  %v1324_v48 = vmul.f32 0.01, %v1292_v34  ;;  %5375 = vmatpush1.bf16.msra.mxu0 %v5374_v1  ;;  %v2092_v38 = vld [vmem:[%s8980_s10 + $0xc0] sm:$0xff] }
 0x2c1   :  { %v1470_v4 = vsel %vm170_vm1, %v1468_v18, %v1469_v29  ;;  %v6944_v39 = vsel %vm205_vm3, %v1516_v5, %v1517_v49  ;;  %v5348_v54 = vpack.c.bf16 %v1441_v47, %v1439_v10  ;;  %v2096_v10 = vld [vmem:[%s8980_s10 + $0xe0] sm:$0xff]  ;;  %v2098_v47 = vld [vmem:[%s8980_s10 + $0xf0] sm:$0xff] }
 0x2c2   :  { %v1293_v44 = vadd.f32 %v6874_v41, %v1271_v51  ;;  %1635 = vmatmul.mubr.f32.gmra.mrb[50].mxu1 %v1470_v4  ;;  %v1340_v31 = vsel %vm1308_vm11, %v1292_v34, %v1324_v48  ;;  %v5376_v34 = vpack.c.bf16 %v2087_v15, %v2085_v8  ;;  %v5346_v51 = vpack.c.bf16 %v1436_v21, %v6975_v11  ;;  %v1440_v48 = vld [vmem:[#allocation5 + $0x2b0] sm:$0xff] }
 0x2c3   :  { %v1203_v57 = vpop.f32.mrb[24].mxu1  ;;  %v1471_v24 = vrot.slane %v1340_v31, 7  ;;  %v1519_v12 = vrot.slane %v1340_v31, 1  ;;  %1640 = vmatprep.mubr.f32.mxu1 %v1340_v31  ;;  %5335 = vmatpush1.bf16.msra.mxu1 %v5334_v6  ;;  %v5380_v31 = vpack.c.bf16 %v2091_v33, %v2089_v46  ;;  %v5386_v21 = vpack.c.bf16 %v2094_v52, %v2092_v38  ;;  %v1446_v33 = vld [vmem:[#allocation5 + $0x2e0] sm:$0xff] }
 0x2c4   :  { %v1272_v61 = vmul.f32 %v6869_v14, %v1203_v57  ;;  %v1205_v53 = vpop.f32.mrb[25].mxu1  ;;  %vm1309_vm12 = vcmp.gt.f32.partialorder %v1293_v44, 0.0  ;;  %v1325_v62 = vmul.f32 0.01, %v1293_v44  ;;  %5337 = vmatprep.subr.bf16.mxu1 %v5336_v30  ;;  %5377 = vmatprep.subr.bf16.mxu0 %v5376_v34  ;;  %v2093_v57 = vld [vmem:[%s8980_s10 + $0xc8] sm:$0xff] }
 0x2c5   :  { %v1472_v23 = vsel %vm170_vm1, %v1469_v29, %v1471_v24  ;;  %v6966_v13 = vsel %vm205_vm3, %v1517_v49, %v1519_v12  ;;  %v6996_v29 = vld [vmem:[#allocation5 + $0x2a0] sm:$0xff]  ;;  %v5378_v49 = vpack.c.bf16 %v2086_v26, %v2084_v22 }
 0x2c6   :  { %v1294_v17 = vadd.f32 %v6874_v41, %v1272_v61  ;;  %1641 = vmatmul.mubr.f32.gmra.mrb[52].mxu1 %v1472_v23  ;;  %v1341_v18 = vsel %vm1309_vm12, %v1293_v44, %v1325_v62  ;;  %v1445_v44 = vld [vmem:[#allocation5 + $0x2d8] sm:$0xff]  ;;  %v5350_v53 = vpack.c.bf16 %v1440_v48, %v6996_v29 }
 0x2c7   :  { %v1208_v16 = vpop.f32.mrb[26].mxu1  ;;  %v1473_v27 = vrot.slane %v1341_v18, 7  ;;  %v1521_v2 = vrot.slane %v1341_v18, 1  ;;  %1646 = vmatprep.mubr.f32.mxu1 %v1341_v18  ;;  %5339 = vmatpush1.bf16.msra.mxu1 %v5338_v63  ;;  %v5352_v62 = vpack.c.bf16 %v1445_v44, %v1443_v56  ;;  %v1449_v18 = vld [vmem:[#allocation5 + $0x2f8] sm:$0xff] }
 0x2c8   :  { %v1273_v3 = vmul.f32 %v6869_v14, %v1208_v16  ;;  %v1210_v6 = vpop.f32.mrb[27].mxu1  ;;  %vm1310_vm13 = vcmp.gt.f32.partialorder %v1294_v17, 0.0  ;;  %v1326_v25 = vmul.f32 0.01, %v1294_v17  ;;  %5341 = vmatprep.subr.bf16.mxu1 %v5340_v58  ;;  %v1442_v58 = vld [vmem:[#allocation5 + $0x2c0] sm:$0xff]  ;;  %5379 = vmatpush1.bf16.msra.mxu0 %v5378_v49 }
 0x2c9   :  { %v1474_v37 = vsel %vm170_vm1, %v1471_v24, %v1473_v27  ;;  %v6987_v28 = vsel %vm205_vm3, %v1519_v12, %v1521_v2  ;;  %v2095_v24 = vld [vmem:[%s8980_s10 + $0xd8] sm:$0xff]  ;;  %5381 = vmatprep.subr.bf16.mxu0 %v5380_v31  ;;  %v5354_v6 = vpack.c.bf16 %v1444_v9, %v1442_v58  ;;  %v2106_v9 = vld [vmem:[%s8980_s10 + $0x130] sm:$0xff] }
 0x2ca   :  { %v1295_v5 = vadd.f32 %v6874_v41, %v1273_v3  ;;  %1647 = vmatmul.mubr.f32.gmra.mrb[54].mxu1 %v1474_v37  ;;  %v1342_v43 = vsel %vm1310_vm13, %v1294_v17, %v1326_v25  ;;  %v1447_v17 = vld [vmem:[#allocation5 + $0x2e8] sm:$0xff]  ;;  %v5384_v11 = vpack.c.bf16 %v2095_v24, %v2093_v57  ;;  %v2105_v57 = vld [vmem:[%s8980_s10 + $0x128] sm:$0xff] }
 0x2cb   :  { %v1213_v30 = vpop.f32.mrb[28].mxu1  ;;  %v1475_v50 = vrot.slane %v1342_v43, 7  ;;  %v1523_v32 = vrot.slane %v1342_v43, 1  ;;  %1652 = vmatprep.mubr.f32.mxu1 %v1342_v43  ;;  %5343 = vmatpush1.bf16.msra.mxu1 %v5342_v19  ;;  %v5356_v25 = vpack.c.bf16 %v1449_v18, %v1447_v17  ;;  %v2107_v24 = vld [vmem:[%s8980_s10 + $0x138] sm:$0xff] }
 0x2cc   :  { %v1274_v7 = vmul.f32 %v6869_v14, %v1213_v30  ;;  %v1215_v4 = vpop.f32.mrb[29].mxu1  ;;  %vm1311_vm14 = vcmp.gt.f32.partialorder %v1295_v5, 0.0  ;;  %v1327_v40 = vmul.f32 0.01, %v1295_v5  ;;  %5345 = vmatprep.subr.bf16.mxu1 %v5344_v20  ;;  %5383 = vmatpush1.bf16.msra.mxu0 %v5382_v59  ;;  %v2101_v30 = vld [vmem:[%s8980_s10 + $0x108] sm:$0xff] }
 0x2cd   :  { %v1476_v42 = vsel %vm170_vm1, %v1473_v27, %v1475_v50  ;;  %v7008_v55 = vsel %vm205_vm3, %v1521_v2, %v1523_v32  ;;  %v2097_v27 = vld [vmem:[%s8980_s10 + $0xe8] sm:$0xff]  ;;  %v2099_v2 = vld [vmem:[%s8980_s10 + $0xf8] sm:$0xff]  ;;  %5385 = vmatprep.subr.bf16.mxu0 %v5384_v11  ;;  %v2100_v4 = vld [vmem:[%s8980_s10 + $0x100] sm:$0xff] }
 0x2ce   :  { %v1296_v12 = vadd.f32 %v6874_v41, %v1274_v7  ;;  %1653 = vmatmul.mubr.f32.gmra.mrb[56].mxu1 %v1476_v42  ;;  %v1343_v63 = vsel %vm1311_vm14, %v1295_v5, %v1327_v40  ;;  %v1448_v5 = vld [vmem:[#allocation5 + $0x2f0] sm:$0xff]  ;;  %v5388_v43 = vpack.c.bf16 %v2099_v2, %v2097_v27  ;;  %v2102_v40 = vld [vmem:[%s8980_s10 + $0x110] sm:$0xff] }
 0x2cf   :  { %v1218_v0 = vpop.f32.mrb[30].mxu1  ;;  %v1477_v60 = vrot.slane %v1343_v63, 7  ;;  %v1525_v61 = vrot.slane %v1343_v63, 1  ;;  %1658 = vmatprep.mubr.f32.mxu1 %v1343_v63  ;;  %5347 = vmatpush1.bf16.msra.mxu1 %v5346_v51  ;;  %v5358_v7 = vpack.c.bf16 %v1448_v5, %v1446_v33 }
 0x2d0   :  { %v1275_v23 = vmul.f32 %v6869_v14, %v1218_v0  ;;  %v1220_v8 = vpop.f32.mrb[31].mxu1  ;;  %vm1312_vm15 = vcmp.gt.f32.partialorder %v1296_v12, 0.0  ;;  %v1328_v15 = vmul.f32 0.01, %v1296_v12  ;;  %5349 = vmatprep.subr.bf16.mxu1 %v5348_v54  ;;  %5387 = vmatpush1.bf16.msra.mxu0 %v5386_v21  ;;  %v5390_v54 = vpack.c.bf16 %v2098_v47, %v2096_v10  ;;  %v2108_v21 = vld [vmem:[%s8980_s10 + $0x140] sm:$0xff]  ;;  %v2115_v10 = vld [vmem:[%s8980_s10 + $0x178] sm:$0xff] }
 0x2d1   :  { %v1478_v1 = vsel %vm170_vm1, %v1475_v50, %v1477_v60  ;;  %v7027_v16 = vsel %vm205_vm3, %v1523_v32, %v1525_v61  ;;  %v2103_v50 = vld [vmem:[%s8980_s10 + $0x118] sm:$0xff]  ;;  %5389 = vmatprep.subr.bf16.mxu0 %v5388_v43  ;;  %v5394_v0 = vpack.c.bf16 %v2102_v40, %v2100_v4  ;;  %v2109_v8 = vld [vmem:[%s8980_s10 + $0x148] sm:$0xff] }
 0x2d2   :  { %v1297_v19 = vadd.f32 %v6874_v41, %v1275_v23  ;;  %1659 = vmatmul.mubr.f32.gmra.mrb[58].mxu1 %v1478_v1  ;;  %v1344_v20 = vsel %vm1312_vm15, %v1296_v12, %v1328_v15  ;;  %v5392_v42 = vpack.c.bf16 %v2103_v50, %v2101_v30  ;;  %v2111_v15 = vld [vmem:[%s8980_s10 + $0x158] sm:$0xff]  ;;  %v2112_v50 = vld [vmem:[%s8980_s10 + $0x160] sm:$0xff] }
 0x2d3   :  { %v1223_v22 = vpop.f32.mrb[32].mxu1  ;;  %v1479_v26 = vrot.slane %v1344_v20, 7  ;;  %v1527_v3 = vrot.slane %v1344_v20, 1  ;;  %1664 = vmatprep.mubr.f32.mxu1 %v1344_v20  ;;  %5351 = vmatpush1.bf16.msra.mxu1 %v5350_v53  ;;  %v5396_v53 = vpack.c.bf16 %v2107_v24, %v2105_v57  ;;  %v5400_v20 = vpack.c.bf16 %v2111_v15, %v2109_v8  ;;  %v2119_v4 = vld [vmem:[%s8980_s10 + $0x198] sm:$0xff] }
 0x2d4   :  { %v1276_v34 = vmul.f32 %v6869_v14, %v1223_v22  ;;  %v1225_v37 = vpop.f32.mrb[33].mxu1  ;;  %vm1313_vm0 = vcmp.gt.f32.partialorder %v1297_v19, 0.0  ;;  %v1329_v46 = vmul.f32 0.01, %v1297_v19  ;;  %5353 = vmatprep.subr.bf16.mxu1 %v5352_v62  ;;  %5391 = vmatpush1.bf16.msra.mxu0 %v5390_v54  ;;  %v2104_v62 = vld [vmem:[%s8980_s10 + $0x120] sm:$0xff]  ;;  %v2110_v22 = vld [vmem:[%s8980_s10 + $0x150] sm:$0xff] }
 0x2d5   :  { %v1480_v29 = vsel %vm170_vm1, %v1477_v60, %v1479_v26  ;;  %v7045_v49 = vsel %vm205_vm3, %v1525_v61, %v1527_v3  ;;  %5393 = vmatprep.subr.bf16.mxu0 %v5392_v42  ;;  %v5398_v11 = vpack.c.bf16 %v2106_v9, %v2104_v62  ;;  %v5402_v33 = vpack.c.bf16 %v2110_v22, %v2108_v21 }
 0x2d6   :  { %v1298_v32 = vadd.f32 %v6874_v41, %v1276_v34  ;;  %1665 = vmatmul.mubr.f32.gmra.mrb[60].mxu1 %v1480_v29  ;;  %v7054_v51 = vsel %vm1313_vm0, %v1297_v19, %v1329_v46 }
 0x2d7   :  { %v1228_v48 = vpop.f32.mrb[34].mxu1  ;;  %v1481_v35 = vrot.slane %v7054_v51, 7  ;;  %v1529_v36 = vrot.slane %v7054_v51, 1  ;;  %1670 = vmatprep.mubr.f32.mxu1 %v7054_v51  ;;  %5355 = vmatpush1.bf16.msra.mxu1 %v5354_v6  ;;  %v2125_v51 = vld [vmem:[%s8980_s10 + $0x1c8] sm:$0xff] }
 0x2d8   :  { %v1277_v56 = vmul.f32 %v6869_v14, %v1228_v48  ;;  %v1230_v44 = vpop.f32.mrb[35].mxu1  ;;  %vm1314_vm2 = vcmp.gt.f32.partialorder %v1298_v32, 0.0  ;;  %v1330_v31 = vmul.f32 0.01, %v1298_v32  ;;  %5357 = vmatprep.subr.bf16.mxu1 %v5356_v25  ;;  %5395 = vmatpush1.bf16.msra.mxu0 %v5394_v0  ;;  %v2113_v25 = vld [vmem:[%s8980_s10 + $0x168] sm:$0xff]  ;;  %v2118_v0 = vld [vmem:[%s8980_s10 + $0x190] sm:$0xff] }
 0x2d9   :  { %v1482_v12 = vsel %vm170_vm1, %v1479_v26, %v1481_v35  ;;  %v7076_v63 = vsel %vm205_vm3, %v1527_v3, %v1529_v36  ;;  %5397 = vmatprep.subr.bf16.mxu0 %v5396_v53  ;;  %v5404_v30 = vpack.c.bf16 %v2115_v10, %v2113_v25 }
 0x2da   :  { %v1299_v58 = vadd.f32 %v6874_v41, %v1277_v56  ;;  %1671 = vmatmul.mubr.f32.gmra.mrb[62].mxu1 %v1482_v12  ;;  %v1346_v59 = vsel %vm1314_vm2, %v1298_v32, %v1330_v31  ;;  %v2114_v32 = vld [vmem:[%s8980_s10 + $0x170] sm:$0xff] }
 0x2db   :  { %v1233_v60 = vpop.f32.mrb[36].mxu1  ;;  %v1483_v61 = vrot.slane %v1346_v59, 7  ;;  %1676 = vmatprep.mubr.f32.mxu1 %v1346_v59  ;;  %5359 = vmatpush1.bf16.msra.mxu1 %v5358_v7  ;;  %v1531_v1 = vrot.slane %v1346_v59, 1  ;;  %v2117_v7 = vld [vmem:[%s8980_s10 + $0x188] sm:$0xff]  ;;  %v5406_v42 = vpack.c.bf16 %v2114_v32, %v2112_v50  ;;  %v2116_v59 = vld [vmem:[%s8980_s10 + $0x180] sm:$0xff] }
 0x2dc   :  { %v1278_v38 = vmul.f32 %v6869_v14, %v1233_v60  ;;  %v1235_v52 = vpop.f32.mrb[37].mxu1  ;;  %vm1315_vm4 = vcmp.gt.f32.partialorder %v1299_v58, 0.0  ;;  %v1331_v23 = vmul.f32 0.01, %v1299_v58  ;;  %5399 = vmatpush1.bf16.msra.mxu0 %v5398_v11 }
 0x2dd   :  { %5401 = vmatprep.subr.bf16.mxu0 %v5400_v20 }
 0x2de   :  { %v1300_v17 = vadd.f32 %v6874_v41, %v1278_v38  ;;  %4792 = vmatmul.mubr.msk.f32.gmra.mrb[64].mxu1 %vm6880_vm9, %v1483_v61  ;;  %v1347_v18 = vsel %vm1315_vm4, %v1299_v58, %v1331_v23  ;;  %v5408_v58 = vpack.c.bf16 %v2119_v4, %v2117_v7  ;;  %v5410_v23 = vpack.c.bf16 %v2118_v0, %v2116_v59  ;;  %v2129_v4 = vld [vmem:[%s8980_s10 + $0x1e8] sm:$0xff] }
 0x2df   :  { %v1238_v27 = vpop.f32.mrb[38].mxu1  ;;  %v1484_v2 = vrot.slane %v1347_v18, 7  ;;  %v1532_v19 = vrot.slane %v1347_v18, 1  ;;  %1682 = vmatprep.mubr.f32.mxu1 %v1347_v18 }
 0x2e0   :  { %v1279_v26 = vmul.f32 %v6869_v14, %v1238_v27  ;;  %v1240_v3 = vpop.f32.mrb[39].mxu1  ;;  %vm1316_vm5 = vcmp.gt.f32.partialorder %v1300_v17, 0.0  ;;  %v1332_v6 = vmul.f32 0.01, %v1300_v17  ;;  %5403 = vmatpush1.bf16.msra.mxu0 %v5402_v33 }
 0x2e1   :  { %v1485_v47 = vsel %vm170_vm1, %v1483_v61, %v1484_v2  ;;  %v7110_v34 = vsel %vm205_vm3, %v1531_v1, %v1532_v19  ;;  %5405 = vmatprep.subr.bf16.mxu0 %v5404_v30 }
 0x2e2   :  { %v1301_v37 = vadd.f32 %v6874_v41, %v1279_v26  ;;  %1683 = vmatmul.mubr.f32.gmra.mrb[66].mxu1 %v1485_v47  ;;  %v1348_v46 = vsel %vm1316_vm5, %v1300_v17, %v1332_v6 }
 0x2e3   :  { %v1243_v5 = vpop.f32.mrb[40].mxu1  ;;  %v1486_v43 = vrot.slane %v1348_v46, 7  ;;  %v1534_v29 = vrot.slane %v1348_v46, 1  ;;  %1688 = vmatprep.mubr.f32.mxu1 %v1348_v46 }
 0x2e4   :  { %v1280_v54 = vmul.f32 %v6869_v14, %v1243_v5  ;;  %v1245_v48 = vpop.f32.mrb[41].mxu1  ;;  %vm1317_vm7 = vcmp.gt.f32.partialorder %v1301_v37, 0.0  ;;  %v1333_v35 = vmul.f32 0.01, %v1301_v37  ;;  %5407 = vmatpush1.bf16.msra.mxu0 %v5406_v42 }
 0x2e5   :  { %v1487_v40 = vsel %vm170_vm1, %v1484_v2, %v1486_v43  ;;  %v7128_v56 = vsel %vm205_vm3, %v1532_v19, %v1534_v29  ;;  %5409 = vmatprep.subr.bf16.mxu0 %v5408_v58  ;;  %v9001_v48 = vmov 0.0   ;;  %v1887_v58 = vlaneseq }
 0x2e6   :  { %v1302_v44 = vadd.f32 %v6874_v41, %v1280_v54  ;;  %1689 = vmatmul.mubr.f32.gmra.mrb[68].mxu1 %v1487_v40  ;;  %v1349_v31 = vsel %vm1317_vm7, %v1301_v37, %v1333_v35  ;;  %v2126_v35 = vld [vmem:[%s8980_s10 + $0x1d0] sm:$0xff]  ;;  %v2131_v40 = vld [vmem:[%s8980_s10 + $0x1f8] sm:$0xff] }
 0x2e7   :  { %v1248_v57 = vpop.f32.mrb[42].mxu1  ;;  %v1488_v24 = vrot.slane %v1349_v31, 7  ;;  %v1536_v12 = vrot.slane %v1349_v31, 1  ;;  %1694 = vmatprep.mubr.f32.mxu1 %v1349_v31  ;;  %v2130_v31 = vld [vmem:[%s8980_s10 + $0x1f0] sm:$0xff]  ;;  %v7227_v59 = vshrl.u32 %v1887_v58, 7 }
 0x2e8   :  { %v1281_v60 = vmul.f32 %v6869_v14, %v1248_v57  ;;  %v1250_v61 = vpop.f32.mrb[43].mxu1  ;;  %vm1318_vm8 = vcmp.gt.f32.partialorder %v1302_v44, 0.0  ;;  %v1334_v53 = vmul.f32 0.01, %v1302_v44  ;;  %5411 = vmatpush1.bf16.msra.mxu0 %v5410_v23  ;;  %v2133_v57 = vld [vmem:[%s8980_s10 + $0x208] sm:$0xff]  ;;  %v2142_v58 = vld [vmem:[%s8980_s10 + $0x250] sm:$0xff] }
 0x2e9   :  { %v1489_v62 = vsel %vm170_vm1, %v1486_v43, %v1488_v24  ;;  %v7140_v9 = vsel %vm205_vm3, %v1534_v29, %v1536_v12  ;;  %v7230_v0 = vsub.s32 0, %v7227_v59  ;;  %v7236_v61 = vsub.s32 1, %v7227_v59 }
 0x2ea   :  { %v1303_v38 = vadd.f32 %v6874_v41, %v1281_v60  ;;  %1695 = vmatmul.mubr.f32.gmra.mrb[70].mxu1 %v1489_v62  ;;  %v1350_v52 = vsel %vm1318_vm8, %v1302_v44, %v1334_v53  ;;  %v2128_v44 = vld [vmem:[%s8980_s10 + $0x1e0] sm:$0xff] }
 0x2eb   :  { %v1253_v8 = vpop.f32.mrb[44].mxu1  ;;  %v1490_v15 = vrot.slane %v1350_v52, 7  ;;  %v1538_v17 = vrot.slane %v1350_v52, 1  ;;  %1700 = vmatprep.mubr.f32.mxu1 %v1350_v52  ;;  %v5422_v42 = vpack.c.bf16 %v2130_v31, %v2128_v44  ;;  %v1450_v60 = vld [vmem:[%s9025_s28] sm:$0x3] }
 0x2ec   :  { %v1282_v18 = vmul.f32 %v6869_v14, %v1253_v8  ;;  %v1255_v11 = vpop.f32.mrb[45].mxu1  ;;  %vm1319_vm10 = vcmp.gt.f32.partialorder %v1303_v38, 0.0  ;;  %v1335_v1 = vmul.f32 0.01, %v1303_v38  ;;  %v1451_v53 = vld [vmem:[%s8979_s9] sm:$0x3]  ;;  %v7242_v62 = vrot.slane %v1450_v60, %v7230_v0 }
 0x2ed   :  { %v1491_v27 = vsel %vm170_vm1, %v1488_v24, %v1490_v15  ;;  %v1539_v2 = vsel %vm205_vm3, %v1536_v12, %v1538_v17  ;;  %v2135_v24 = vld [vmem:[%s8980_s10 + $0x218] sm:$0xff]  ;;  %v7251_v23 = vrot.slane %v1451_v53, %v7236_v61 }
 0x2ee   :  { %v1304_v19 = vadd.f32 %v6874_v41, %v1282_v18  ;;  %1701 = vmatmul.mubr.f32.gmra.mrb[72].mxu1 %v1491_v27  ;;  %v1351_v20 = vsel %vm1319_vm10, %v1303_v38, %v1335_v1  ;;  %v5424_v12 = vpack.c.bf16 %v2135_v24, %v2133_v57  ;;  %v7248_v38 = vrot.slane %v1451_v53, %v7230_v0  ;;  %v2132_v27 = vld [vmem:[%s8980_s10 + $0x200] sm:$0xff] }
 0x2ef   :  { %v1258_v21 = vpop.f32.mrb[46].mxu1  ;;  %v1492_v22 = vrot.slane %v1351_v20, 7  ;;  %v1540_v26 = vrot.slane %v1351_v20, 1  ;;  %1706 = vmatprep.mubr.f32.mxu1 %v1351_v20 }
 0x2f0   :  { %v1283_v3 = vmul.f32 %v6869_v14, %v1258_v21  ;;  %v1260_v6 = vpop.f32.mrb[47].mxu1  ;;  %vm1320_vm11 = vcmp.gt.f32.partialorder %v1304_v19, 0.0  ;;  %v1336_v25 = vmul.f32 0.01, %v1304_v19 }
 0x2f1   :  { %v1493_v10 = vsel %vm170_vm1, %v1490_v15, %v1492_v22  ;;  %v1541_v47 = vsel %vm205_vm3, %v1538_v17, %v1540_v26 }
 0x2f2   :  { %v1305_v37 = vadd.f32 %v6874_v41, %v1283_v3  ;;  %1707 = vmatmul.mubr.f32.gmra.mrb[74].mxu1 %v1493_v10  ;;  %v1352_v46 = vsel %vm1320_vm11, %v1304_v19, %v1336_v25 }
 0x2f3   :  { %v1494_v33 = vrot.slane %v1352_v46, 7  ;;  %v1542_v5 = vrot.slane %v1352_v46, 1  ;;  %1712 = vmatprep.mubr.f32.mxu1 %v1352_v46 }
 0x2f4   :  { %vm1321_vm12 = vcmp.gt.f32.partialorder %v1305_v37, 0.0  ;;  %v1337_v43 = vmul.f32 0.01, %v1305_v37 }
 0x2f5   :  { %v1495_v29 = vsel %vm170_vm1, %v1492_v22, %v1494_v33  ;;  %v1543_v14 = vsel %vm205_vm3, %v1540_v26, %v1542_v5  ;;  %v2137_v22 = vld [vmem:[%s8980_s10 + $0x228] sm:$0xff]  ;;  %v2139_v26 = vld [vmem:[%s8980_s10 + $0x238] sm:$0xff] }
 0x2f6   :  { %1713 = vmatmul.mubr.f32.gmra.mrb[76].mxu1 %v1495_v29  ;;  %v1353_v30 = vsel %vm1321_vm12, %v1305_v37, %v1337_v43 }
 0x2f7   :  { %v1496_v50 = vrot.slane %v1353_v30, 7  ;;  %v1544_v32 = vrot.slane %v1353_v30, 1  ;;  %1718 = vmatprep.mubr.f32.mxu1 %v1353_v30 }
 0x2f9   :  { %v1497_v54 = vsel %vm170_vm1, %v1494_v33, %v1496_v50  ;;  %v1545_v41 = vsel %vm205_vm3, %v1542_v5, %v1544_v32  ;;  %v5428_v5 = vpack.c.bf16 %v2139_v26, %v2137_v22 }
 0x2fa   :  { %1719 = vmatmul.mubr.f32.gmra.mrb[78].mxu1 %v1497_v54 }
 0x2fb   :  { %1789 = vmatprep.mubr.f32.mxu1 %v9001_v48 }
 0x2fe   :  { %1790 = vmatmul.mubr.f32.vlgmr.msra.gmra.mrb[48].mxu1 %v6944_v39  ;;  %v2121_v39 = vld [vmem:[%s8980_s10 + $0x1a8] sm:$0xff] }
 0x2ff   :  { %1795 = vmatprep.mubr.f32.mxu1 %v9001_v48 }
 0x302   :  { %1796 = vmatmul.mubr.f32.gmra.mrb[50].mxu1 %v6966_v13  ;;  %v2123_v13 = vld [vmem:[%s8980_s10 + $0x1b8] sm:$0xff] }
 0x303   :  { %1801 = vmatprep.mubr.f32.mxu1 %v9001_v48 }
 0x306   :  { %1802 = vmatmul.mubr.f32.gmra.mrb[52].mxu1 %v6987_v28  ;;  %v2120_v28 = vld [vmem:[%s8980_s10 + $0x1a0] sm:$0xff] }
 0x307   :  { %1807 = vmatprep.mubr.f32.mxu1 %v9001_v48 }
 0x30a   :  { %1808 = vmatmul.mubr.f32.gmra.mrb[54].mxu1 %v7008_v55  ;;  %v5412_v55 = vpack.c.bf16 %v2123_v13, %v2121_v39  ;;  %v2136_v13 = vld [vmem:[%s8980_s10 + $0x220] sm:$0xff] }
 0x30b   :  { %1813 = vmatprep.mubr.f32.mxu1 %v9001_v48 }
 0x30c   :  { %5413 = vmatprep.subr.bf16.mxu0 %v5412_v55 }
 0x30e   :  { %1814 = vmatmul.mubr.f32.gmra.mrb[56].mxu1 %v7027_v16  ;;  %v2122_v16 = vld [vmem:[%s8980_s10 + $0x1b0] sm:$0xff] }
 0x30f   :  { %1819 = vmatprep.mubr.f32.mxu1 %v9001_v48 }
 0x312   :  { %1820 = vmatmul.mubr.f32.gmra.mrb[58].mxu1 %v7045_v49  ;;  %v5414_v49 = vpack.c.bf16 %v2122_v16, %v2120_v28  ;;  %v2138_v28 = vld [vmem:[%s8980_s10 + $0x230] sm:$0xff] }
 0x313   :  { %1825 = vmatprep.mubr.f32.mxu1 %v9001_v48  ;;  %v5430_v44 = vpack.c.bf16 %v2138_v28, %v2136_v13 }
 0x314   :  { %5415 = vmatpush1.bf16.msra.mxu0 %v5414_v49 }
 0x316   :  { %1826 = vmatmul.mubr.f32.gmra.mrb[60].mxu1 %v7076_v63  ;;  %v2124_v63 = vld [vmem:[%s8980_s10 + $0x1c0] sm:$0xff] }
 0x317   :  { %1831 = vmatprep.mubr.f32.mxu1 %v9001_v48  ;;  %v5418_v7 = vpack.c.bf16 %v2126_v35, %v2124_v63  ;;  %v2143_v63 = vld [vmem:[%s8980_s10 + $0x258] sm:$0xff] }
 0x31a   :  { %4793 = vmatmul.mubr.msk.f32.gmra.mrb[62].mxu1 %vm205_vm3, %v1529_v36  ;;  %v2127_v36 = vld [vmem:[%s8980_s10 + $0x1d8] sm:$0xff] }
 0x31b   :  { %1837 = vmatprep.mubr.f32.mxu1 %v9001_v48 }
 0x31e   :  { %1838 = vmatmul.mubr.f32.gmra.mrb[64].mxu1 %v7110_v34  ;;  %v5416_v34 = vpack.c.bf16 %v2127_v36, %v2125_v51  ;;  %v2141_v36 = vld [vmem:[%s8980_s10 + $0x248] sm:$0xff] }
 0x31f   :  { %1843 = vmatprep.mubr.f32.mxu1 %v9001_v48  ;;  %v5432_v24 = vpack.c.bf16 %v2143_v63, %v2141_v36 }
 0x320   :  { %5417 = vmatprep.subr.bf16.mxu0 %v5416_v34 }
 0x321   :  { %5419 = vmatpush1.bf16.msra.mxu0 %v5418_v7 }
 0x322   :  { %1844 = vmatmul.mubr.f32.gmra.mrb[66].mxu1 %v7128_v56  ;;  %v5420_v56 = vpack.c.bf16 %v2131_v40, %v2129_v4 }
 0x323   :  { %1849 = vmatprep.mubr.f32.mxu1 %v9001_v48 }
 0x324   :  { %5421 = vmatprep.subr.bf16.mxu0 %v5420_v56 }
 0x325   :  { %5423 = vmatpush1.bf16.msra.mxu0 %v5422_v42 }
 0x326   :  { %1850 = vmatmul.mubr.f32.gmra.mrb[68].mxu1 %v7140_v9  ;;  %5425 = vmatprep.subr.bf16.mxu0 %v5424_v12  ;;  %v7245_v9 = vrot.slane %v1450_v60, %v7236_v61  ;;  %v2140_v12 = vld [vmem:[%s8980_s10 + $0x240] sm:$0xff] }
 0x327   :  { %1855 = vmatprep.mubr.f32.mxu1 %v9001_v48 }
 0x32a   :  { %1856 = vmatmul.mubr.f32.gmra.mrb[70].mxu1 %v1539_v2  ;;  %v2134_v2 = vld [vmem:[%s8980_s10 + $0x210] sm:$0xff] }
 0x32b   :  { %1861 = vmatprep.mubr.f32.mxu1 %v9001_v48  ;;  %v5426_v33 = vpack.c.bf16 %v2134_v2, %v2132_v27 }
 0x32e   :  { %1862 = vmatmul.mubr.f32.gmra.mrb[72].mxu1 %v1541_v47 }
 0x32f   :  { %1867 = vmatprep.mubr.f32.mxu1 %v9001_v48 }
 0x332   :  { %1868 = vmatmul.mubr.f32.gmra.mrb[74].mxu1 %v1543_v14 }
 0x333   :  { %1873 = vmatprep.mubr.f32.mxu1 %v9001_v48 }
 0x336   :  { %1874 = vmatmul.mubr.f32.gmra.mrb[76].mxu1 %v1545_v41 }
 0x337   :  { %1879 = vmatprep.mubr.f32.mxu1 %v9001_v48 }
 0x33a   :  { %4794 = vmatmul.mubr.msk.f32.gmra.mrb[78].mxu1 %vm205_vm3, %v1544_v32 }
 0x3d1   :  { %v1791_v52 = vpop.f32.mrb[48].mxu1 }
 0x3d2   :  { %v1897_v8 = vmul.f32 %v7242_v62, %v1791_v52  ;;  %v1793_v15 = vpop.f32.mrb[49].mxu1 }
 0x3d3   :  { %v1898_v17 = vmul.f32 %v7245_v9, %v1793_v15 }
 0x3d4   :  { %v1940_v18 = vadd.f32 %v7248_v38, %v1897_v8 }
 0x3d5   :  { %v1941_v11 = vadd.f32 %v7251_v23, %v1898_v17  ;;  %v1797_v1 = vpop.f32.mrb[50].mxu1  ;;  %v2145_v17 = vld [vmem:[%s8980_s10 + $0x268] sm:$0xff] }
 0x3d6   :  { %vm1972_vm13 = vcmp.gt.f32.partialorder %v1940_v18, 0.0  ;;  %v2004_v19 = vmul.f32 0.01, %v1940_v18  ;;  %v1899_v20 = vmul.f32 %v7242_v62, %v1797_v1  ;;  %v1799_v21 = vpop.f32.mrb[51].mxu1 }
 0x3d7   :  { %vm1973_vm14 = vcmp.gt.f32.partialorder %v1941_v11, 0.0  ;;  %v2005_v3 = vmul.f32 0.01, %v1941_v11  ;;  %v1900_v6 = vmul.f32 %v7245_v9, %v1799_v21  ;;  %v5434_v21 = vpack.c.bf16 %v2142_v58, %v2140_v12 }
 0x3d8   :  { %v7271_v25 = vsel %vm1972_vm13, %v1940_v18, %v2004_v19  ;;  %v1942_v10 = vadd.f32 %v7248_v38, %v1899_v20  ;;  %v2147_v18 = vld [vmem:[%s8980_s10 + $0x278] sm:$0xff] }
 0x3d9   :  { %v7274_v47 = vsel %vm1973_vm14, %v1941_v11, %v2005_v3  ;;  %v1943_v37 = vadd.f32 %v7251_v23, %v1900_v6  ;;  %v1803_v46 = vpop.f32.mrb[52].mxu1  ;;  %v2294_v50 = vrot.slane %v7271_v25, 7  ;;  %v5436_v6 = vpack.c.bf16 %v2147_v18, %v2145_v17 }
 0x3da   :  { %vm1974_vm15 = vcmp.gt.f32.partialorder %v1942_v10, 0.0  ;;  %v2006_v43 = vmul.f32 0.01, %v1942_v10  ;;  %v1901_v29 = vmul.f32 %v7242_v62, %v1803_v46  ;;  %v1805_v14 = vpop.f32.mrb[53].mxu1  ;;  %v2295_v30 = vrot.slane %v7274_v47, 7 }
 0x3db   :  { %vm1975_vm0 = vcmp.gt.f32.partialorder %v1943_v37, 0.0  ;;  %v2007_v32 = vmul.f32 0.01, %v1943_v37  ;;  %v1902_v54 = vmul.f32 %v7245_v9, %v1805_v14  ;;  %v2149_v14 = vld [vmem:[%s8980_s10 + $0x288] sm:$0xff] }
 0x3dc   :  { %v7281_v41 = vsel %vm1974_vm15, %v1942_v10, %v2006_v43  ;;  %v1944_v39 = vadd.f32 %v7248_v38, %v1901_v29  ;;  %4796 = vmatprep.mubr.msk.f32.mxu0 %vm6880_vm9, %v2295_v30  ;;  %v2144_v10 = vld [vmem:[%s8980_s10 + $0x260] sm:$0xff] }
 0x3dd   :  { %v7292_v55 = vsel %vm1975_vm0, %v1943_v37, %v2007_v32  ;;  %v1945_v16 = vadd.f32 %v7251_v23, %v1902_v54  ;;  %v1809_v49 = vpop.f32.mrb[54].mxu1  ;;  %4798 = vmatmul.mubr.msk.f32.vlgmr.msra.gmra.mrb[16].mxu0 %vm6880_vm9, %v2294_v50  ;;  %v2296_v51 = vrot.slane %v7281_v41, 7  ;;  %v2146_v37 = vld [vmem:[%s8980_s10 + $0x270] sm:$0xff] }
 0x3de   :  { %vm1976_vm2 = vcmp.gt.f32.partialorder %v1944_v39, 0.0  ;;  %v2008_v34 = vmul.f32 0.01, %v1944_v39  ;;  %v1903_v35 = vmul.f32 %v7242_v62, %v1809_v49  ;;  %v1811_v7 = vpop.f32.mrb[55].mxu1  ;;  %5427 = vmatpush1.bf16.msra.mxu0 %v5426_v33  ;;  %v2298_v4 = vrot.slane %v7292_v55, 7 }
 0x3df   :  { %vm1977_vm4 = vcmp.gt.f32.partialorder %v1945_v16, 0.0  ;;  %v2009_v40 = vmul.f32 0.01, %v1945_v16  ;;  %v1904_v56 = vmul.f32 %v7245_v9, %v1811_v7  ;;  %5429 = vmatprep.subr.bf16.mxu0 %v5428_v5  ;;  %v2297_v8 = vsel %vm170_vm1, %v2294_v50, %v2296_v51 }
 0x3e0   :  { %v7307_v31 = vsel %vm1976_vm2, %v1944_v39, %v2008_v34  ;;  %v1946_v42 = vadd.f32 %v7248_v38, %v1903_v35  ;;  %v2299_v57 = vsel %vm170_vm1, %v2295_v30, %v2298_v4  ;;  %v2151_v30 = vld [vmem:[%s8980_s10 + $0x298] sm:$0xff]  ;;  %v2148_v34 = vld [vmem:[%s8980_s10 + $0x280] sm:$0xff]  ;;  %v2150_v35 = vld [vmem:[%s8980_s10 + $0x290] sm:$0xff] }
 0x3e1   :  { %v7317_v60 = vsel %vm1977_vm4, %v1945_v16, %v2009_v40  ;;  %v1947_v53 = vadd.f32 %v7251_v23, %v1904_v56  ;;  %v1815_v52 = vpop.f32.mrb[56].mxu1  ;;  %2556 = vmatprep.mubr.f32.mxu0 %v2299_v57  ;;  %v2300_v15 = vrot.slane %v7307_v31, 7  ;;  %v5438_v16 = vpack.c.bf16 %v2146_v37, %v2144_v10  ;;  %v2155_v57 = vld [vmem:[%s8980_s10 + $0x2b8] sm:$0xff] }
 0x3e2   :  { %vm1978_vm5 = vcmp.gt.f32.partialorder %v1946_v42, 0.0  ;;  %v2010_v11 = vmul.f32 0.01, %v1946_v42  ;;  %v1905_v1 = vmul.f32 %v7242_v62, %v1815_v52  ;;  %v1817_v27 = vpop.f32.mrb[57].mxu1  ;;  %2557 = vmatmul.mubr.f32.gmra.mrb[18].mxu0 %v2297_v8  ;;  %v2302_v2 = vrot.slane %v7317_v60, 7  ;;  %v2159_v10 = vld [vmem:[%s8980_s10 + $0x2d8] sm:$0xff] }
 0x3e3   :  { %vm1979_vm7 = vcmp.gt.f32.partialorder %v1947_v53, 0.0  ;;  %v2011_v19 = vmul.f32 0.01, %v1947_v53  ;;  %v1906_v20 = vmul.f32 %v7245_v9, %v1817_v27  ;;  %5431 = vmatpush1.bf16.msra.mxu0 %v5430_v44  ;;  %v2301_v43 = vsel %vm170_vm1, %v2296_v51, %v2300_v15  ;;  %v2152_v27 = vld [vmem:[%s8980_s10 + $0x2a0] sm:$0xff] }
 0x3e4   :  { %v7331_v22 = vsel %vm1978_vm5, %v1946_v42, %v2010_v11  ;;  %v1948_v26 = vadd.f32 %v7248_v38, %v1905_v1  ;;  %v2303_v3 = vsel %vm170_vm1, %v2298_v4, %v2302_v2  ;;  %5433 = vmatprep.subr.bf16.mxu0 %v5432_v24  ;;  %v5440_v63 = vpack.c.bf16 %v2151_v30, %v2149_v14  ;;  %v2153_v42 = vld [vmem:[%s8980_s10 + $0x2a8] sm:$0xff] }
 0x3e5   :  { %v7341_v46 = vsel %vm1979_vm7, %v1947_v53, %v2011_v19  ;;  %v1949_v33 = vadd.f32 %v7251_v23, %v1906_v20  ;;  %v1821_v5 = vpop.f32.mrb[58].mxu1  ;;  %2562 = vmatprep.mubr.f32.mxu0 %v2303_v3  ;;  %v2304_v29 = vrot.slane %v7331_v22, 7  ;;  %v5444_v1 = vpack.c.bf16 %v2155_v57, %v2153_v42 }
 0x3e6   :  { %vm1980_vm8 = vcmp.gt.f32.partialorder %v1948_v26, 0.0  ;;  %v2012_v50 = vmul.f32 0.01, %v1948_v26  ;;  %v1907_v32 = vmul.f32 %v7242_v62, %v1821_v5  ;;  %v1823_v54 = vpop.f32.mrb[59].mxu1  ;;  %2563 = vmatmul.mubr.f32.gmra.mrb[20].mxu0 %v2301_v43  ;;  %v2306_v39 = vrot.slane %v7341_v46, 7 }
 0x3e7   :  { %vm1981_vm10 = vcmp.gt.f32.partialorder %v1949_v33, 0.0  ;;  %v2013_v13 = vmul.f32 0.01, %v1949_v33  ;;  %v1908_v28 = vmul.f32 %v7245_v9, %v1823_v54  ;;  %5435 = vmatpush1.bf16.msra.mxu0 %v5434_v21  ;;  %v2305_v56 = vsel %vm170_vm1, %v2300_v15, %v2304_v29 }
 0x3e8   :  { %v7355_v49 = vsel %vm1980_vm8, %v1948_v26, %v2012_v50  ;;  %v1950_v51 = vadd.f32 %v7248_v38, %v1907_v32  ;;  %v2307_v36 = vsel %vm170_vm1, %v2302_v2, %v2306_v39  ;;  %5437 = vmatprep.subr.bf16.mxu0 %v5436_v6  ;;  %v5442_v15 = vpack.c.bf16 %v2150_v35, %v2148_v34  ;;  %v2154_v2 = vld [vmem:[%s8980_s10 + $0x2b0] sm:$0xff]  ;;  %v2157_v6 = vld [vmem:[%s8980_s10 + $0x2c8] sm:$0xff] }
 0x3e9   :  { %v7365_v7 = vsel %vm1981_vm10, %v1949_v33, %v2013_v13  ;;  %v1951_v4 = vadd.f32 %v7251_v23, %v1908_v28  ;;  %v1827_v40 = vpop.f32.mrb[60].mxu1  ;;  %2568 = vmatprep.mubr.f32.mxu0 %v2307_v36  ;;  %v2308_v44 = vrot.slane %v7355_v49, 7  ;;  %v5446_v30 = vpack.c.bf16 %v2154_v2, %v2152_v27  ;;  %v2156_v13 = vld [vmem:[%s8980_s10 + $0x2c0] sm:$0xff]  ;;  %v2158_v28 = vld [vmem:[%s8980_s10 + $0x2d0] sm:$0xff]  ;;  %v2161_v35 = vld [vmem:[%s8980_s10 + $0x2e8] sm:$0xff] }
 0x3ea   :  { %vm1982_vm11 = vcmp.gt.f32.partialorder %v1950_v51, 0.0  ;;  %v2014_v24 = vmul.f32 0.01, %v1950_v51  ;;  %v1909_v12 = vmul.f32 %v7242_v62, %v1827_v40  ;;  %v1829_v58 = vpop.f32.mrb[61].mxu1  ;;  %2569 = vmatmul.mubr.f32.gmra.mrb[22].mxu0 %v2305_v56  ;;  %v2310_v53 = vrot.slane %v7365_v7, 7 }
 0x3eb   :  { %vm1983_vm12 = vcmp.gt.f32.partialorder %v1951_v4, 0.0  ;;  %v2015_v52 = vmul.f32 0.01, %v1951_v4  ;;  %v1910_v8 = vmul.f32 %v7245_v9, %v1829_v58  ;;  %5439 = vmatpush1.bf16.msra.mxu0 %v5438_v16  ;;  %v2309_v26 = vsel %vm170_vm1, %v2304_v29, %v2308_v44 }
 0x3ec   :  { %v7379_v17 = vsel %vm1982_vm11, %v1950_v51, %v2014_v24  ;;  %v1952_v18 = vadd.f32 %v7248_v38, %v1909_v12  ;;  %v2311_v11 = vsel %vm170_vm1, %v2306_v39, %v2310_v53  ;;  %5441 = vmatprep.subr.bf16.mxu0 %v5440_v63  ;;  %v5448_v39 = vpack.c.bf16 %v2159_v10, %v2157_v6 }
 0x3ed   :  { %v7389_v19 = vsel %vm1983_vm12, %v1951_v4, %v2015_v52  ;;  %v1953_v20 = vadd.f32 %v7251_v23, %v1910_v8  ;;  %v1833_v21 = vpop.f32.mrb[62].mxu1  ;;  %2574 = vmatprep.mubr.f32.mxu0 %v2311_v11  ;;  %v2312_v3 = vrot.slane %v7379_v17, 7  ;;  %v2163_v4 = vld [vmem:[%s8980_s10 + $0x2f8] sm:$0xff]  ;;  %v5450_v12 = vpack.c.bf16 %v2158_v28, %v2156_v13 }
 0x3ee   :  { %vm1984_vm13 = vcmp.gt.f32.partialorder %v1952_v18, 0.0  ;;  %v2016_v37 = vmul.f32 0.01, %v1952_v18  ;;  %v1911_v33 = vmul.f32 %v7242_v62, %v1833_v21  ;;  %v1835_v5 = vpop.f32.mrb[63].mxu1  ;;  %2575 = vmatmul.mubr.f32.gmra.mrb[24].mxu0 %v2309_v26  ;;  %v2314_v43 = vrot.slane %v7389_v19, 7  ;;  %v2165_v21 = vld [vmem:[%s8980_s10 + $0x308] sm:$0xff] }
 0x3ef   :  { %vm1985_vm14 = vcmp.gt.f32.partialorder %v1953_v20, 0.0  ;;  %v2017_v29 = vmul.f32 0.01, %v1953_v20  ;;  %v1912_v14 = vmul.f32 %v7245_v9, %v1835_v5  ;;  %5443 = vmatpush1.bf16.msra.mxu0 %v5442_v15  ;;  %v2313_v63 = vsel %vm170_vm1, %v2308_v44, %v2312_v3  ;;  %v2160_v15 = vld [vmem:[%s8980_s10 + $0x2e0] sm:$0xff]  ;;  %v2167_v26 = vld [vmem:[%s8980_s10 + $0x318] sm:$0xff] }
 0x3f0   :  { %v7403_v50 = vsel %vm1984_vm13, %v1952_v18, %v2016_v37  ;;  %v1954_v32 = vadd.f32 %v7248_v38, %v1911_v33  ;;  %v2315_v54 = vsel %vm170_vm1, %v2310_v53, %v2314_v43  ;;  %5445 = vmatprep.subr.bf16.mxu0 %v5444_v1  ;;  %v5452_v8 = vpack.c.bf16 %v2163_v4, %v2161_v35  ;;  %v2162_v18 = vld [vmem:[%s8980_s10 + $0x2f0] sm:$0xff]  ;;  %v2171_v35 = vld [vmem:[%s8980_s10 + $0x338] sm:$0xff] }
 0x3f1   :  { %v7413_v16 = vsel %vm1985_vm14, %v1953_v20, %v2017_v29  ;;  %v1955_v51 = vadd.f32 %v7251_v23, %v1912_v14  ;;  %v1839_v36 = vpop.f32.mrb[64].mxu1  ;;  %2580 = vmatprep.mubr.f32.mxu0 %v2315_v54  ;;  %v2316_v34 = vrot.slane %v7403_v50, 7  ;;  %v2166_v54 = vld [vmem:[%s8980_s10 + $0x310] sm:$0xff] }
 0x3f2   :  { %vm1986_vm15 = vcmp.gt.f32.partialorder %v1954_v32, 0.0  ;;  %v2018_v40 = vmul.f32 0.01, %v1954_v32  ;;  %v1913_v56 = vmul.f32 %v7242_v62, %v1839_v36  ;;  %v1841_v42 = vpop.f32.mrb[65].mxu1  ;;  %2581 = vmatmul.mubr.f32.gmra.mrb[26].mxu0 %v2313_v63  ;;  %v2318_v57 = vrot.slane %v7413_v16, 7  ;;  %v2169_v63 = vld [vmem:[%s8980_s10 + $0x328] sm:$0xff] }
 0x3f3   :  { %vm1987_vm0 = vcmp.gt.f32.partialorder %v1955_v51, 0.0  ;;  %v2019_v44 = vmul.f32 0.01, %v1955_v51  ;;  %v1914_v24 = vmul.f32 %v7245_v9, %v1841_v42  ;;  %5447 = vmatpush1.bf16.msra.mxu0 %v5446_v30  ;;  %v2317_v2 = vsel %vm170_vm1, %v2312_v3, %v2316_v34 }
 0x3f4   :  { %v7427_v58 = vsel %vm1986_vm15, %v1954_v32, %v2018_v40  ;;  %v1956_v53 = vadd.f32 %v7248_v38, %v1913_v56  ;;  %v2319_v52 = vsel %vm170_vm1, %v2314_v43, %v2318_v57  ;;  %5449 = vmatprep.subr.bf16.mxu0 %v5448_v39  ;;  %v5454_v43 = vpack.c.bf16 %v2162_v18, %v2160_v15  ;;  %v2164_v32 = vld [vmem:[%s8980_s10 + $0x300] sm:$0xff]  ;;  %v2170_v15 = vld [vmem:[%s8980_s10 + $0x330] sm:$0xff] }
 0x3f5   :  { %v7437_v11 = vsel %vm1987_vm0, %v1955_v51, %v2019_v44  ;;  %v1957_v1 = vadd.f32 %v7251_v23, %v1914_v24  ;;  %v1845_v27 = vpop.f32.mrb[66].mxu1  ;;  %2586 = vmatprep.mubr.f32.mxu0 %v2319_v52  ;;  %v2320_v20 = vrot.slane %v7427_v58, 7  ;;  %v5456_v30 = vpack.c.bf16 %v2167_v26, %v2165_v21  ;;  %v2175_v21 = vld [vmem:[%s8980_s10 + $0x358] sm:$0xff] }
 0x3f6   :  { %vm1988_vm2 = vcmp.gt.f32.partialorder %v1956_v53, 0.0  ;;  %v2020_v6 = vmul.f32 0.01, %v1956_v53  ;;  %v1915_v10 = vmul.f32 %v7242_v62, %v1845_v27  ;;  %v1847_v37 = vpop.f32.mrb[67].mxu1  ;;  %2587 = vmatmul.mubr.f32.gmra.mrb[28].mxu0 %v2317_v2  ;;  %v2322_v33 = vrot.slane %v7437_v11, 7 }
 0x3f7   :  { %vm1989_vm4 = vcmp.gt.f32.partialorder %v1957_v1, 0.0  ;;  %v2021_v3 = vmul.f32 0.01, %v1957_v1  ;;  %v1916_v5 = vmul.f32 %v7245_v9, %v1847_v37  ;;  %5451 = vmatpush1.bf16.msra.mxu0 %v5450_v12  ;;  %v2321_v36 = vsel %vm170_vm1, %v2316_v34, %v2320_v20  ;;  %v2173_v20 = vld [vmem:[%s8980_s10 + $0x348] sm:$0xff] }
 0x3f8   :  { %v1958_v29 = vadd.f32 %v7248_v38, %v1915_v10  ;;  %v2323_v14 = vsel %vm170_vm1, %v2318_v57, %v2322_v33  ;;  %5453 = vmatprep.subr.bf16.mxu0 %v5452_v8  ;;  %v7460_v39 = vsel %vm1988_vm2, %v1956_v53, %v2020_v6  ;;  %v5458_v44 = vpack.c.bf16 %v2166_v54, %v2164_v32  ;;  %v2168_v8 = vld [vmem:[%s8980_s10 + $0x320] sm:$0xff]  ;;  %v2174_v54 = vld [vmem:[%s8980_s10 + $0x350] sm:$0xff] }
 0x3f9   :  { %v7462_v13 = vsel %vm1989_vm4, %v1957_v1, %v2021_v3  ;;  %v1959_v28 = vadd.f32 %v7251_v23, %v1916_v5  ;;  %v1851_v51 = vpop.f32.mrb[68].mxu1  ;;  %2592 = vmatprep.mubr.f32.mxu0 %v2323_v14  ;;  %v2324_v53 = vrot.slane %v7460_v39, 7  ;;  %v5460_v52 = vpack.c.bf16 %v2171_v35, %v2169_v63  ;;  %v2172_v32 = vld [vmem:[%s8980_s10 + $0x340] sm:$0xff] }
 0x3fa   :  { %vm1990_vm5 = vcmp.gt.f32.partialorder %v1958_v29, 0.0  ;;  %v2022_v4 = vmul.f32 0.01, %v1958_v29  ;;  %v1917_v40 = vmul.f32 %v7242_v62, %v1851_v51  ;;  %v1853_v56 = vpop.f32.mrb[69].mxu1  ;;  %2593 = vmatmul.mubr.f32.gmra.mrb[30].mxu0 %v2321_v36  ;;  %v2325_v42 = vrot.slane %v7462_v13, 7 }
 0x3fb   :  { %vm1991_vm7 = vcmp.gt.f32.partialorder %v1959_v28, 0.0  ;;  %v2023_v57 = vmul.f32 0.01, %v1959_v28  ;;  %v1918_v34 = vmul.f32 %v7245_v9, %v1853_v56  ;;  %5455 = vmatpush1.bf16.msra.mxu0 %v5454_v43  ;;  %v5462_v5 = vpack.c.bf16 %v2170_v15, %v2168_v8 }
 0x3fc   :  { %v7475_v24 = vsel %vm1990_vm5, %v1958_v29, %v2022_v4  ;;  %v1960_v12 = vadd.f32 %v7248_v38, %v1917_v40  ;;  %4800 = vmatprep.mubr.msk.f32.mxu0 %vm6880_vm9, %v2325_v42  ;;  %5457 = vmatprep.subr.bf16.mxu0 %v5456_v30  ;;  %v5464_v30 = vpack.c.bf16 %v2175_v21, %v2173_v20  ;;  %v2177_v4 = vld [vmem:[%s8980_s10 + $0x368] sm:$0xff]  ;;  %v2179_v40 = vld [vmem:[%s8980_s10 + $0x378] sm:$0xff]  ;;  %v2178_v20 = vld [vmem:[%s8980_s10 + $0x370] sm:$0xff] }
 0x3fd   :  { %v7487_v18 = vsel %vm1991_vm7, %v1959_v28, %v2023_v57  ;;  %v1961_v1 = vadd.f32 %v7251_v23, %v1918_v34  ;;  %v1857_v27 = vpop.f32.mrb[70].mxu1  ;;  %v2326_v2 = vrot.slane %v7475_v24, 7 }
 0x3fe   :  { %vm1992_vm8 = vcmp.gt.f32.partialorder %v1960_v12, 0.0  ;;  %v2024_v26 = vmul.f32 0.01, %v1960_v12  ;;  %v1919_v6 = vmul.f32 %v7242_v62, %v1857_v27  ;;  %v1859_v10 = vpop.f32.mrb[71].mxu1  ;;  %4802 = vmatmul.mubr.msk.f32.gmra.mrb[32].mxu0 %vm6880_vm9, %v2324_v53  ;;  %v2328_v37 = vrot.slane %v7487_v18, 7  ;;  %v2176_v27 = vld [vmem:[%s8980_s10 + $0x360] sm:$0xff] }
 0x3ff   :  { %vm1993_vm10 = vcmp.gt.f32.partialorder %v1961_v1, 0.0  ;;  %v2025_v33 = vmul.f32 0.01, %v1961_v1  ;;  %v1920_v3 = vmul.f32 %v7245_v9, %v1859_v10  ;;  %5459 = vmatpush1.bf16.msra.mxu0 %v5458_v44  ;;  %v2327_v63 = vsel %vm170_vm1, %v2324_v53, %v2326_v2 }
 0x400   :  { %v7502_v43 = vsel %vm1992_vm8, %v1960_v12, %v2024_v26  ;;  %v1962_v29 = vadd.f32 %v7248_v38, %v1919_v6  ;;  %v2329_v14 = vsel %vm170_vm1, %v2325_v42, %v2328_v37  ;;  %5461 = vmatprep.subr.bf16.mxu0 %v5460_v52  ;;  %v5466_v53 = vpack.c.bf16 %v2174_v54, %v2172_v32 }
 0x401   :  { %v7512_v28 = vsel %vm1993_vm10, %v1961_v1, %v2025_v33  ;;  %v1963_v51 = vadd.f32 %v7251_v23, %v1920_v3  ;;  %v1863_v36 = vpop.f32.mrb[72].mxu1  ;;  %2604 = vmatprep.mubr.f32.mxu0 %v2329_v14  ;;  %v2330_v35 = vrot.slane %v7502_v43, 7  ;;  %v5468_v1 = vpack.c.bf16 %v2179_v40, %v2177_v4  ;;  %v2181_v33 = vld [vmem:[%s8980_s10 + $0x388] sm:$0xff]  ;;  %v2183_v3 = vld [vmem:[%s8980_s10 + $0x398] sm:$0xff]  ;;  %v2180_v40 = vld [vmem:[%s8980_s10 + $0x380] sm:$0xff] }
 0x402   :  { %vm1994_vm11 = vcmp.gt.f32.partialorder %v1962_v29, 0.0  ;;  %v2026_v56 = vmul.f32 0.01, %v1962_v29  ;;  %v1921_v42 = vmul.f32 %v7242_v62, %v1863_v36  ;;  %v1865_v57 = vpop.f32.mrb[73].mxu1  ;;  %2605 = vmatmul.mubr.f32.gmra.mrb[34].mxu0 %v2327_v63  ;;  %v2332_v34 = vrot.slane %v7512_v28, 7 }
 0x403   :  { %vm1995_vm12 = vcmp.gt.f32.partialorder %v1963_v51, 0.0  ;;  %v2027_v44 = vmul.f32 0.01, %v1963_v51  ;;  %v1922_v12 = vmul.f32 %v7245_v9, %v1865_v57  ;;  %5463 = vmatpush1.bf16.msra.mxu0 %v5462_v5  ;;  %v2331_v10 = vsel %vm170_vm1, %v2326_v2, %v2330_v35 }
 0x404   :  { %v7526_v52 = vsel %vm1994_vm11, %v1962_v29, %v2026_v56  ;;  %v1964_v8 = vadd.f32 %v7248_v38, %v1921_v42  ;;  %v2333_v15 = vsel %vm170_vm1, %v2328_v37, %v2332_v34  ;;  %5465 = vmatprep.subr.bf16.mxu0 %v5464_v30  ;;  %v5470_v54 = vpack.c.bf16 %v2178_v20, %v2176_v27  ;;  %v2182_v56 = vld [vmem:[%s8980_s10 + $0x390] sm:$0xff] }
 0x405   :  { %v7536_v21 = vsel %vm1995_vm12, %v1963_v51, %v2027_v44  ;;  %v1965_v26 = vadd.f32 %v7251_v23, %v1922_v12  ;;  %v1869_v6 = vpop.f32.mrb[74].mxu1  ;;  %2610 = vmatprep.mubr.f32.mxu0 %v2333_v15  ;;  %v2334_v37 = vrot.slane %v7526_v52, 7  ;;  %v5472_v4 = vpack.c.bf16 %v2183_v3, %v2181_v33 }
 0x406   :  { %vm1996_vm13 = vcmp.gt.f32.partialorder %v1964_v8, 0.0  ;;  %v2028_v5 = vmul.f32 0.01, %v1964_v8  ;;  %v1923_v29 = vmul.f32 %v7242_v62, %v1869_v6  ;;  %v1871_v14 = vpop.f32.mrb[75].mxu1  ;;  %2611 = vmatmul.mubr.f32.gmra.mrb[36].mxu0 %v2331_v10  ;;  %v2336_v30 = vrot.slane %v7536_v21, 7 }
 0x407   :  { %vm1997_vm14 = vcmp.gt.f32.partialorder %v1965_v26, 0.0  ;;  %v2029_v2 = vmul.f32 0.01, %v1965_v26  ;;  %v1924_v32 = vmul.f32 %v7245_v9, %v1871_v14  ;;  %5467 = vmatpush1.bf16.msra.mxu0 %v5466_v53  ;;  %v2335_v12 = vsel %vm170_vm1, %v2330_v35, %v2334_v37  ;;  %v2185_v53 = vld [vmem:[%s8980_s10 + $0x3a8] sm:$0xff]  ;;  %v2186_v14 = vld [vmem:[%s8980_s10 + $0x3b0] sm:$0xff] }
 0x408   :  { %v7550_v51 = vsel %vm1996_vm13, %v1964_v8, %v2028_v5  ;;  %v1966_v36 = vadd.f32 %v7248_v38, %v1923_v29  ;;  %v2337_v63 = vsel %vm170_vm1, %v2332_v34, %v2336_v30  ;;  %5469 = vmatprep.subr.bf16.mxu0 %v5468_v1  ;;  %v2187_v8 = vld [vmem:[%s8980_s10 + $0x3b8] sm:$0xff]  ;;  %v5474_v6 = vpack.c.bf16 %v2182_v56, %v2180_v40  ;;  %v2184_v29 = vld [vmem:[%s8980_s10 + $0x3a0] sm:$0xff] }
 0x409   :  { %v7560_v42 = vsel %vm1997_vm14, %v1965_v26, %v2029_v2  ;;  %v1967_v57 = vadd.f32 %v7251_v23, %v1924_v32  ;;  %v1875_v44 = vpop.f32.mrb[76].mxu1  ;;  %2616 = vmatprep.mubr.f32.mxu0 %v2337_v63  ;;  %v2338_v34 = vrot.slane %v7550_v51, 7  ;;  %v5476_v5 = vpack.c.bf16 %v2187_v8, %v2185_v53  ;;  %v2189_v63 = vld [vmem:[%s8980_s10 + $0x3c8] sm:$0xff] }
 0x40a   :  { %vm1998_vm15 = vcmp.gt.f32.partialorder %v1966_v36, 0.0  ;;  %v2030_v15 = vmul.f32 0.01, %v1966_v36  ;;  %v1925_v1 = vmul.f32 %v7242_v62, %v1875_v44  ;;  %v1877_v27 = vpop.f32.mrb[77].mxu1  ;;  %2617 = vmatmul.mubr.f32.gmra.mrb[38].mxu0 %v2335_v12  ;;  %v2340_v20 = vrot.slane %v7560_v42, 7 }
 0x40b   :  { %vm1999_vm0 = vcmp.gt.f32.partialorder %v1967_v57, 0.0  ;;  %v2031_v35 = vmul.f32 0.01, %v1967_v57  ;;  %v1926_v26 = vmul.f32 %v7245_v9, %v1877_v27  ;;  %5471 = vmatpush1.bf16.msra.mxu0 %v5470_v54  ;;  %v5478_v53 = vpack.c.bf16 %v2186_v14, %v2184_v29 }
 0x40c   :  { %v7574_v10 = vsel %vm1998_vm15, %v1966_v36, %v2030_v15  ;;  %v1968_v33 = vadd.f32 %v7248_v38, %v1925_v1  ;;  %v2341_v3 = vsel %vm170_vm1, %v2336_v30, %v2340_v20  ;;  %5473 = vmatprep.subr.bf16.mxu0 %v5472_v4  ;;  %v2339_v36 = vsel %vm170_vm1, %v2334_v37, %v2338_v34  ;;  %v2191_v4 = vld [vmem:[%s8980_s10 + $0x3d8] sm:$0xff] }
 0x40d   :  { %v7584_v2 = vsel %vm1999_vm0, %v1967_v57, %v2031_v35  ;;  %v1969_v32 = vadd.f32 %v7251_v23, %v1926_v26  ;;  %v1881_v54 = vpop.f32.mrb[78].mxu1  ;;  %2622 = vmatprep.mubr.f32.mxu0 %v2341_v3  ;;  %v2342_v30 = vrot.slane %v7574_v10, 7  ;;  %v5480_v27 = vpack.c.bf16 %v2191_v4, %v2189_v63  ;;  %v2190_v35 = vld [vmem:[%s8980_s10 + $0x3d0] sm:$0xff] }
 0x40e   :  { %vm2000_vm2 = vcmp.gt.f32.partialorder %v1968_v33, 0.0  ;;  %v2032_v40 = vmul.f32 0.01, %v1968_v33  ;;  %v1927_v56 = vmul.f32 %v7242_v62, %v1881_v54  ;;  %v1883_v57 = vpop.f32.mrb[79].mxu1  ;;  %2623 = vmatmul.mubr.f32.gmra.mrb[40].mxu0 %v2339_v36  ;;  %v2344_v44 = vrot.slane %v7584_v2, 7  ;;  %v2188_v62 = vld [vmem:[%s8980_s10 + $0x3c0] sm:$0xff] }
 0x40f   :  { %vm2001_vm4 = vcmp.gt.f32.partialorder %v1969_v32, 0.0  ;;  %v2033_v37 = vmul.f32 0.01, %v1969_v32  ;;  %v1928_v12 = vmul.f32 %v7245_v9, %v1883_v57  ;;  %5475 = vmatpush1.bf16.msra.mxu0 %v5474_v6  ;;  %v2343_v6 = vsel %vm170_vm1, %v2338_v34, %v2342_v30  ;;  %v2192_v54 = vld [vmem:[%s8980_s10 + $0x3e0] sm:$0xff]  ;;  %v2194_v36 = vld [vmem:[%s8980_s10 + $0x3f0] sm:$0xff]  ;;  %v2199_v57 = vld [vmem:[%s8980_s10 + $0x418] sm:$0xff] }
 0x410   :  { %v7598_v8 = vsel %vm2000_vm2, %v1968_v33, %v2032_v40  ;;  %v1970_v15 = vadd.f32 %v7248_v38, %v1927_v56  ;;  %v2345_v1 = vsel %vm170_vm1, %v2340_v20, %v2344_v44  ;;  %5477 = vmatprep.subr.bf16.mxu0 %v5476_v5  ;;  %v2193_v20 = vld [vmem:[%s8980_s10 + $0x3e8] sm:$0xff]  ;;  %v2195_v33 = vld [vmem:[%s8980_s10 + $0x3f8] sm:$0xff]  ;;  %v5482_v29 = vpack.c.bf16 %v2190_v35, %v2188_v62  ;;  %v3167_v35 = vld [vmem:[%s8983_s13 + $0x80] sm:$0xff] }
 0x411   :  { %v7608_v26 = vsel %vm2001_vm4, %v1969_v32, %v2033_v37  ;;  %v1971_v9 = vadd.f32 %v7251_v23, %v1928_v12  ;;  %2628 = vmatprep.mubr.f32.mxu0 %v2345_v1  ;;  %v2346_v38 = vrot.slane %v7598_v8, 7  ;;  %v5484_v32 = vpack.c.bf16 %v2195_v33, %v2193_v20  ;;  %v2197_v56 = vld [vmem:[%s8980_s10 + $0x408] sm:$0xff]  ;;  %v2203_v62 = vld [vmem:[%s8980_s10 + $0x438] sm:$0xff]  ;;  %v3169_v33 = vld [vmem:[%s8983_s13 + $0x90] sm:$0xff] }
 0x412   :  { %vm2002_vm5 = vcmp.gt.f32.partialorder %v1970_v15, 0.0  ;;  %v2034_v3 = vmul.f32 0.01, %v1970_v15  ;;  %2629 = vmatmul.mubr.f32.gmra.mrb[42].mxu0 %v2343_v6  ;;  %v2348_v5 = vrot.slane %v7608_v26, 7  ;;  %v5486_v37 = vpack.c.bf16 %v2194_v36, %v2192_v54  ;;  %v3151_v6 = vld [vmem:[%s8983_s13] sm:$0xff]  ;;  %v3152_v20 = vld [vmem:[%s8983_s13 + $0x8] sm:$0xff] }
 0x413   :  { %vm2003_vm7 = vcmp.gt.f32.partialorder %v1971_v9, 0.0  ;;  %v2035_v23 = vmul.f32 0.01, %v1971_v9  ;;  %5479 = vmatpush1.bf16.msra.mxu0 %v5478_v53  ;;  %v2347_v4 = vsel %vm170_vm1, %v2342_v30, %v2346_v38  ;;  %v5488_v53 = vpack.c.bf16 %v2199_v57, %v2197_v56  ;;  %v2196_v30 = vld [vmem:[%s8980_s10 + $0x400] sm:$0xff]  ;;  %v2207_v54 = vld [vmem:[%s8980_s10 + $0x458] sm:$0xff] }
 0x414   :  { %v7620_v34 = vsel %vm2002_vm5, %v1970_v15, %v2034_v3  ;;  %v2349_v14 = vsel %vm170_vm1, %v2344_v44, %v2348_v5  ;;  %5481 = vmatprep.subr.bf16.mxu0 %v5480_v27  ;;  %v2198_v15 = vld [vmem:[%s8980_s10 + $0x410] sm:$0xff]  ;;  %v2201_v27 = vld [vmem:[%s8980_s10 + $0x428] sm:$0xff]  ;;  %v3170_v3 = vld [vmem:[%s8983_s13 + $0x98] sm:$0xff]  ;;  %v5554_v36 = vpack.c.bf16 %v3152_v20, %v3151_v6 }
 0x415   :  { %v7629_v63 = vsel %vm2003_vm7, %v1971_v9, %v2035_v23  ;;  %2634 = vmatprep.mubr.f32.mxu0 %v2349_v14  ;;  %v2350_v40 = vrot.slane %v7620_v34, 7  ;;  %v3168_v9 = vld [vmem:[%s8983_s13 + $0x88] sm:$0xff]  ;;  %v2200_v23 = vld [vmem:[%s8980_s10 + $0x420] sm:$0xff]  ;;  %v3154_v56 = vld [vmem:[%s8983_s13 + $0x18] sm:$0xff] }
 0x416   :  { %2635 = vmatmul.mubr.f32.gmra.mrb[44].mxu0 %v2347_v4  ;;  %v2352_v44 = vrot.slane %v7629_v63, 7  ;;  %v2205_v14 = vld [vmem:[%s8980_s10 + $0x448] sm:$0xff]  ;;  %v5556_v4 = vpack.c.bf16 %v3170_v3, %v3169_v33  ;;  %v3171_v57 = vld [vmem:[%s8983_s13 + $0xa0] sm:$0xff]  ;;  %v3173_v6 = vld [vmem:[%s8983_s13 + $0xb0] sm:$0xff] }
 0x417   :  { %5483 = vmatpush1.bf16.msra.mxu0 %v5482_v29  ;;  %v2351_v1 = vsel %vm170_vm1, %v2346_v38, %v2350_v40  ;;  %v5490_v38 = vpack.c.bf16 %v2198_v15, %v2196_v30  ;;  %v2202_v29 = vld [vmem:[%s8980_s10 + $0x430] sm:$0xff]  ;;  %v2209_v15 = vld [vmem:[%s8980_s10 + $0x468] sm:$0xff]  ;;  %v2208_v3 = vld [vmem:[%s8980_s10 + $0x460] sm:$0xff] }
 0x418   :  { %v2353_v12 = vsel %vm170_vm1, %v2348_v5, %v2352_v44  ;;  %5485 = vmatprep.subr.bf16.mxu0 %v5484_v32  ;;  %v5492_v5 = vpack.c.bf16 %v2203_v62, %v2201_v27  ;;  %v5552_v32 = vpack.c.bf16 %v3168_v9, %v3167_v35  ;;  %v3153_v40 = vld [vmem:[%s8983_s13 + $0x10] sm:$0xff]  ;;  %v3172_v44 = vld [vmem:[%s8983_s13 + $0xa8] sm:$0xff]  ;;  %v2211_v27 = vld [vmem:[%s8980_s10 + $0x478] sm:$0xff] }
 0x419   :  { %2640 = vmatprep.mubr.f32.mxu0 %v2353_v12  ;;  %v5496_v12 = vpack.c.bf16 %v2207_v54, %v2205_v14  ;;  %v2206_v30 = vld [vmem:[%s8980_s10 + $0x450] sm:$0xff]  ;;  %v5560_v62 = vpack.c.bf16 %v3172_v44, %v3171_v57  ;;  %v3155_v35 = vld [vmem:[%s8983_s13 + $0x20] sm:$0xff]  ;;  %v3156_v9 = vld [vmem:[%s8983_s13 + $0x28] sm:$0xff]  ;;  %v5500_v33 = vpack.c.bf16 %v2211_v27, %v2209_v15 }
 0x41a   :  { %2641 = vmatmul.mubr.f32.gmra.mrb[46].mxu0 %v2351_v1  ;;  %5553 = vmatprep.subr.bf16.mxu1 %v5552_v32  ;;  %v5558_v1 = vpack.c.bf16 %v3154_v56, %v3153_v40  ;;  %v2215_v14 = vld [vmem:[%s8980_s10 + $0x498] sm:$0xff]  ;;  %v3157_v54 = vld [vmem:[%s8983_s13 + $0x30] sm:$0xff]  ;;  %v3176_v40 = vld [vmem:[%s8983_s13 + $0xc8] sm:$0xff] }
 0x41b   :  { %5487 = vmatpush1.bf16.msra.mxu0 %v5486_v37  ;;  %2711 = vmatprep.mubr.f32.mxu0 %v7274_v47  ;;  %v5494_v37 = vpack.c.bf16 %v2202_v29, %v2200_v23  ;;  %v2213_v23 = vld [vmem:[%s8980_s10 + $0x488] sm:$0xff]  ;;  %v5562_v29 = vpack.c.bf16 %v3156_v9, %v3155_v35  ;;  %v2212_v44 = vld [vmem:[%s8980_s10 + $0x480] sm:$0xff]  ;;  %v3178_v35 = vld [vmem:[%s8983_s13 + $0xd8] sm:$0xff] }
 0x41c   :  { %5489 = vmatprep.subr.bf16.mxu0 %v5488_v53  ;;  %v2204_v53 = vld [vmem:[%s8980_s10 + $0x440] sm:$0xff]  ;;  %5555 = vmatpush3.bf16.msra.mxu1 %v5554_v36  ;;  %v3158_v36 = vld [vmem:[%s8983_s13 + $0x38] sm:$0xff]  ;;  %v5504_v57 = vpack.c.bf16 %v2215_v14, %v2213_v23  ;;  %v3160_v27 = vld [vmem:[%s8983_s13 + $0x48] sm:$0xff] }
 0x41d   :  { %5557 = vmatprep.subr.bf16.mxu1 %v5556_v4  ;;  %v5498_v20 = vpack.c.bf16 %v2206_v30, %v2204_v53  ;;  %v3175_v4 = vld [vmem:[%s8983_s13 + $0xc0] sm:$0xff]  ;;  %v5566_v53 = vpack.c.bf16 %v3158_v36, %v3157_v54  ;;  %v2219_v30 = vld [vmem:[%s8980_s10 + $0x4b8] sm:$0xff]  ;;  %v3180_v54 = vld [vmem:[%s8983_s13 + $0xe8] sm:$0xff] }
 0x41e   :  { %2712 = vmatmul.mubr.f32.vlgmr.msra.gmra.mrb[16].mxu0 %v7271_v25  ;;  %v5568_v15 = vpack.c.bf16 %v3176_v40, %v3175_v4  ;;  %v3162_v14 = vld [vmem:[%s8983_s13 + $0x58] sm:$0xff]  ;;  %v2220_v40 = vld [vmem:[%s8980_s10 + $0x4c0] sm:$0xff] }
 0x41f   :  { %5491 = vmatpush1.bf16.msra.mxu0 %v5490_v38  ;;  %2717 = vmatprep.mubr.f32.mxu0 %v7292_v55  ;;  %v3174_v38 = vld [vmem:[%s8983_s13 + $0xb8] sm:$0xff] }
 0x420   :  { %5493 = vmatprep.subr.bf16.mxu0 %v5492_v5  ;;  %v2210_v5 = vld [vmem:[%s8980_s10 + $0x470] sm:$0xff]  ;;  %5559 = vmatpush3.bf16.msra.mxu1 %v5558_v1  ;;  %v5564_v32 = vpack.c.bf16 %v3174_v38, %v3173_v6  ;;  %v3159_v1 = vld [vmem:[%s8983_s13 + $0x40] sm:$0xff] }
 0x421   :  { %5561 = vmatprep.subr.bf16.mxu1 %v5560_v62  ;;  %v5502_v56 = vpack.c.bf16 %v2210_v5, %v2208_v3  ;;  %v3177_v62 = vld [vmem:[%s8983_s13 + $0xd0] sm:$0xff]  ;;  %v2216_v38 = vld [vmem:[%s8980_s10 + $0x4a0] sm:$0xff]  ;;  %v5570_v3 = vpack.c.bf16 %v3160_v27, %v3159_v1  ;;  %v2223_v5 = vld [vmem:[%s8980_s10 + $0x4d8] sm:$0xff] }
 0x422   :  { %2718 = vmatmul.mubr.f32.gmra.mrb[18].mxu0 %v7281_v41  ;;  %v5572_v23 = vpack.c.bf16 %v3178_v35, %v3177_v62  ;;  %v2224_v27 = vld [vmem:[%s8980_s10 + $0x4e0] sm:$0xff]  ;;  %v2226_v62 = vld [vmem:[%s8980_s10 + $0x4f0] sm:$0xff] }
 0x423   :  { %5495 = vmatpush1.bf16.msra.mxu0 %v5494_v37  ;;  %2723 = vmatprep.mubr.f32.mxu0 %v7317_v60  ;;  %v2214_v37 = vld [vmem:[%s8980_s10 + $0x490] sm:$0xff] }
 0x424   :  { %5497 = vmatprep.subr.bf16.mxu0 %v5496_v12  ;;  %v2217_v12 = vld [vmem:[%s8980_s10 + $0x4a8] sm:$0xff]  ;;  %5563 = vmatpush3.bf16.msra.mxu1 %v5562_v29  ;;  %v5506_v9 = vpack.c.bf16 %v2214_v37, %v2212_v44  ;;  %v3161_v29 = vld [vmem:[%s8983_s13 + $0x50] sm:$0xff]  ;;  %v2227_v37 = vld [vmem:[%s8980_s10 + $0x4f8] sm:$0xff] }
 0x425   :  { %5565 = vmatprep.subr.bf16.mxu1 %v5564_v32  ;;  %v5508_v6 = vpack.c.bf16 %v2219_v30, %v2217_v12  ;;  %v3179_v32 = vld [vmem:[%s8983_s13 + $0xe0] sm:$0xff]  ;;  %v5574_v44 = vpack.c.bf16 %v3162_v14, %v3161_v29  ;;  %v3164_v30 = vld [vmem:[%s8983_s13 + $0x68] sm:$0xff] }
 0x426   :  { %2724 = vmatmul.mubr.f32.gmra.mrb[20].mxu0 %v7307_v31  ;;  %v5576_v12 = vpack.c.bf16 %v3180_v54, %v3179_v32  ;;  %v2232_v32 = vld [vmem:[%s8980_s10 + $0x520] sm:$0xff]  ;;  %v2234_v54 = vld [vmem:[%s8980_s10 + $0x530] sm:$0xff] }
 0x427   :  { %5499 = vmatpush1.bf16.msra.mxu0 %v5498_v20  ;;  %2729 = vmatprep.mubr.f32.mxu0 %v7341_v46  ;;  %v2218_v20 = vld [vmem:[%s8980_s10 + $0x4b0] sm:$0xff] }
 0x428   :  { %5501 = vmatprep.subr.bf16.mxu0 %v5500_v33  ;;  %v2221_v33 = vld [vmem:[%s8980_s10 + $0x4c8] sm:$0xff]  ;;  %5567 = vmatpush3.bf16.msra.mxu1 %v5566_v53  ;;  %v5510_v36 = vpack.c.bf16 %v2218_v20, %v2216_v38  ;;  %v3163_v53 = vld [vmem:[%s8983_s13 + $0x60] sm:$0xff]  ;;  %v5518_v38 = vpack.c.bf16 %v2226_v62, %v2224_v27  ;;  %v2247_v62 = vld [vmem:[%s8980_s10 + $0x598] sm:$0xff] }
 0x429   :  { %5569 = vmatprep.subr.bf16.mxu1 %v5568_v15  ;;  %v5512_v4 = vpack.c.bf16 %v2223_v5, %v2221_v33  ;;  %v5578_v35 = vpack.c.bf16 %v3164_v30, %v3163_v53  ;;  %v2228_v33 = vld [vmem:[%s8980_s10 + $0x500] sm:$0xff]  ;;  %v2233_v5 = vld [vmem:[%s8980_s10 + $0x528] sm:$0xff] }
 0x42a   :  { %2730 = vmatmul.mubr.f32.gmra.mrb[22].mxu0 %v7331_v22  ;;  %v2245_v27 = vld [vmem:[%s8980_s10 + $0x588] sm:$0xff] }
 0x42b   :  { %5503 = vmatpush1.bf16.msra.mxu0 %v5502_v56  ;;  %2735 = vmatprep.mubr.f32.mxu0 %v7365_v7  ;;  %v2222_v56 = vld [vmem:[%s8980_s10 + $0x4d0] sm:$0xff] }
 0x42c   :  { %5505 = vmatprep.subr.bf16.mxu0 %v5504_v57  ;;  %v2225_v57 = vld [vmem:[%s8980_s10 + $0x4e8] sm:$0xff]  ;;  %5571 = vmatpush3.bf16.msra.mxu1 %v5570_v3  ;;  %v5514_v15 = vpack.c.bf16 %v2222_v56, %v2220_v40  ;;  %v2230_v3 = vld [vmem:[%s8980_s10 + $0x510] sm:$0xff]  ;;  %v5526_v40 = vpack.c.bf16 %v2234_v54, %v2232_v32  ;;  %v2255_v32 = vld [vmem:[%s8980_s10 + $0x5d8] sm:$0xff] }
 0x42d   :  { %5573 = vmatprep.subr.bf16.mxu1 %v5572_v23  ;;  %v5516_v1 = vpack.c.bf16 %v2227_v37, %v2225_v57  ;;  %v2235_v23 = vld [vmem:[%s8980_s10 + $0x538] sm:$0xff]  ;;  %v5522_v29 = vpack.c.bf16 %v2230_v3, %v2228_v33  ;;  %v2236_v57 = vld [vmem:[%s8980_s10 + $0x540] sm:$0xff]  ;;  %v2241_v37 = vld [vmem:[%s8980_s10 + $0x568] sm:$0xff] }
 0x42e   :  { %2736 = vmatmul.mubr.f32.gmra.mrb[24].mxu0 %v7355_v49  ;;  %v5524_v14 = vpack.c.bf16 %v2235_v23, %v2233_v5  ;;  %v2251_v33 = vld [vmem:[%s8980_s10 + $0x5b8] sm:$0xff]  ;;  %v2248_v23 = vld [vmem:[%s8980_s10 + $0x5a0] sm:$0xff] }
 0x42f   :  { %5507 = vmatpush1.bf16.msra.mxu0 %v5506_v9  ;;  %2741 = vmatprep.mubr.f32.mxu0 %v7389_v19  ;;  %v2229_v9 = vld [vmem:[%s8980_s10 + $0x508] sm:$0xff] }
 0x430   :  { %5509 = vmatprep.subr.bf16.mxu0 %v5508_v6  ;;  %5575 = vmatpush3.bf16.msra.mxu1 %v5574_v44  ;;  %v2231_v6 = vld [vmem:[%s8980_s10 + $0x518] sm:$0xff]  ;;  %v2238_v44 = vld [vmem:[%s8980_s10 + $0x550] sm:$0xff] }
 0x431   :  { %5577 = vmatprep.subr.bf16.mxu1 %v5576_v12  ;;  %v5520_v20 = vpack.c.bf16 %v2231_v6, %v2229_v9  ;;  %v2243_v12 = vld [vmem:[%s8980_s10 + $0x578] sm:$0xff]  ;;  %v5530_v53 = vpack.c.bf16 %v2238_v44, %v2236_v57  ;;  %v5536_v9 = vpack.c.bf16 %v2247_v62, %v2245_v27  ;;  %v2244_v6 = vld [vmem:[%s8980_s10 + $0x580] sm:$0xff]  ;;  %v2393_v62 = vrot.slane %v7274_v47, 1 }
 0x432   :  { %2742 = vmatmul.mubr.f32.gmra.mrb[26].mxu0 %v7379_v17  ;;  %v5532_v30 = vpack.c.bf16 %v2243_v12, %v2241_v37  ;;  %v2259_v57 = vld [vmem:[%s8980_s10 + $0x5f8] sm:$0xff]  ;;  %v2256_v12 = vld [vmem:[%s8980_s10 + $0x5e0] sm:$0xff] }
 0x433   :  { %5511 = vmatpush1.bf16.msra.mxu0 %v5510_v36  ;;  %2747 = vmatprep.mubr.f32.mxu0 %v7413_v16  ;;  %v2237_v36 = vld [vmem:[%s8980_s10 + $0x548] sm:$0xff] }
 0x434   :  { %5513 = vmatprep.subr.bf16.mxu0 %v5512_v4  ;;  %5579 = vmatpush3.bf16.msra.mxu1 %v5578_v35  ;;  %v2239_v4 = vld [vmem:[%s8980_s10 + $0x558] sm:$0xff] }
 0x435   :  { %v5528_v56 = vpack.c.bf16 %v2239_v4, %v2237_v36  ;;  %v2252_v4 = vld [vmem:[%s8980_s10 + $0x5c0] sm:$0xff] }
 0x436   :  { %2748 = vmatmul.mubr.f32.gmra.mrb[28].mxu0 %v7403_v50 }
 0x437   :  { %5515 = vmatpush1.bf16.msra.mxu0 %v5514_v15  ;;  %2753 = vmatprep.mubr.f32.mxu0 %v7437_v11  ;;  %v2240_v15 = vld [vmem:[%s8980_s10 + $0x560] sm:$0xff] }
 0x438   :  { %5517 = vmatprep.subr.bf16.mxu0 %v5516_v1  ;;  %v2242_v1 = vld [vmem:[%s8980_s10 + $0x570] sm:$0xff] }
 0x439   :  { %v5534_v35 = vpack.c.bf16 %v2242_v1, %v2240_v15  ;;  %v3232_v15 = vld [vmem:[%s8983_s13 + $0x288] sm:$0xff]  ;;  %v2394_v1 = vrot.slane %v7292_v55, 1  ;;  %v3233_v55 = vld [vmem:[%s8983_s13 + $0x290] sm:$0xff] }
 0x43a   :  { %2754 = vmatmul.mubr.f32.gmra.mrb[30].mxu0 %v7427_v58 }
 0x43b   :  { %5519 = vmatpush1.bf16.msra.mxu0 %v5518_v38  ;;  %2759 = vmatprep.mubr.f32.mxu0 %v7462_v13  ;;  %v2246_v38 = vld [vmem:[%s8980_s10 + $0x590] sm:$0xff]  ;;  %v2395_v47 = vsel %vm205_vm3, %v2393_v62, %v2394_v1  ;;  %v2404_v62 = vrot.slane %v7355_v49, 1 }
 0x43c   :  { %5521 = vmatprep.subr.bf16.mxu0 %v5520_v20  ;;  %v2249_v20 = vld [vmem:[%s8980_s10 + $0x5a8] sm:$0xff]  ;;  %v5538_v3 = vpack.c.bf16 %v2246_v38, %v2244_v6  ;;  %v2391_v38 = vrot.slane %v7281_v41, 1 }
 0x43d   :  { %v5540_v5 = vpack.c.bf16 %v2251_v33, %v2249_v20  ;;  %v3216_v6 = vld [vmem:[%s8983_s13 + $0x208] sm:$0xff]  ;;  %v3234_v20 = vld [vmem:[%s8983_s13 + $0x298] sm:$0xff]  ;;  %v2398_v33 = vrot.slane %v7317_v60, 1 }
 0x43e   :  { %2760 = vmatmul.mubr.f32.gmra.mrb[32].mxu0 %v7460_v39  ;;  %v5620_v41 = vpack.c.bf16 %v3234_v20, %v3233_v55  ;;  %v3236_v60 = vld [vmem:[%s8983_s13 + $0x2a8] sm:$0xff]  ;;  %v2414_v20 = vrot.slane %v7413_v16, 1 }
 0x43f   :  { %5523 = vmatpush1.bf16.msra.mxu0 %v5522_v29  ;;  %2765 = vmatprep.mubr.f32.mxu0 %v7487_v18  ;;  %v2250_v29 = vld [vmem:[%s8980_s10 + $0x5b0] sm:$0xff] }
 0x440   :  { %5525 = vmatprep.subr.bf16.mxu0 %v5524_v14  ;;  %v2253_v14 = vld [vmem:[%s8980_s10 + $0x5c8] sm:$0xff]  ;;  %v5542_v54 = vpack.c.bf16 %v2250_v29, %v2248_v23  ;;  %v3217_v23 = vld [vmem:[%s8983_s13 + $0x210] sm:$0xff]  ;;  %v3218_v29 = vld [vmem:[%s8983_s13 + $0x218] sm:$0xff] }
 0x441   :  { %v5544_v36 = vpack.c.bf16 %v2255_v32, %v2253_v14  ;;  %v2396_v32 = vrot.slane %v7307_v31, 1  ;;  %v3219_v31 = vld [vmem:[%s8983_s13 + $0x220] sm:$0xff] }
 0x442   :  { %2766 = vmatmul.mubr.f32.gmra.mrb[34].mxu0 %v7475_v24 }
 0x443   :  { %5527 = vmatpush1.bf16.msra.mxu0 %v5526_v40  ;;  %2771 = vmatprep.mubr.f32.mxu0 %v7512_v28  ;;  %v2254_v40 = vld [vmem:[%s8980_s10 + $0x5d0] sm:$0xff] }
 0x444   :  { %5529 = vmatprep.subr.bf16.mxu0 %v5528_v56  ;;  %v2257_v56 = vld [vmem:[%s8980_s10 + $0x5e8] sm:$0xff]  ;;  %v5546_v44 = vpack.c.bf16 %v2254_v40, %v2252_v4  ;;  %v5622_v4 = vpack.c.bf16 %v3218_v29, %v3217_v23  ;;  %v2420_v29 = vrot.slane %v7460_v39, 1 }
 0x445   :  { %v5548_v37 = vpack.c.bf16 %v2259_v57, %v2257_v56  ;;  %v3220_v56 = vld [vmem:[%s8983_s13 + $0x228] sm:$0xff]  ;;  %v2397_v57 = vsel %vm205_vm3, %v2391_v38, %v2396_v32 }
 0x446   :  { %2772 = vmatmul.mubr.f32.gmra.mrb[36].mxu0 %v7502_v43 }
 0x447   :  { %5531 = vmatpush1.bf16.msra.mxu0 %v5530_v53  ;;  %2777 = vmatprep.mubr.f32.mxu0 %v7536_v21  ;;  %v2258_v53 = vld [vmem:[%s8980_s10 + $0x5f0] sm:$0xff]  ;;  %s6115_s10 = smov [#allocation10]  }
 0x448   :  { %5533 = vmatprep.subr.bf16.mxu0 %v5532_v30  ;;  %v3231_v30 = vld [vmem:[%s8983_s13 + $0x280] sm:$0xff]  ;;  %v5550_v27 = vpack.c.bf16 %v2258_v53, %v2256_v12  ;;  %v2406_v53 = vrot.slane %v7365_v7, 1  ;;  %s4707_s7 = sshll.u32 %s6115_s10, 4  ;;  %s4708_s7 = int_to_ptr.vmem [resolvable:$true] %s4707_s7 }
 0x449   :  { %s6072_s25 = scalar_lea.vmem %s4708_s7, 32  ;;  %p6077_p5 = scmp.lt.s32.totalorder %s4708_s7, %s4708_s7 }
 0x44a   :  { %2778 = vmatmul.mubr.f32.gmra.mrb[38].mxu0 %v7526_v52  ;;  %p6073_p4 = scmp.ne.s32.totalorder %s4708_s7, %s6072_s25  ;;  %p6078_p6 = scmp.lt.s32.totalorder %s6072_s25, %s6072_s25 }
 0x44b   :  { %5535 = vmatpush1.bf16.msra.mxu0 %v5534_v35  ;;  %2783 = vmatprep.mubr.f32.mxu0 %v7560_v42  ;;  %v5616_v35 = vpack.c.bf16 %v3232_v15, %v3231_v30  ;;  %v5626_v30 = vpack.c.bf16 %v3220_v56, %v3219_v31 }
 0x44c   :  { %5537 = vmatprep.subr.bf16.mxu0 %v5536_v9  ;;  %v3215_v9 = vld [vmem:[%s8983_s13 + $0x200] sm:$0xff]  ;;  %p6079_p7 = por %p6078_p6, %p6077_p5 }
 0x44e   :  { %2784 = vmatmul.mubr.f32.gmra.mrb[40].mxu0 %v7550_v51  ;;  %p6080_p8 = pnand %p6079_p7, %p6073_p4 }
 0x44f   :  { %5539 = vmatpush1.bf16.msra.mxu0 %v5538_v3  ;;  %2789 = vmatprep.mubr.f32.mxu0 %v7584_v2  ;;  %v2390_v3 = vrot.slane %v7271_v25, 1  ;;  %v3235_v25 = vld [vmem:[%s8983_s13 + $0x2a0] sm:$0xff] }
 0x450   :  { %5541 = vmatprep.subr.bf16.mxu0 %v5540_v5  ;;  %v5618_v5 = vpack.c.bf16 %v3216_v6, %v3215_v9  ;;  %v5624_v40 = vpack.c.bf16 %v3236_v60, %v3235_v25  ;;  %v2430_v25 = vrot.slane %v7526_v52, 1  ;;  %v2436_v60 = vrot.slane %v7560_v42, 1 }
 0x451   :  { %v2392_v14 = vsel %vm205_vm3, %v2390_v3, %v2391_v38  ;;  %v2408_v38 = vrot.slane %v7379_v17, 1  ;;  %v2416_v17 = vrot.slane %v7427_v58, 1  ;;  %v2428_v58 = vrot.slane %v7512_v28, 1 }
 0x452   :  { %2790 = vmatmul.mubr.f32.gmra.mrb[42].mxu0 %v7574_v10  ;;  %v2438_v52 = vrot.slane %v7574_v10, 1  ;;  %v2444_v42 = vrot.slane %v7608_v26, 1  ;;  %v2446_v10 = vrot.slane %v7620_v34, 1 }
 0x453   :  { %5543 = vmatpush1.bf16.msra.mxu0 %v5542_v54  ;;  %2795 = vmatprep.mubr.f32.mxu0 %v7608_v26  ;;  %v2399_v54 = vsel %vm205_vm3, %v2394_v1, %v2398_v33  ;;  %v3222_v1 = vld [vmem:[%s8983_s13 + $0x238] sm:$0xff]  ;;  %v2409_v49 = vsel %vm205_vm3, %v2404_v62, %v2408_v38 }
 0x454   :  { %5545 = vmatprep.subr.bf16.mxu0 %v5544_v36  ;;  %v2402_v36 = vrot.slane %v7341_v46, 1  ;;  %v3237_v46 = vld [vmem:[%s8983_s13 + $0x2b0] sm:$0xff] }
 0x456   :  { %2796 = vmatmul.mubr.f32.gmra.mrb[44].mxu0 %v7598_v8  ;;  %v2403_v12 = vsel %vm205_vm3, %v2398_v33, %v2402_v36  ;;  %v2407_v7 = vsel %vm205_vm3, %v2402_v36, %v2406_v53  ;;  %v2418_v33 = vrot.slane %v7437_v11, 1  ;;  %v2421_v11 = vrot.slane %v7475_v24, 1 }
 0x457   :  { %5547 = vmatpush1.bf16.msra.mxu0 %v5546_v44  ;;  %2801 = vmatprep.mubr.f32.mxu0 %v7629_v63  ;;  %v2400_v44 = vrot.slane %v7331_v22, 1  ;;  %v3221_v22 = vld [vmem:[%s8983_s13 + $0x230] sm:$0xff] }
 0x458   :  { %5549 = vmatprep.subr.bf16.mxu0 %v5548_v37  ;;  %v3238_v37 = vld [vmem:[%s8983_s13 + $0x2b8] sm:$0xff]  ;;  %v5630_v9 = vpack.c.bf16 %v3222_v1, %v3221_v22  ;;  %v3241_v1 = vld [vmem:[%s8983_s13 + $0x2d0] sm:$0xff] }
 0x459   :  { %v5628_v15 = vpack.c.bf16 %v3238_v37, %v3237_v46  ;;  %v2405_v6 = vsel %vm205_vm3, %v2400_v44, %v2404_v62  ;;  %v3224_v46 = vld [vmem:[%s8983_s13 + $0x248] sm:$0xff]  ;;  %v3166_v22 = vld [vmem:[%s8983_s13 + $0x78] sm:$0xff] }
 0x45a   :  { %2802 = vmatmul.mubr.f32.gmra.mrb[46].mxu0 %v7620_v34  ;;  %v3223_v34 = vld [vmem:[%s8983_s13 + $0x240] sm:$0xff] }
 0x45b   :  { %5551 = vmatpush1.bf16.msra.mxu0 %v5550_v27  ;;  %2872 = vmatprep.mubr.f32.mxu0 %v2395_v47  ;;  %v2401_v27 = vsel %vm205_vm3, %v2396_v32, %v2400_v44  ;;  %v2412_v47 = vrot.slane %v7403_v50, 1  ;;  %v2423_v50 = vrot.slane %v7462_v13, 1  ;;  %v2426_v32 = vrot.slane %v7502_v43, 1 }
 0x45c   :  { %5617 = vmatprep.subr.bf16.mxu0 %v5616_v35  ;;  %v2410_v35 = vrot.slane %v7389_v19, 1  ;;  %v2432_v13 = vrot.slane %v7536_v21, 1  ;;  %v2434_v43 = vrot.slane %v7550_v51, 1  ;;  %v2440_v21 = vrot.slane %v7584_v2, 1 }
 0x45d   :  { %v2413_v3 = vsel %vm205_vm3, %v2408_v38, %v2412_v47  ;;  %v2417_v16 = vsel %vm205_vm3, %v2412_v47, %v2416_v17  ;;  %v2427_v24 = vsel %vm205_vm3, %v2421_v11, %v2426_v32  ;;  %v2431_v39 = vsel %vm205_vm3, %v2426_v32, %v2430_v25  ;;  %v3243_v38 = vld [vmem:[%s8983_s13 + $0x2e0] sm:$0xff]  ;;  %v3228_v47 = vld [vmem:[%s8983_s13 + $0x268] sm:$0xff] }
 0x45e   :  { %2873 = vmatmul.mubr.f32.vlgmr.msra.gmra.mrb[16].mxu0 %v2392_v14  ;;  %v2411_v55 = vsel %vm205_vm3, %v2406_v53, %v2410_v35  ;;  %v2415_v19 = vsel %vm205_vm3, %v2410_v35, %v2414_v20  ;;  %v2422_v14 = vsel %vm205_vm3, %v2420_v29, %v2421_v11  ;;  %v2433_v28 = vsel %vm205_vm3, %v2428_v58, %v2432_v13  ;;  %v3182_v53 = vld [vmem:[%s8983_s13 + $0xf8] sm:$0xff]  ;;  %v3225_v35 = vld [vmem:[%s8983_s13 + $0x250] sm:$0xff]  ;;  %v2261_v29 = vld [vmem:[%s8982_s12] sm:$0x3] }
 0x45f   :  { %2878 = vmatprep.mubr.f32.mxu0 %v2399_v54  ;;  %5619 = vmatpush3.bf16.msra.mxu0 %v5618_v5  ;;  %v2419_v5 = vsel %vm205_vm3, %v2414_v20, %v2418_v33  ;;  %v2437_v54 = vsel %vm205_vm3, %v2432_v13, %v2436_v60  ;;  %v2435_v36 = vsel %vm205_vm3, %v2430_v25, %v2434_v43  ;;  %v2442_v51 = vrot.slane %v7598_v8, 1  ;;  %v3239_v8 = vld [vmem:[%s8983_s13 + $0x2c0] sm:$0xff]  ;;  %v8144_v13 = vld [vmem:[%s8983_s13 + $0x190] sm:$0xff] }
 0x460   :  { %5621 = vmatprep.subr.bf16.mxu0 %v5620_v41  ;;  %v2424_v41 = vrot.slane %v7487_v18, 1  ;;  %v2445_v31 = vsel %vm205_vm3, %v2440_v21, %v2444_v42  ;;  %v2448_v2 = vrot.slane %v7629_v63, 1  ;;  %v3240_v63 = vld [vmem:[%s8983_s13 + $0x2c8] sm:$0xff]  ;;  %v5634_v37 = vpack.c.bf16 %v3224_v46, %v3223_v34  ;;  %v3227_v20 = vld [vmem:[%s8983_s13 + $0x260] sm:$0xff]  ;;  %v8239_v46 = vld [vmem:[%s8983_s13 + $0x1d0] sm:$0xff] }
 0x461   :  { %v2443_v56 = vsel %vm205_vm3, %v2438_v52, %v2442_v51  ;;  %v2447_v26 = vsel %vm205_vm3, %v2442_v51, %v2446_v10  ;;  %v5632_v44 = vpack.c.bf16 %v3240_v63, %v3239_v8  ;;  %v8134_v32 = vld [vmem:[%s8983_s13 + $0x100] sm:$0xff]  ;;  %v8203_v51 = vld [vmem:[%s8983_s13 + $0x130] sm:$0xff] }
 0x462   :  { %2879 = vmatmul.mubr.f32.gmra.mrb[18].mxu0 %v2397_v57  ;;  %v2425_v23 = vsel %vm205_vm3, %v2423_v50, %v2424_v41  ;;  %v2429_v18 = vsel %vm205_vm3, %v2424_v41, %v2428_v58  ;;  %v2449_v57 = vsel %vm205_vm3, %v2444_v42, %v2448_v2  ;;  %v3229_v41 = vld [vmem:[%s8983_s13 + $0x270] sm:$0xff]  ;;  %v3230_v50 = vld [vmem:[%s8983_s13 + $0x278] sm:$0xff]  ;;  %v2260_v58 = vld [vmem:[%s8981_s11] sm:$0x3]  ;;  %v8193_v42 = vrot.slane %v2261_v29, %v7236_v61 }
 0x463   :  { %2884 = vmatprep.mubr.f32.mxu0 %v2403_v12  ;;  %5623 = vmatpush3.bf16.msra.mxu0 %v5622_v4  ;;  %v2441_v4 = vsel %vm205_vm3, %v2436_v60, %v2440_v21  ;;  %v3181_v12 = vld [vmem:[%s8983_s13 + $0xf0] sm:$0xff]  ;;  %v8152_v25 = vrot.slane %v2260_v58, %v7236_v61  ;;  %v8162_v60 = vld [vmem:[%s8983_s13 + $0x118] sm:$0xff]  ;;  %v8180_v21 = vld [vmem:[%s8983_s13 + $0x120] sm:$0xff] }
 0x464   :  { %5625 = vmatprep.subr.bf16.mxu0 %v5624_v40  ;;  %v2439_v40 = vsel %vm205_vm3, %v2434_v43, %v2438_v52  ;;  %v8172_v43 = vld [vmem:[%s8983_s13 + $0x1a8] sm:$0xff]  ;;  %v8190_v52 = vld [vmem:[%s8983_s13 + $0x1b0] sm:$0xff] }
 0x466   :  { %2885 = vmatmul.mubr.f32.gmra.mrb[20].mxu0 %v2401_v27  ;;  %v3242_v27 = vld [vmem:[%s8983_s13 + $0x2d8] sm:$0xff] }
 0x467   :  { %2890 = vmatprep.mubr.f32.mxu0 %v2407_v7  ;;  %5627 = vmatpush3.bf16.msra.mxu0 %v5626_v30  ;;  %v3165_v30 = vld [vmem:[%s8983_s13 + $0x70] sm:$0xff]  ;;  %v5636_v7 = vpack.c.bf16 %v3242_v27, %v3241_v1  ;;  %v8261_v1 = vld [vmem:[%s8983_s13 + $0x158] sm:$0xff]  ;;  %v8266_v27 = vld [vmem:[%s8983_s13 + $0x1e0] sm:$0xff] }
 0x468   :  { %5629 = vmatprep.subr.bf16.mxu0 %v5628_v15  ;;  %v5580_v15 = vpack.c.bf16 %v3182_v53, %v3181_v12  ;;  %v5582_v62 = vpack.c.bf16 %v3166_v22, %v3165_v30  ;;  %v8256_v22 = vld [vmem:[%s8983_s13 + $0x150] sm:$0xff] }
 0x46a   :  { %2891 = vmatmul.mubr.f32.gmra.mrb[22].mxu0 %v2405_v6  ;;  %5581 = vmatprep.subr.bf16.mxu1 %v5580_v15 }
 0x46b   :  { %2896 = vmatprep.mubr.f32.mxu0 %v2411_v55  ;;  %5631 = vmatpush3.bf16.msra.mxu0 %v5630_v9  ;;  %v3226_v9 = vld [vmem:[%s8983_s13 + $0x258] sm:$0xff]  ;;  %v3244_v55 = vld [vmem:[%s8983_s13 + $0x2e8] sm:$0xff] }
 0x46c   :  { %5633 = vmatprep.subr.bf16.mxu0 %v5632_v44  ;;  %v5638_v6 = vpack.c.bf16 %v3226_v9, %v3225_v35  ;;  %5583 = vmatpush3.bf16.msra.mxu1 %v5582_v62  ;;  %v8234_v44 = vld [vmem:[%s8983_s13 + $0x148] sm:$0xff] }
 0x46e   :  { %2897 = vmatmul.mubr.f32.gmra.mrb[24].mxu0 %v2409_v49  ;;  %v5640_v49 = vpack.c.bf16 %v3244_v55, %v3243_v38  ;;  %v8278_v38 = vld [vmem:[%s8983_s13 + $0x1e8] sm:$0xff]  ;;  %v8283_v55 = vld [vmem:[%s8983_s13 + $0x160] sm:$0xff] }
 0x46f   :  { %2902 = vmatprep.mubr.f32.mxu0 %v2415_v19  ;;  %5635 = vmatpush3.bf16.msra.mxu0 %v5634_v37  ;;  %v5642_v19 = vpack.c.bf16 %v3228_v47, %v3227_v20  ;;  %v8244_v37 = vld [vmem:[%s8983_s13 + $0x1d8] sm:$0xff]  ;;  %v8288_v20 = vld [vmem:[%s8983_s13 + $0x168] sm:$0xff] }
 0x470   :  { %5637 = vmatprep.subr.bf16.mxu0 %v5636_v7 }
 0x472   :  { %2903 = vmatmul.mubr.f32.gmra.mrb[26].mxu0 %v2413_v3  ;;  %v3200_v3 = vld [vmem:[%s8983_s13 + $0x188] sm:$0xff] }
 0x473   :  { %2908 = vmatprep.mubr.f32.mxu0 %v2419_v5  ;;  %5639 = vmatpush3.bf16.msra.mxu0 %v5638_v6  ;;  %v3245_v5 = vld [vmem:[%s8983_s13 + $0x2f0] sm:$0xff] }
 0x474   :  { %5641 = vmatprep.subr.bf16.mxu0 %v5640_v49 }
 0x476   :  { %2909 = vmatmul.mubr.f32.gmra.mrb[28].mxu0 %v2417_v16  ;;  %v3246_v16 = vld [vmem:[%s8983_s13 + $0x2f8] sm:$0xff] }
 0x477   :  { %4803 = vmatprep.mubr.msk.f32.mxu0 %vm205_vm3, %v2418_v33  ;;  %v3199_v33 = vld [vmem:[%s8983_s13 + $0x180] sm:$0xff]  ;;  %5643 = vmatpush3.bf16.msra.mxu0 %v5642_v19  ;;  %v5644_v11 = vpack.c.bf16 %v3246_v16, %v3245_v5 }
 0x479   :  { %5645 = vmatprep.subr.bf16.mxu0 %v5644_v11 }
 0x47a   :  { %4804 = vmatmul.mubr.msk.f32.gmra.mrb[30].mxu0 %vm205_vm3, %v2416_v17  ;;  %v5584_v17 = vpack.c.bf16 %v3200_v3, %v3199_v33  ;;  %v8296_v3 = vld [vmem:[%s8983_s13 + $0x1f0] sm:$0xff] }
 0x47b   :  { %2920 = vmatprep.mubr.f32.mxu0 %v2425_v23  ;;  %v5646_v23 = vpack.c.bf16 %v3230_v50, %v3229_v41 }
 0x47c   :  { %5585 = vmatprep.subr.bf16.mxu1 %v5584_v17  ;;  %v8301_v17 = vld [vmem:[%s8983_s13 + $0x1f8] sm:$0xff] }
 0x47d   :  { %5647 = vmatpush3.bf16.msra.mxu0 %v5646_v23 }
 0x47e   :  { %2921 = vmatmul.mubr.f32.gmra.mrb[32].mxu0 %v2422_v14  ;;  %v8129_v14 = vrot.slane %v2260_v58, %v7230_v0 }
 0x47f   :  { %2926 = vmatprep.mubr.f32.mxu0 %v2429_v18  ;;  %v8139_v18 = vld [vmem:[%s8983_s13 + $0x108] sm:$0xff] }
 0x480   :  { %v5586_v63 = vpack.c.bf16 %v8139_v18, %v8134_v32 }
 0x482   :  { %2927 = vmatmul.mubr.f32.gmra.mrb[34].mxu0 %v2427_v24  ;;  %v8149_v24 = vld [vmem:[%s8983_s13 + $0x198] sm:$0xff] }
 0x483   :  { %2932 = vmatprep.mubr.f32.mxu0 %v2433_v28  ;;  %v8157_v28 = vld [vmem:[%s8983_s13 + $0x110] sm:$0xff]  ;;  %v5588_v34 = vpack.c.bf16 %v8149_v24, %v8144_v13 }
 0x484   :  { %v5590_v53 = vpack.c.bf16 %v8162_v60, %v8157_v28 }
 0x486   :  { %2933 = vmatmul.mubr.f32.gmra.mrb[36].mxu0 %v2431_v39  ;;  %v8167_v39 = vld [vmem:[%s8983_s13 + $0x1a0] sm:$0xff] }
 0x487   :  { %2938 = vmatprep.mubr.f32.mxu0 %v2437_v54  ;;  %v8175_v54 = vrot.slane %v2261_v29, %v7230_v0  ;;  %v5592_v30 = vpack.c.bf16 %v8172_v43, %v8167_v39  ;;  %v8388_v39 = vld [vmem:[%s8983_s13 + $0x178] sm:$0xff] }
 0x48a   :  { %2939 = vmatmul.mubr.f32.gmra.mrb[38].mxu0 %v2435_v36  ;;  %v8185_v36 = vld [vmem:[%s8983_s13 + $0x128] sm:$0xff] }
 0x48b   :  { %2944 = vmatprep.mubr.f32.mxu0 %v2441_v4  ;;  %v5594_v15 = vpack.c.bf16 %v8185_v36, %v8180_v21 }
 0x48e   :  { %2945 = vmatmul.mubr.f32.gmra.mrb[40].mxu0 %v2439_v40  ;;  %v8198_v40 = vld [vmem:[%s8983_s13 + $0x1b8] sm:$0xff] }
 0x48f   :  { %2950 = vmatprep.mubr.f32.mxu0 %v2445_v31  ;;  %v8208_v31 = vld [vmem:[%s8983_s13 + $0x138] sm:$0xff] }
 0x492   :  { %2951 = vmatmul.mubr.f32.gmra.mrb[42].mxu0 %v2443_v56 }
 0x493   :  { %2956 = vmatprep.mubr.f32.mxu0 %v2449_v57  ;;  %v8219_v57 = vld [vmem:[%s8983_s13 + $0x1c8] sm:$0xff] }
 0x496   :  { %2957 = vmatmul.mubr.f32.gmra.mrb[44].mxu0 %v2447_v26  ;;  %v8224_v26 = vld [vmem:[%s8983_s13 + $0x140] sm:$0xff] }
 0x497   :  { %4805 = vmatprep.mubr.msk.f32.mxu0 %vm205_vm3, %v2448_v2 }
 0x49a   :  { %4806 = vmatmul.mubr.msk.f32.gmra.mrb[46].mxu0 %vm205_vm3, %v2446_v10  ;;  %v8214_v10 = vld [vmem:[%s8983_s13 + $0x1c0] sm:$0xff] }
 0x531   :  { %v2874_v4 = vpop.f32.mrb[16].mxu0 }
 0x532   :  { %v2980_v2 = vmul.f32 %v8129_v14, %v2874_v4  ;;  %v2876_v56 = vpop.f32.mrb[17].mxu0 }
 0x533   :  { %v2981_v8 = vmul.f32 %v8152_v25, %v2876_v56 }
 0x534   :  { %v3023_v12 = vadd.f32 %v8175_v54, %v2980_v2 }
 0x535   :  { %v3024_v62 = vadd.f32 %v8193_v42, %v2981_v8  ;;  %v2880_v7 = vpop.f32.mrb[18].mxu0 }
 0x536   :  { %vm3055_vm8 = vcmp.gt.f32.partialorder %v3023_v12, 0.0  ;;  %v3087_v49 = vmul.f32 0.01, %v3023_v12  ;;  %v2982_v47 = vmul.f32 %v8129_v14, %v2880_v7  ;;  %v2882_v19 = vpop.f32.mrb[19].mxu0 }
 0x537   :  { %vm3056_vm10 = vcmp.gt.f32.partialorder %v3024_v62, 0.0  ;;  %v3088_v5 = vmul.f32 0.01, %v3024_v62  ;;  %v2983_v16 = vmul.f32 %v8152_v25, %v2882_v19 }
 0x538   :  { %v8306_v50 = vsel %vm3055_vm8, %v3023_v12, %v3087_v49  ;;  %v3025_v11 = vadd.f32 %v8175_v54, %v2982_v47 }
 0x539   :  { %v8313_v29 = vsel %vm3056_vm10, %v3024_v62, %v3088_v5  ;;  %v3026_v4 = vadd.f32 %v8193_v42, %v2983_v16  ;;  %v2886_v2 = vpop.f32.mrb[20].mxu0  ;;  %v3281_v19 = vrot.slane %v8306_v50, 7  ;;  %v3377_v16 = vrot.slane %v8306_v50, 1 }
 0x53a   :  { %vm3057_vm11 = vcmp.gt.f32.partialorder %v3025_v11, 0.0  ;;  %v3089_v12 = vmul.f32 0.01, %v3025_v11  ;;  %v2984_v7 = vmul.f32 %v8129_v14, %v2886_v2  ;;  %v2888_v49 = vpop.f32.mrb[21].mxu0  ;;  %v3282_v47 = vrot.slane %v8313_v29, 7 }
 0x53b   :  { %vm3058_vm12 = vcmp.gt.f32.partialorder %v3026_v4, 0.0  ;;  %v3090_v62 = vmul.f32 0.01, %v3026_v4  ;;  %v2985_v5 = vmul.f32 %v8152_v25, %v2888_v49  ;;  %v3380_v2 = vrot.slane %v8313_v29, 1 }
 0x53c   :  { %v8325_v48 = vsel %vm3057_vm11, %v3025_v11, %v3089_v12  ;;  %v3027_v56 = vadd.f32 %v8175_v54, %v2984_v7  ;;  %4808 = vmatprep.mubr.msk.f32.mxu1 %vm6880_vm9, %v3282_v47 }
 0x53d   :  { %v3378_v8 = vrot.slane %v8325_v48, 1  ;;  %v8332_v58 = vsel %vm3058_vm12, %v3026_v4, %v3090_v62  ;;  %v3028_v23 = vadd.f32 %v8193_v42, %v2985_v5  ;;  %v2892_v41 = vpop.f32.mrb[22].mxu0  ;;  %4810 = vmatmul.mubr.msk.f32.vlgmr.msra.gmra.mrb[80].mxu1 %vm6880_vm9, %v3281_v19  ;;  %v3283_v11 = vrot.slane %v8325_v48, 7 }
 0x53e   :  { %vm3059_vm13 = vcmp.gt.f32.partialorder %v3027_v56, 0.0  ;;  %v3091_v12 = vmul.f32 0.01, %v3027_v56  ;;  %v2986_v7 = vmul.f32 %v8129_v14, %v2892_v41  ;;  %v2894_v49 = vpop.f32.mrb[23].mxu0  ;;  %5587 = vmatpush3.bf16.msra.mxu1 %v5586_v63  ;;  %v3285_v4 = vrot.slane %v8332_v58, 7 }
 0x53f   :  { %vm3060_vm14 = vcmp.gt.f32.partialorder %v3028_v23, 0.0  ;;  %v3092_v62 = vmul.f32 0.01, %v3028_v23  ;;  %v2987_v5 = vmul.f32 %v8152_v25, %v2894_v49  ;;  %v3381_v33 = vrot.slane %v8332_v58, 1  ;;  %5589 = vmatprep.subr.bf16.mxu1 %v5588_v34 }
 0x540   :  { %v8348_v6 = vsel %vm3059_vm13, %v3027_v56, %v3091_v12  ;;  %v3029_v41 = vadd.f32 %v8175_v54, %v2986_v7  ;;  %v3286_v9 = vsel %vm170_vm1, %v3282_v47, %v3285_v4  ;;  %v3284_v32 = vsel %vm170_vm1, %v3281_v19, %v3283_v11 }
 0x541   :  { %v8353_v18 = vsel %vm3060_vm14, %v3028_v23, %v3092_v62  ;;  %v3030_v63 = vadd.f32 %v8193_v42, %v2987_v5  ;;  %v2898_v35 = vpop.f32.mrb[24].mxu0  ;;  %3542 = vmatprep.mubr.f32.mxu1 %v3286_v9  ;;  %v3382_v49 = vsel %vm205_vm3, %v3380_v2, %v3381_v33  ;;  %v3379_v13 = vsel %vm205_vm3, %v3377_v16, %v3378_v8 }
 0x542   :  { %vm3061_vm15 = vcmp.gt.f32.partialorder %v3029_v41, 0.0  ;;  %v3093_v24 = vmul.f32 0.01, %v3029_v41  ;;  %v2988_v34 = vmul.f32 %v8129_v14, %v2898_v35  ;;  %3827 = vmatprep.mubr.f32.mxu0 %v3382_v49  ;;  %v2900_v56 = vpop.f32.mrb[25].mxu0  ;;  %3543 = vmatmul.mubr.f32.gmra.mrb[82].mxu1 %v3284_v32  ;;  %v3289_v23 = vrot.slane %v8353_v18, 7 }
 0x543   :  { %vm3062_vm0 = vcmp.gt.f32.partialorder %v3030_v63, 0.0  ;;  %v3094_v47 = vmul.f32 0.01, %v3030_v63  ;;  %v2989_v19 = vmul.f32 %v8152_v25, %v2900_v56  ;;  %3828 = vmatmul.mubr.f32.vlgmr.msra.gmra.mrb[48].mxu0 %v3379_v13  ;;  %v3385_v9 = vrot.slane %v8353_v18, 1  ;;  %5591 = vmatpush3.bf16.msra.mxu1 %v5590_v53  ;;  %v8383_v53 = vld [vmem:[%s8983_s13 + $0x170] sm:$0xff] }
 0x544   :  { %v8367_v16 = vsel %vm3061_vm15, %v3029_v41, %v3093_v24  ;;  %v3031_v35 = vadd.f32 %v8175_v54, %v2988_v34  ;;  %v3290_v2 = vsel %vm170_vm1, %v3285_v4, %v3289_v23  ;;  %v3287_v12 = vrot.slane %v8348_v6, 7  ;;  %5593 = vmatprep.subr.bf16.mxu1 %v5592_v30 }
 0x545   :  { %v8375_v7 = vsel %vm3062_vm0, %v3030_v63, %v3094_v47  ;;  %v3032_v62 = vadd.f32 %v8193_v42, %v2989_v19  ;;  %v2904_v5 = vpop.f32.mrb[26].mxu0  ;;  %3547 = vmatprep.mubr.f32.mxu1 %v3290_v2  ;;  %v3386_v28 = vsel %vm205_vm3, %v3381_v33, %v3385_v9  ;;  %v3383_v60 = vrot.slane %v8348_v6, 1 }
 0x546   :  { %vm3063_vm2 = vcmp.gt.f32.partialorder %v3031_v35, 0.0  ;;  %v3095_v43 = vmul.f32 0.01, %v3031_v35  ;;  %v2990_v30 = vmul.f32 %v8129_v14, %v2904_v5  ;;  %3832 = vmatprep.mubr.f32.mxu0 %v3386_v28  ;;  %v2906_v4 = vpop.f32.mrb[27].mxu0  ;;  %v3288_v33 = vsel %vm170_vm1, %v3283_v11, %v3287_v12 }
 0x547   :  { %vm3064_vm4 = vcmp.gt.f32.partialorder %v3032_v62, 0.0  ;;  %v3096_v41 = vmul.f32 0.01, %v3032_v62  ;;  %v2991_v32 = vmul.f32 %v8152_v25, %v2906_v4  ;;  %3548 = vmatmul.mubr.f32.gmra.mrb[84].mxu1 %v3288_v33  ;;  %v3384_v63 = vsel %vm205_vm3, %v3378_v8, %v3383_v60 }
 0x548   :  { %v3033_v49 = vadd.f32 %v8175_v54, %v2990_v30  ;;  %3833 = vmatmul.mubr.f32.gmra.mrb[50].mxu0 %v3384_v63  ;;  %v3293_v13 = vrot.slane %v8375_v7, 7  ;;  %v3389_v24 = vrot.slane %v8375_v7, 1  ;;  %5595 = vmatpush3.bf16.msra.mxu1 %v5594_v15  ;;  %v5614_v11 = vpack.c.bf16 %v8388_v39, %v8383_v53 }
 0x549   :  { %v8405_v34 = vsel %vm3063_vm2, %v3031_v35, %v3095_v43  ;;  %v3034_v56 = vadd.f32 %v8193_v42, %v2991_v32  ;;  %v2910_v8 = vpop.f32.mrb[28].mxu0  ;;  %v3291_v47 = vrot.slane %v8367_v16, 7  ;;  %v3387_v19 = vrot.slane %v8367_v16, 1 }
 0x54a   :  { %v9026_v2 = vpack.c.bf16 %v8198_v40, %v8190_v52  ;;  %v8414_v21 = vsel %vm3064_vm4, %v3032_v62, %v3096_v41  ;;  %vm3065_vm5 = vcmp.gt.f32.partialorder %v3033_v49, 0.0  ;;  %v2992_v36 = vmul.f32 %v8129_v14, %v2910_v8  ;;  %v2912_v35 = vpop.f32.mrb[29].mxu0 }
 0x54b   :  { %v3294_v15 = vsel %vm170_vm1, %v3289_v23, %v3293_v13  ;;  %vm3066_vm7 = vcmp.gt.f32.partialorder %v3034_v56, 0.0  ;;  %v3098_v5 = vmul.f32 0.01, %v3034_v56  ;;  %v3390_v28 = vsel %vm205_vm3, %v3385_v9, %v3389_v24 }
 0x54c   :  { %5597 = vmatprep.subr.bf16.mxu1 %v9026_v2  ;;  %3552 = vmatprep.mubr.f32.mxu1 %v3294_v15  ;;  %v2993_v43 = vmul.f32 %v8152_v25, %v2912_v35  ;;  %v3097_v30 = vmul.f32 0.01, %v3033_v49  ;;  %v3035_v52 = vadd.f32 %v8175_v54, %v2992_v36  ;;  %v3292_v40 = vsel %vm170_vm1, %v3287_v12, %v3291_v47 }
 0x54d   :  { %3837 = vmatprep.mubr.f32.mxu0 %v3390_v28  ;;  %v3388_v62 = vsel %vm205_vm3, %v3383_v60, %v3387_v19  ;;  %v8423_v4 = vsel %vm3066_vm7, %v3034_v56, %v3098_v5  ;;  %3553 = vmatmul.mubr.f32.gmra.mrb[86].mxu1 %v3292_v40  ;;  %v2916_v33 = vpop.f32.mrb[30].mxu0  ;;  %v3297_v41 = vrot.slane %v8414_v21, 7  ;;  %v3393_v9 = vrot.slane %v8414_v21, 1 }
 0x54e   :  { %v3036_v23 = vadd.f32 %v8193_v42, %v2993_v43  ;;  %3838 = vmatmul.mubr.f32.gmra.mrb[52].mxu0 %v3388_v62  ;;  %vm3067_vm8 = vcmp.gt.f32.partialorder %v3035_v52, 0.0  ;;  %v3099_v32 = vmul.f32 0.01, %v3035_v52  ;;  %v2994_v63 = vmul.f32 %v8129_v14, %v2916_v33  ;;  %v2918_v8 = vpop.f32.mrb[31].mxu0 }
 0x54f   :  { %v3295_v12 = vrot.slane %v8405_v34, 7  ;;  %v9027_v60 = vpack.c.bf16 %v8208_v31, %v8203_v51  ;;  %v3298_v2 = vsel %vm170_vm1, %v3293_v13, %v3297_v41  ;;  %v3394_v36 = vsel %vm205_vm3, %v3389_v24, %v3393_v9 }
 0x550   :  { %vm3068_vm10 = vcmp.gt.f32.partialorder %v3036_v23, 0.0  ;;  %v3100_v56 = vmul.f32 0.01, %v3036_v23  ;;  %v9028_v15 = vpack.c.bf16 %v8219_v57, %v8214_v10  ;;  %v8439_v35 = vsel %vm3065_vm5, %v3033_v49, %v3097_v30  ;;  %3557 = vmatprep.mubr.f32.mxu1 %v3298_v2  ;;  %3842 = vmatprep.mubr.f32.mxu0 %v3394_v36 }
 0x551   :  { %5599 = vmatpush3.bf16.msra.mxu1 %v9027_v60  ;;  %v3037_v5 = vadd.f32 %v8175_v54, %v2994_v63  ;;  %v2995_v51 = vmul.f32 %v8152_v25, %v2918_v8  ;;  %v3391_v31 = vrot.slane %v8405_v34, 1  ;;  %v8445_v28 = vsel %vm3067_vm8, %v3035_v52, %v3099_v32  ;;  %v2922_v24 = vpop.f32.mrb[32].mxu0 }
 0x552   :  { %5601 = vmatprep.subr.bf16.mxu1 %v9028_v15  ;;  %v3296_v13 = vsel %vm170_vm1, %v3291_v47, %v3295_v12  ;;  %v3301_v10 = vrot.slane %v8423_v4, 7  ;;  %v3397_v57 = vrot.slane %v8423_v4, 1  ;;  %v8451_v49 = vsel %vm3068_vm10, %v3036_v23, %v3100_v56  ;;  %v2924_v40 = vpop.f32.mrb[33].mxu0 }
 0x553   :  { %vm3069_vm11 = vcmp.gt.f32.partialorder %v3037_v5, 0.0  ;;  %v3038_v43 = vadd.f32 %v8193_v42, %v2995_v51  ;;  %3558 = vmatmul.mubr.f32.gmra.mrb[88].mxu1 %v3296_v13  ;;  %v3392_v30 = vsel %vm205_vm3, %v3387_v19, %v3391_v31  ;;  %v2996_v52 = vmul.f32 %v8129_v14, %v2922_v24 }
 0x554   :  { %3843 = vmatmul.mubr.f32.gmra.mrb[54].mxu0 %v3392_v30  ;;  %v3302_v47 = vsel %vm170_vm1, %v3297_v41, %v3301_v10  ;;  %v3398_v62 = vsel %vm205_vm3, %v3393_v9, %v3397_v57  ;;  %v2997_v33 = vmul.f32 %v8152_v25, %v2924_v40  ;;  %v3101_v32 = vmul.f32 0.01, %v3037_v5 }
 0x555   :  { %vm3070_vm12 = vcmp.gt.f32.partialorder %v3038_v43, 0.0  ;;  %v3102_v23 = vmul.f32 0.01, %v3038_v43  ;;  %3562 = vmatprep.mubr.f32.mxu1 %v3302_v47  ;;  %3847 = vmatprep.mubr.f32.mxu0 %v3398_v62  ;;  %v3299_v63 = vrot.slane %v8439_v35, 7  ;;  %v3039_v8 = vadd.f32 %v8175_v54, %v2996_v52  ;;  %v2928_v56 = vpop.f32.mrb[34].mxu0 }
 0x556   :  { %v3040_v19 = vadd.f32 %v8193_v42, %v2997_v33  ;;  %v3395_v60 = vrot.slane %v8439_v35, 1  ;;  %v3305_v41 = vrot.slane %v8451_v49, 7  ;;  %v9029_v9 = vpack.c.bf16 %v8234_v44, %v8224_v26  ;;  %v2930_v13 = vpop.f32.mrb[35].mxu0 }
 0x557   :  { %v8467_v2 = vsel %vm3070_vm12, %v3038_v43, %v3102_v23  ;;  %v3300_v36 = vsel %vm170_vm1, %v3295_v12, %v3299_v63  ;;  %v2998_v15 = vmul.f32 %v8129_v14, %v2928_v56  ;;  %v3401_v51 = vrot.slane %v8451_v49, 1 }
 0x558   :  { %5603 = vmatpush3.bf16.msra.mxu1 %v9029_v9  ;;  %v9030_v24 = vpack.c.bf16 %v8244_v37, %v8239_v46  ;;  %vm3071_vm13 = vcmp.gt.f32.partialorder %v3039_v8, 0.0  ;;  %v3103_v30 = vmul.f32 0.01, %v3039_v8  ;;  %vm3072_vm14 = vcmp.gt.f32.partialorder %v3040_v19, 0.0 }
 0x559   :  { %v3104_v40 = vmul.f32 0.01, %v3040_v19  ;;  %3563 = vmatmul.mubr.f32.gmra.mrb[90].mxu1 %v3300_v36  ;;  %v3396_v26 = vsel %vm205_vm3, %v3391_v31, %v3395_v60  ;;  %v3041_v44 = vadd.f32 %v8175_v54, %v2998_v15  ;;  %v3306_v12 = vsel %vm170_vm1, %v3301_v10, %v3305_v41  ;;  %v2934_v62 = vpop.f32.mrb[36].mxu0 }
 0x55a   :  { %5605 = vmatprep.subr.bf16.mxu1 %v9030_v24  ;;  %v3402_v43 = vsel %vm205_vm3, %v3397_v57, %v3401_v51  ;;  %v8480_v52 = vsel %vm3069_vm11, %v3037_v5, %v3101_v32  ;;  %v8482_v47 = vsel %vm3071_vm13, %v3039_v8, %v3103_v30  ;;  %3848 = vmatmul.mubr.f32.gmra.mrb[56].mxu0 %v3396_v26  ;;  %v3303_v37 = vrot.slane %v8445_v28, 7  ;;  %v2936_v57 = vpop.f32.mrb[37].mxu0 }
 0x55b   :  { %3567 = vmatprep.mubr.f32.mxu1 %v3306_v12  ;;  %v2999_v46 = vmul.f32 %v8152_v25, %v2930_v13  ;;  %v8486_v33 = vsel %vm3072_vm14, %v3040_v19, %v3104_v40  ;;  %vm3073_vm15 = vcmp.gt.f32.partialorder %v3041_v44, 0.0  ;;  %3852 = vmatprep.mubr.f32.mxu0 %v3402_v43  ;;  %v3399_v31 = vrot.slane %v8445_v28, 1 }
 0x55c   :  { %v3000_v10 = vmul.f32 %v8129_v14, %v2934_v62  ;;  %v9031_v5 = vpack.c.bf16 %v8261_v1, %v8256_v22  ;;  %v3304_v23 = vsel %vm170_vm1, %v3299_v63, %v3303_v37  ;;  %v3309_v8 = vrot.slane %v8467_v2, 7 }
 0x55d   :  { %v3042_v32 = vadd.f32 %v8193_v42, %v2999_v46  ;;  %v3405_v19 = vrot.slane %v8467_v2, 1  ;;  %v9032_v56 = vpack.c.bf16 %v8278_v38, %v8266_v27  ;;  %v3105_v9 = vmul.f32 0.01, %v3041_v44  ;;  %3568 = vmatmul.mubr.f32.gmra.mrb[92].mxu1 %v3304_v23  ;;  %v2940_v24 = vpop.f32.mrb[38].mxu0 }
 0x55e   :  { %5607 = vmatpush3.bf16.msra.mxu1 %v9031_v5  ;;  %v3400_v36 = vsel %vm205_vm3, %v3395_v60, %v3399_v31  ;;  %v3043_v15 = vadd.f32 %v8175_v54, %v3000_v10  ;;  %v3001_v22 = vmul.f32 %v8152_v25, %v2936_v57  ;;  %v3310_v63 = vsel %vm170_vm1, %v3305_v41, %v3309_v8  ;;  %v2942_v60 = vpop.f32.mrb[39].mxu0 }
 0x55f   :  { %5609 = vmatprep.subr.bf16.mxu1 %v9032_v56  ;;  %vm3074_vm0 = vcmp.gt.f32.partialorder %v3042_v32, 0.0  ;;  %v3106_v1 = vmul.f32 0.01, %v3042_v32  ;;  %3853 = vmatmul.mubr.f32.gmra.mrb[58].mxu0 %v3400_v36  ;;  %v3406_v13 = vsel %vm205_vm3, %v3401_v51, %v3405_v19  ;;  %v3307_v38 = vrot.slane %v8480_v52, 7 }
 0x560   :  { %vm3075_vm2 = vcmp.gt.f32.partialorder %v3043_v15, 0.0  ;;  %v3107_v30 = vmul.f32 0.01, %v3043_v15  ;;  %3572 = vmatprep.mubr.f32.mxu1 %v3310_v63  ;;  %3857 = vmatprep.mubr.f32.mxu0 %v3406_v13  ;;  %v3044_v27 = vadd.f32 %v8193_v42, %v3001_v22  ;;  %v3403_v26 = vrot.slane %v8480_v52, 1 }
 0x561   :  { %v8507_v40 = vsel %vm3074_vm0, %v3042_v32, %v3106_v1  ;;  %v3312_v12 = vrot.slane %v8486_v33, 7  ;;  %v3002_v41 = vmul.f32 %v8129_v14, %v2940_v24  ;;  %v9033_v51 = vpack.c.bf16 %v8288_v20, %v8283_v55  ;;  %v2946_v20 = vpop.f32.mrb[40].mxu0 }
 0x562   :  { %v8516_v43 = vsel %vm3073_vm15, %v3041_v44, %v3105_v9  ;;  %v8518_v46 = vsel %vm3075_vm2, %v3043_v15, %v3107_v30  ;;  %vm3076_vm4 = vcmp.gt.f32.partialorder %v3044_v27, 0.0  ;;  %v3308_v62 = vsel %vm170_vm1, %v3303_v37, %v3307_v38  ;;  %v2948_v23 = vpop.f32.mrb[41].mxu0 }
 0x563   :  { %5611 = vmatpush3.bf16.msra.mxu1 %v9033_v51  ;;  %v9034_v10 = vpack.c.bf16 %v8301_v17, %v8296_v3  ;;  %v3108_v57 = vmul.f32 0.01, %v3044_v27  ;;  %v3404_v5 = vsel %vm205_vm3, %v3399_v31, %v3403_v26  ;;  %v3045_v32 = vadd.f32 %v8175_v54, %v3002_v41 }
 0x564   :  { %3573 = vmatmul.mubr.f32.gmra.mrb[94].mxu1 %v3308_v62  ;;  %v3003_v55 = vmul.f32 %v8152_v25, %v2942_v60  ;;  %3858 = vmatmul.mubr.f32.gmra.mrb[60].mxu0 %v3404_v5  ;;  %v3311_v44 = vrot.slane %v8482_v47, 7  ;;  %v3004_v37 = vmul.f32 %v8129_v14, %v2946_v20  ;;  %v3315_v3 = vrot.slane %v8507_v40, 7 }
 0x565   :  { %5613 = vmatprep.subr.bf16.mxu1 %v9034_v10  ;;  %4812 = vmatprep.mubr.msk.f32.mxu1 %vm6880_vm9, %v3312_v12  ;;  %v3410_v17 = vrot.slane %v8486_v33, 1  ;;  %vm3077_vm5 = vcmp.gt.f32.partialorder %v3045_v32, 0.0  ;;  %v3109_v31 = vmul.f32 0.01, %v3045_v32  ;;  %v3411_v56 = vrot.slane %v8507_v40, 1  ;;  %v2952_v53 = vpop.f32.mrb[42].mxu0 }
 0x566   :  { %4815 = vmatprep.mubr.msk.f32.mxu0 %vm205_vm3, %v3405_v19  ;;  %v3046_v8 = vadd.f32 %v8193_v42, %v3003_v55  ;;  %v3047_v9 = vadd.f32 %v8175_v54, %v3004_v37  ;;  %v3316_v36 = vsel %vm170_vm1, %v3312_v12, %v3315_v3  ;;  %v3005_v15 = vmul.f32 %v8152_v25, %v2948_v23  ;;  %v2954_v24 = vpop.f32.mrb[43].mxu0 }
 0x567   :  { %5615 = vmatpush3.bf16.msra.mxu1 %v5614_v11  ;;  %v3313_v22 = vrot.slane %v8516_v43, 7  ;;  %v8544_v19 = vsel %vm3076_vm4, %v3044_v27, %v3108_v57  ;;  %v3412_v63 = vsel %vm205_vm3, %v3410_v17, %v3411_v56  ;;  %v8549_v39 = vsel %vm3077_vm5, %v3045_v32, %v3109_v31 }
 0x568   :  { %vm3078_vm7 = vcmp.gt.f32.partialorder %v3046_v8, 0.0  ;;  %v3110_v1 = vmul.f32 0.01, %v3046_v8  ;;  %4814 = vmatmul.mubr.msk.f32.gmra.mrb[96].mxu1 %vm6880_vm9, %v3311_v44  ;;  %4816 = vmatmul.mubr.msk.f32.gmra.mrb[62].mxu0 %vm205_vm3, %v3403_v26  ;;  %vm3079_vm8 = vcmp.gt.f32.partialorder %v3047_v9, 0.0  ;;  %v3111_v11 = vmul.f32 0.01, %v3047_v9 }
 0x569   :  { %3582 = vmatprep.mubr.f32.mxu1 %v3316_v36  ;;  %v3048_v13 = vadd.f32 %v8193_v42, %v3005_v15  ;;  %3867 = vmatprep.mubr.f32.mxu0 %v3412_v63  ;;  %v3314_v30 = vsel %vm170_vm1, %v3311_v44, %v3313_v22  ;;  %v3407_v27 = vrot.slane %v8482_v47, 1  ;;  %v3408_v45 = vrot.slane %v8516_v43, 1  ;;  %v2958_v57 = vpop.f32.mrb[44].mxu0 }
 0x56a   :  { %v3006_v38 = vmul.f32 %v8129_v14, %v2952_v53  ;;  %v8558_v60 = vsel %vm3078_vm7, %v3046_v8, %v3110_v1  ;;  %v3319_v12 = vrot.slane %v8544_v19, 7  ;;  %v3415_v62 = vrot.slane %v8544_v19, 1  ;;  %v2960_v44 = vpop.f32.mrb[45].mxu0 }
 0x56b   :  { %vm3080_vm9 = vcmp.gt.f32.partialorder %v3048_v13, 0.0  ;;  %v3112_v26 = vmul.f32 0.01, %v3048_v13  ;;  %v3409_v41 = vsel %vm205_vm3, %v3407_v27, %v3408_v45  ;;  %v3007_v10 = vmul.f32 %v8152_v25, %v2954_v24 }
 0x56c   :  { %3583 = vmatmul.mubr.f32.gmra.mrb[98].mxu1 %v3314_v30  ;;  %v3049_v51 = vadd.f32 %v8175_v54, %v3006_v38  ;;  %v8566_v5 = vsel %vm3079_vm8, %v3047_v9, %v3111_v11  ;;  %3868 = vmatmul.mubr.f32.gmra.mrb[64].mxu0 %v3409_v41  ;;  %v3320_v32 = vsel %vm170_vm1, %v3315_v3, %v3319_v12  ;;  %v3317_v55 = vrot.slane %v8518_v46, 7 }
 0x56d   :  { %v3413_v20 = vrot.slane %v8518_v46, 1  ;;  %3587 = vmatprep.mubr.f32.mxu1 %v3320_v32  ;;  %v3416_v17 = vsel %vm205_vm3, %v3411_v56, %v3415_v62  ;;  %v3050_v23 = vadd.f32 %v8193_v42, %v3007_v10  ;;  %v8574_v31 = vsel %vm3080_vm9, %v3048_v13, %v3112_v26  ;;  %v2964_v63 = vpop.f32.mrb[46].mxu0 }
 0x56e   :  { %vm3081_vm10 = vcmp.gt.f32.partialorder %v3049_v51, 0.0  ;;  %v3113_v37 = vmul.f32 0.01, %v3049_v51  ;;  %3872 = vmatprep.mubr.f32.mxu0 %v3416_v17  ;;  %v3318_v8 = vsel %vm170_vm1, %v3313_v22, %v3317_v55  ;;  %v3008_v3 = vmul.f32 %v8129_v14, %v2958_v57  ;;  %v2966_v24 = vpop.f32.mrb[47].mxu0 }
 0x56f   :  { %v3323_v9 = vrot.slane %v8558_v60, 7  ;;  %v3114_v15 = vmul.f32 0.01, %v3050_v23  ;;  %v3414_v1 = vsel %vm205_vm3, %v3408_v45, %v3413_v20  ;;  %v3419_v56 = vrot.slane %v8558_v60, 1 }
 0x570   :  { %v8579_v36 = vsel %vm3081_vm10, %v3049_v51, %v3113_v37  ;;  %3588 = vmatmul.mubr.f32.gmra.mrb[100].mxu1 %v3318_v8  ;;  %3873 = vmatmul.mubr.f32.gmra.mrb[66].mxu0 %v3414_v1  ;;  %v3051_v53 = vadd.f32 %v8175_v54, %v3008_v3  ;;  %v3009_v22 = vmul.f32 %v8152_v25, %v2960_v44  ;;  %v3321_v13 = vrot.slane %v8549_v39, 7 }
 0x571   :  { %v3324_v11 = vsel %vm170_vm1, %v3319_v12, %v3323_v9  ;;  %vm3082_vm11 = vcmp.gt.f32.partialorder %v3050_v23, 0.0  ;;  %v3420_v30 = vsel %vm205_vm3, %v3415_v62, %v3419_v56  ;;  %v3417_v27 = vrot.slane %v8549_v39, 1 }
 0x572   :  { %3592 = vmatprep.mubr.f32.mxu1 %v3324_v11  ;;  %v3010_v45 = vmul.f32 %v8129_v14, %v2964_v63  ;;  %vm3083_vm12 = vcmp.gt.f32.partialorder %v3051_v53, 0.0  ;;  %v3115_v38 = vmul.f32 0.01, %v3051_v53  ;;  %3877 = vmatprep.mubr.f32.mxu0 %v3420_v30  ;;  %v3052_v26 = vadd.f32 %v8193_v42, %v3009_v22 }
 0x573   :  { %v3322_v12 = vsel %vm170_vm1, %v3317_v55, %v3321_v13  ;;  %v3418_v41 = vsel %vm205_vm3, %v3413_v20, %v3417_v27  ;;  %v3327_v10 = vrot.slane %v8574_v31, 7  ;;  %v3423_v62 = vrot.slane %v8574_v31, 1 }
 0x574   :  { %3593 = vmatmul.mubr.f32.gmra.mrb[102].mxu1 %v3322_v12  ;;  %v3053_v51 = vadd.f32 %v8175_v54, %v3010_v45  ;;  %v8596_v57 = vsel %vm3082_vm11, %v3050_v23, %v3114_v15  ;;  %vm3084_vm13 = vcmp.gt.f32.partialorder %v3052_v26, 0.0  ;;  %v3116_v14 = vmul.f32 0.01, %v3052_v26  ;;  %3878 = vmatmul.mubr.f32.gmra.mrb[68].mxu0 %v3418_v41 }
 0x575   :  { %v3011_v32 = vmul.f32 %v8152_v25, %v2966_v24  ;;  %v3328_v44 = vsel %vm170_vm1, %v3323_v9, %v3327_v10  ;;  %v3424_v55 = vsel %vm205_vm3, %v3419_v56, %v3423_v62  ;;  %v8602_v37 = vsel %vm3083_vm12, %v3051_v53, %v3115_v38 }
 0x576   :  { %3597 = vmatprep.mubr.f32.mxu1 %v3328_v44  ;;  %3882 = vmatprep.mubr.f32.mxu0 %v3424_v55  ;;  %v3325_v20 = vrot.slane %v8566_v5, 7  ;;  %v3421_v17 = vrot.slane %v8566_v5, 1  ;;  %v8607_v23 = vsel %vm3084_vm13, %v3052_v26, %v3116_v14  ;;  %v3331_v8 = vrot.slane %v8596_v57, 7 }
 0x577   :  { %v3054_v54 = vadd.f32 %v8193_v42, %v3011_v32  ;;  %v3427_v25 = vrot.slane %v8596_v57, 1  ;;  %v3329_v3 = vrot.slane %v8579_v36, 7  ;;  %v3117_v56 = vmul.f32 0.01, %v3053_v51 }
 0x578   :  { %v3326_v15 = vsel %vm170_vm1, %v3321_v13, %v3325_v20  ;;  %v3422_v1 = vsel %vm205_vm3, %v3417_v27, %v3421_v17  ;;  %v3332_v42 = vsel %vm170_vm1, %v3327_v10, %v3331_v8  ;;  %v3425_v53 = vrot.slane %v8579_v36, 1 }
 0x579   :  { %vm3086_vm14 = vcmp.gt.f32.partialorder %v3054_v54, 0.0  ;;  %v3118_v9 = vmul.f32 0.01, %v3054_v54  ;;  %3598 = vmatmul.mubr.f32.gmra.mrb[104].mxu1 %v3326_v15  ;;  %3883 = vmatmul.mubr.f32.gmra.mrb[70].mxu0 %v3422_v1  ;;  %v3428_v63 = vsel %vm205_vm3, %v3423_v62, %v3427_v25  ;;  %vm3085_vm15 = vcmp.gt.f32.partialorder %v3053_v51, 0.0  ;;  %v4063_v15 = vld [vmem:[#allocation7 + $0xa8] sm:$0xff] }
 0x57a   :  { %3602 = vmatprep.mubr.f32.mxu1 %v3332_v42  ;;  %3887 = vmatprep.mubr.f32.mxu0 %v3428_v63  ;;  %v3335_v22 = vrot.slane %v8607_v23, 7  ;;  %v3431_v13 = vrot.slane %v8607_v23, 1  ;;  %v3330_v24 = vsel %vm170_vm1, %v3325_v20, %v3329_v3  ;;  %v3333_v30 = vrot.slane %v8602_v37, 7 }
 0x57b   :  { %v8617_v11 = vsel %vm3086_vm14, %v3054_v54, %v3118_v9  ;;  %v3426_v38 = vsel %vm205_vm3, %v3421_v17, %v3425_v53  ;;  %v3429_v41 = vrot.slane %v8602_v37, 1  ;;  %v3149_v10 = vsel %vm3085_vm15, %v3053_v51, %v3117_v56  ;;  %v4059_v9 = vld [vmem:[#allocation7 + $0x88] sm:$0xff] }
 0x57c   :  { %v3339_v27 = vrot.slane %v8617_v11, 7  ;;  %v3435_v45 = vrot.slane %v8617_v11, 1  ;;  %v3336_v26 = vsel %vm170_vm1, %v3331_v8, %v3335_v22  ;;  %v3432_v12 = vsel %vm205_vm3, %v3427_v25, %v3431_v13 }
 0x57d   :  { %3603 = vmatmul.mubr.f32.gmra.mrb[106].mxu1 %v3330_v24  ;;  %3888 = vmatmul.mubr.f32.gmra.mrb[72].mxu0 %v3426_v38  ;;  %v3334_v32 = vsel %vm170_vm1, %v3329_v3, %v3333_v30  ;;  %v3430_v44 = vsel %vm205_vm3, %v3425_v53, %v3429_v41  ;;  %v3337_v55 = vrot.slane %v3149_v10, 7  ;;  %v3433_v54 = vrot.slane %v3149_v10, 1  ;;  %v4062_v24 = vld [vmem:[#allocation7 + $0xa0] sm:$0xff] }
 0x57e   :  { %3607 = vmatprep.mubr.f32.mxu1 %v3336_v26  ;;  %3892 = vmatprep.mubr.f32.mxu0 %v3432_v12  ;;  %v3340_v62 = vsel %vm170_vm1, %v3335_v22, %v3339_v27  ;;  %v3436_v14 = vsel %vm205_vm3, %v3431_v13, %v3435_v45  ;;  %v5656_v1 = vpack.c.bf16 %v4063_v15, %v4059_v9  ;;  %v4058_v13 = vld [vmem:[#allocation7 + $0x80] sm:$0xff] }
 0x57f   :  { %v3338_v51 = vsel %vm170_vm1, %v3333_v30, %v3337_v55  ;;  %v3434_v20 = vsel %vm205_vm3, %v3429_v41, %v3433_v54  ;;  %v4067_v30 = vld [vmem:[#allocation7 + $0xc8] sm:$0xff]  ;;  %v5658_v27 = vpack.c.bf16 %v4062_v24, %v4058_v13  ;;  %v4066_v38 = vld [vmem:[#allocation7 + $0xc0] sm:$0xff] }
 0x580   :  { %v4070_v26 = vld [vmem:[#allocation7 + $0xe0] sm:$0xff] }
 0x581   :  { %3608 = vmatmul.mubr.f32.gmra.mrb[108].mxu1 %v3334_v32  ;;  %3893 = vmatmul.mubr.f32.gmra.mrb[74].mxu0 %v3430_v44  ;;  %v5662_v32 = vpack.c.bf16 %v4070_v26, %v4066_v38  ;;  %v4286_v38 = vld [vmem:[#allocation8] sm:$0xff] }
 0x582   :  { %3612 = vmatprep.mubr.f32.mxu1 %v3340_v62  ;;  %3897 = vmatprep.mubr.f32.mxu0 %v3436_v14  ;;  %v4049_v62 = vld [vmem:[#allocation7 + $0x38] sm:$0xff] }
 0x585   :  { %3613 = vmatmul.mubr.f32.gmra.mrb[110].mxu1 %v3338_v51  ;;  %3898 = vmatmul.mubr.f32.gmra.mrb[76].mxu0 %v3434_v20 }
 0x586   :  { %3682 = vmatprep.mubr.f32.mxu1 %v8313_v29  ;;  %4817 = vmatprep.mubr.msk.f32.mxu0 %vm205_vm3, %v3435_v45  ;;  %v4042_v29 = vld [vmem:[#allocation7] sm:$0xff]  ;;  %v4071_v45 = vld [vmem:[#allocation7 + $0xe8] sm:$0xff] }
 0x587   :  { %v5660_v41 = vpack.c.bf16 %v4071_v45, %v4067_v30  ;;  %v4289_v45 = vld [vmem:[#allocation8 + $0x18] sm:$0xff] }
 0x589   :  { %3683 = vmatmul.mubr.f32.vlgmr.msra.gmra.mrb[112].mxu1 %v8306_v50  ;;  %4818 = vmatmul.mubr.msk.f32.gmra.mrb[78].mxu0 %vm205_vm3, %v3433_v54  ;;  %v4047_v50 = vld [vmem:[#allocation7 + $0x28] sm:$0xff] }
 0x58a   :  { %3687 = vmatprep.mubr.f32.mxu1 %v8332_v58 }
 0x58d   :  { %3688 = vmatmul.mubr.f32.gmra.mrb[114].mxu1 %v8325_v48  ;;  %v9035_v48 = vmov 0.0  }
 0x58e   :  { %3692 = vmatprep.mubr.f32.mxu1 %v8353_v18  ;;  %v4046_v18 = vld [vmem:[#allocation7 + $0x20] sm:$0xff] }
 0x591   :  { %3693 = vmatmul.mubr.f32.gmra.mrb[116].mxu1 %v8348_v6  ;;  %v4043_v6 = vld [vmem:[#allocation7 + $0x8] sm:$0xff] }
 0x592   :  { %3697 = vmatprep.mubr.f32.mxu1 %v8375_v7  ;;  %v5648_v58 = vpack.c.bf16 %v4047_v50, %v4043_v6 }
 0x594   :  { %5649 = vmatprep.subr.bf16.mxu1 %v5648_v58 }
 0x595   :  { %3698 = vmatmul.mubr.f32.gmra.mrb[118].mxu1 %v8367_v16  ;;  %v5650_v16 = vpack.c.bf16 %v4046_v18, %v4042_v29 }
 0x596   :  { %3702 = vmatprep.mubr.f32.mxu1 %v8414_v21 }
 0x597   :  { %5651 = vmatpush1.bf16.msra.mxu1 %v5650_v16 }
 0x599   :  { %3703 = vmatmul.mubr.f32.gmra.mrb[120].mxu1 %v8405_v34 }
 0x59a   :  { %3707 = vmatprep.mubr.f32.mxu1 %v8423_v4  ;;  %v4051_v4 = vld [vmem:[#allocation7 + $0x48] sm:$0xff] }
 0x59d   :  { %3708 = vmatmul.mubr.f32.gmra.mrb[122].mxu1 %v8439_v35  ;;  %v4055_v35 = vld [vmem:[#allocation7 + $0x68] sm:$0xff] }
 0x59e   :  { %3712 = vmatprep.mubr.f32.mxu1 %v8451_v49 }
 0x5a1   :  { %3713 = vmatmul.mubr.f32.gmra.mrb[124].mxu1 %v8445_v28  ;;  %v5652_v28 = vpack.c.bf16 %v4055_v35, %v4051_v4 }
 0x5a2   :  { %3717 = vmatprep.mubr.f32.mxu1 %v8467_v2 }
 0x5a3   :  { %5653 = vmatprep.subr.bf16.mxu1 %v5652_v28 }
 0x5a5   :  { %3718 = vmatmul.mubr.f32.gmra.mrb[126].mxu1 %v8480_v52 }
 0x5a6   :  { %3722 = vmatprep.mubr.f32.mxu1 %v8486_v33 }
 0x5a9   :  { %3723 = vmatmul.mubr.f32.gmra.mrb[128].mxu1 %v8482_v47 }
 0x5aa   :  { %3727 = vmatprep.mubr.f32.mxu1 %v8507_v40  ;;  %v4050_v40 = vld [vmem:[#allocation7 + $0x40] sm:$0xff] }
 0x5ad   :  { %3728 = vmatmul.mubr.f32.gmra.mrb[130].mxu1 %v8516_v43  ;;  %v4054_v43 = vld [vmem:[#allocation7 + $0x60] sm:$0xff] }
 0x5ae   :  { %3732 = vmatprep.mubr.f32.mxu1 %v8544_v19  ;;  %v5654_v19 = vpack.c.bf16 %v4054_v43, %v4050_v40 }
 0x5b0   :  { %5655 = vmatpush1.bf16.msra.mxu1 %v5654_v19 }
 0x5b1   :  { %3733 = vmatmul.mubr.f32.gmra.mrb[132].mxu1 %v8518_v46  ;;  %5657 = vmatprep.subr.bf16.mxu1 %v5656_v1 }
 0x5b2   :  { %3737 = vmatprep.mubr.f32.mxu1 %v8558_v60 }
 0x5b4   :  { %5659 = vmatpush1.bf16.msra.mxu1 %v5658_v27  ;;  %v4287_v27 = vld [vmem:[#allocation8 + $0x8] sm:$0xff] }
 0x5b5   :  { %3738 = vmatmul.mubr.f32.gmra.mrb[134].mxu1 %v8549_v39  ;;  %5661 = vmatprep.subr.bf16.mxu1 %v5660_v41  ;;  %v5680_v26 = vpack.c.bf16 %v4289_v45, %v4287_v27  ;;  %v4291_v41 = vld [vmem:[#allocation8 + $0x28] sm:$0xff] }
 0x5b6   :  { %3742 = vmatprep.mubr.f32.mxu1 %v8574_v31 }
 0x5b7   :  { %5681 = vmatprep.subr.bf16.mxu0 %v5680_v26 }
 0x5b8   :  { %5663 = vmatpush1.bf16.msra.mxu1 %v5662_v32  ;;  %v4290_v32 = vld [vmem:[#allocation8 + $0x20] sm:$0xff] }
 0x5b9   :  { %3743 = vmatmul.mubr.f32.gmra.mrb[136].mxu1 %v8566_v5 }
 0x5ba   :  { %3747 = vmatprep.mubr.f32.mxu1 %v8596_v57 }
 0x5bd   :  { %3748 = vmatmul.mubr.f32.gmra.mrb[138].mxu1 %v8579_v36 }
 0x5be   :  { %3752 = vmatprep.mubr.f32.mxu1 %v8607_v23 }
 0x5c1   :  { %3753 = vmatmul.mubr.f32.gmra.mrb[140].mxu1 %v8602_v37 }
 0x5c2   :  { %3757 = vmatprep.mubr.f32.mxu1 %v8617_v11 }
 0x5c5   :  { %3758 = vmatmul.mubr.f32.gmra.mrb[142].mxu1 %v3149_v10  ;;  %v4045_v10 = vld [vmem:[#allocation7 + $0x18] sm:$0xff] }
 0x5c6   :  { %4144 = vmatprep.mubr.f32.mxu1 %v9035_v48  ;;  %v5664_v54 = vpack.c.bf16 %v4049_v62, %v4045_v10  ;;  %v4293_v10 = vld [vmem:[#allocation8 + $0x38] sm:$0xff] }
 0x5c8   :  { %5665 = vmatprep.subr.bf16.mxu1 %v5664_v54  ;;  %v4295_v54 = vld [vmem:[#allocation8 + $0x48] sm:$0xff] }
 0x610   :  { %v4907_v7 = vpop.f32.mrb[80].mxu1 }
 0x611   :  { %v4908_v34 = vpop.f32.mrb[81].mxu1 }
 0x612   :  { %v8669_v21 = vadd.f32 %v4908_v34, %v4907_v7 }
 0x615   :  { %v4910_v49 = vpop.f32.mrb[82].mxu1 }
 0x616   :  { %v5067_v2 = vpop.f32.mrb[48].mxu0  ;;  %v4911_v52 = vpop.f32.mrb[83].mxu1 }
 0x617   :  { %v8671_v47 = vadd.f32 %v4911_v52, %v4910_v49  ;;  %v5068_v33 = vpop.f32.mrb[49].mxu0 }
 0x618   :  { %v8673_v46 = vadd.f32 %v5068_v33, %v5067_v2 }
 0x61a   :  { %v4913_v39 = vpop.f32.mrb[84].mxu1 }
 0x61b   :  { %v5070_v60 = vpop.f32.mrb[50].mxu0  ;;  %v4914_v5 = vpop.f32.mrb[85].mxu1 }
 0x61c   :  { %v8675_v31 = vadd.f32 %v4914_v5, %v4913_v39  ;;  %v5071_v36 = vpop.f32.mrb[51].mxu0 }
 0x61d   :  { %v8677_v57 = vadd.f32 %v5071_v36, %v5070_v60 }
 0x620   :  { %v4916_v37 = vpop.f32.mrb[86].mxu1 }
 0x621   :  { %v5073_v17 = vpop.f32.mrb[52].mxu0  ;;  %v4917_v23 = vpop.f32.mrb[87].mxu1 }
 0x622   :  { %v5074_v8 = vpop.f32.mrb[53].mxu0  ;;  %v8679_v25 = vadd.f32 %v4917_v23, %v4916_v37 }
 0x623   :  { %v8681_v3 = vadd.f32 %v5074_v8, %v5073_v17 }
 0x626   :  { %v4919_v56 = vpop.f32.mrb[88].mxu1 }
 0x627   :  { %v5076_v42 = vpop.f32.mrb[54].mxu0  ;;  %v4920_v63 = vpop.f32.mrb[89].mxu1 }
 0x628   :  { %v8683_v53 = vadd.f32 %v4920_v63, %v4919_v56  ;;  %v5077_v11 = vpop.f32.mrb[55].mxu0 }
 0x629   :  { %v8685_v22 = vadd.f32 %v5077_v11, %v5076_v42 }
 0x62c   :  { %v4922_v12 = vpop.f32.mrb[90].mxu1 }
 0x62d   :  { %v4923_v14 = vpop.f32.mrb[91].mxu1  ;;  %v5079_v44 = vpop.f32.mrb[56].mxu0 }
 0x62e   :  { %v8687_v55 = vadd.f32 %v4923_v14, %v4922_v12  ;;  %v5080_v51 = vpop.f32.mrb[57].mxu0  ;;  %v4288_v12 = vld [vmem:[#allocation8 + $0x10] sm:$0xff]  ;;  %v5684_v14 = vpack.c.bf16 %v4293_v10, %v4291_v41 }
 0x62f   :  { %v8689_v20 = vadd.f32 %v5080_v51, %v5079_v44  ;;  %v5682_v62 = vpack.c.bf16 %v4288_v12, %v4286_v38  ;;  %v4292_v44 = vld [vmem:[#allocation8 + $0x30] sm:$0xff] }
 0x630   :  { %v4925_v6 = vpop.f32.mrb[92].mxu1 }
 0x631   :  { %v4926_v58 = vpop.f32.mrb[93].mxu1  ;;  %5683 = vmatpush1.bf16.msra.mxu0 %v5682_v62 }
 0x632   :  { %v5082_v50 = vpop.f32.mrb[58].mxu0  ;;  %v8691_v29 = vadd.f32 %v4926_v58, %v4925_v6  ;;  %5685 = vmatprep.subr.bf16.mxu0 %v5684_v14  ;;  %v4302_v14 = vld [vmem:[#allocation8 + $0x80] sm:$0xff] }
 0x633   :  { %v5083_v18 = vpop.f32.mrb[59].mxu0 }
 0x634   :  { %v8693_v16 = vadd.f32 %v5083_v18, %v5082_v50  ;;  %v4297_v50 = vld [vmem:[#allocation8 + $0x58] sm:$0xff] }
 0x637   :  { %v4928_v7 = vpop.f32.mrb[94].mxu1  ;;  %v5085_v34 = vpop.f32.mrb[60].mxu0 }
 0x638   :  { %v4929_v4 = vpop.f32.mrb[95].mxu1  ;;  %v5086_v28 = vpop.f32.mrb[61].mxu0 }
 0x639   :  { %v8695_v35 = vadd.f32 %v4929_v4, %v4928_v7  ;;  %v8697_v49 = vadd.f32 %v5086_v28, %v5085_v34  ;;  %v5686_v7 = vpack.c.bf16 %v4292_v44, %v4290_v32  ;;  %v5688_v28 = vpack.c.bf16 %v4297_v50, %v4295_v54  ;;  %v4304_v32 = vld [vmem:[#allocation8 + $0x90] sm:$0xff]  ;;  %v4307_v44 = vld [vmem:[#allocation8 + $0xa8] sm:$0xff]  ;;  %v4309_v54 = vld [vmem:[#allocation8 + $0xb8] sm:$0xff] }
 0x63b   :  { %v4931_v2 = vpop.f32.mrb[96].mxu1  ;;  %v5088_v52 = vpop.f32.mrb[62].mxu0  ;;  %5687 = vmatpush1.bf16.msra.mxu0 %v5686_v7 }
 0x63c   :  { %v4932_v33 = vpop.f32.mrb[97].mxu1  ;;  %v5089_v43 = vpop.f32.mrb[63].mxu0  ;;  %5689 = vmatprep.subr.bf16.mxu0 %v5688_v28 }
 0x63d   :  { %v8699_v40 = vadd.f32 %v4932_v33, %v4931_v2  ;;  %v8701_v19 = vadd.f32 %v5089_v43, %v5088_v52  ;;  %v4294_v2 = vld [vmem:[#allocation8 + $0x40] sm:$0xff]  ;;  %v4296_v52 = vld [vmem:[#allocation8 + $0x50] sm:$0xff]  ;;  %v4299_v33 = vld [vmem:[#allocation8 + $0x68] sm:$0xff] }
 0x63e   :  { %v4301_v43 = vld [vmem:[#allocation8 + $0x78] sm:$0xff] }
 0x63f   :  { %v4934_v39 = vpop.f32.mrb[98].mxu1  ;;  %v5091_v60 = vpop.f32.mrb[64].mxu0 }
 0x640   :  { %v4935_v5 = vpop.f32.mrb[99].mxu1  ;;  %v5092_v37 = vpop.f32.mrb[65].mxu0 }
 0x641   :  { %v8703_v36 = vadd.f32 %v4935_v5, %v4934_v39  ;;  %v8705_v17 = vadd.f32 %v5092_v37, %v5091_v60 }
 0x643   :  { %v4937_v23 = vpop.f32.mrb[100].mxu1  ;;  %v5094_v8 = vpop.f32.mrb[66].mxu0 }
 0x644   :  { %v4938_v9 = vpop.f32.mrb[101].mxu1  ;;  %v5095_v1 = vpop.f32.mrb[67].mxu0 }
 0x645   :  { %v8707_v15 = vadd.f32 %v4938_v9, %v4937_v23  ;;  %v8709_v56 = vadd.f32 %v5095_v1, %v5094_v8  ;;  %v5690_v23 = vpack.c.bf16 %v4296_v52, %v4294_v2  ;;  %v5692_v1 = vpack.c.bf16 %v4301_v43, %v4299_v33  ;;  %v4306_v52 = vld [vmem:[#allocation8 + $0xa0] sm:$0xff]  ;;  %v4308_v33 = vld [vmem:[#allocation8 + $0xb0] sm:$0xff]  ;;  %v4311_v43 = vld [vmem:[#allocation8 + $0xc8] sm:$0xff] }
 0x646   :  { %v5700_v2 = vpack.c.bf16 %v4309_v54, %v4307_v44 }
 0x647   :  { %v4940_v42 = vpop.f32.mrb[102].mxu1  ;;  %v5097_v63 = vpop.f32.mrb[68].mxu0  ;;  %5691 = vmatpush1.bf16.msra.mxu0 %v5690_v23 }
 0x648   :  { %v4941_v11 = vpop.f32.mrb[103].mxu1  ;;  %v5098_v24 = vpop.f32.mrb[69].mxu0  ;;  %5693 = vmatprep.subr.bf16.mxu0 %v5692_v1  ;;  %v5702_v1 = vpack.c.bf16 %v4308_v33, %v4306_v52 }
 0x649   :  { %v8711_v13 = vadd.f32 %v4941_v11, %v4940_v42  ;;  %v8713_v30 = vadd.f32 %v5098_v24, %v5097_v63  ;;  %v4298_v42 = vld [vmem:[#allocation8 + $0x60] sm:$0xff]  ;;  %v4300_v63 = vld [vmem:[#allocation8 + $0x70] sm:$0xff]  ;;  %v4303_v11 = vld [vmem:[#allocation8 + $0x88] sm:$0xff] }
 0x64a   :  { %v4305_v24 = vld [vmem:[#allocation8 + $0x98] sm:$0xff]  ;;  %v5694_v12 = vpack.c.bf16 %v4300_v63, %v4298_v42 }
 0x64b   :  { %v5696_v62 = vpack.c.bf16 %v4305_v24, %v4303_v11  ;;  %v4310_v24 = vld [vmem:[#allocation8 + $0xc0] sm:$0xff] }
 0x64c   :  { %v4943_v51 = vpop.f32.mrb[104].mxu1  ;;  %v5100_v6 = vpop.f32.mrb[70].mxu0  ;;  %5695 = vmatpush1.bf16.msra.mxu0 %v5694_v12 }
 0x64d   :  { %v4944_v58 = vpop.f32.mrb[105].mxu1  ;;  %v5101_v18 = vpop.f32.mrb[71].mxu0  ;;  %5697 = vmatprep.subr.bf16.mxu0 %v5696_v62  ;;  %v8737_v62 = vld [vmem:[%s8984_s14] ss:$0 sm:$0xff] }
 0x64e   :  { %v8715_v34 = vadd.f32 %v4944_v58, %v4943_v51  ;;  %v8717_v4 = vadd.f32 %v5101_v18, %v5100_v6  ;;  %v5698_v18 = vpack.c.bf16 %v4304_v32, %v4302_v14 }
 0x650   :  { %v4946_v39 = vpop.f32.mrb[106].mxu1  ;;  %v5103_v60 = vpop.f32.mrb[72].mxu0  ;;  %5699 = vmatpush1.bf16.msra.mxu0 %v5698_v18  ;;  %v4321_v18 = vld [vmem:[#allocation8 + $0x118] sm:$0xff] }
 0x651   :  { %v4947_v5 = vpop.f32.mrb[107].mxu1  ;;  %v5104_v37 = vpop.f32.mrb[73].mxu0  ;;  %5701 = vmatprep.subr.bf16.mxu0 %v5700_v2 }
 0x652   :  { %v8719_v8 = vadd.f32 %v4947_v5, %v4946_v39  ;;  %v8721_v9 = vadd.f32 %v5104_v37, %v5103_v60  ;;  %v4313_v39 = vld [vmem:[#allocation8 + $0xd8] sm:$0xff] }
 0x653   :  { %v5704_v11 = vpack.c.bf16 %v4313_v39, %v4311_v43 }
 0x654   :  { %v4949_v27 = vpop.f32.mrb[108].mxu1  ;;  %v5106_v45 = vpop.f32.mrb[74].mxu0  ;;  %5703 = vmatpush1.bf16.msra.mxu0 %v5702_v1 }
 0x655   :  { %v4950_v38 = vpop.f32.mrb[109].mxu1  ;;  %v5107_v26 = vpop.f32.mrb[75].mxu0  ;;  %5705 = vmatprep.subr.bf16.mxu0 %v5704_v11  ;;  %v4325_v11 = vld [vmem:[#allocation8 + $0x138] sm:$0xff] }
 0x656   :  { %v8723_v41 = vadd.f32 %v4950_v38, %v4949_v27  ;;  %v8725_v10 = vadd.f32 %v5107_v26, %v5106_v45  ;;  %v4312_v27 = vld [vmem:[#allocation8 + $0xd0] sm:$0xff]  ;;  %v4315_v45 = vld [vmem:[#allocation8 + $0xe8] sm:$0xff]  ;;  %v4317_v38 = vld [vmem:[#allocation8 + $0xf8] sm:$0xff] }
 0x657   :  { %v5706_v32 = vpack.c.bf16 %v4312_v27, %v4310_v24 }
 0x658   :  { %v4952_v51 = vpop.f32.mrb[110].mxu1  ;;  %v5109_v6 = vpop.f32.mrb[76].mxu0 }
 0x659   :  { %v4953_v50 = vpop.f32.mrb[111].mxu1  ;;  %v5110_v58 = vpop.f32.mrb[77].mxu0  ;;  %5707 = vmatpush1.bf16.msra.mxu0 %v5706_v32  ;;  %v4324_v32 = vld [vmem:[#allocation8 + $0x130] sm:$0xff] }
 0x65a   :  { %v8727_v7 = vadd.f32 %v4953_v50, %v4952_v51  ;;  %v8729_v28 = vadd.f32 %v5110_v58, %v5109_v6  ;;  %v5708_v51 = vpack.c.bf16 %v4317_v38, %v4315_v45  ;;  %v4314_v6 = vld [vmem:[#allocation8 + $0xe0] sm:$0xff]  ;;  %v4316_v50 = vld [vmem:[#allocation8 + $0xf0] sm:$0xff]  ;;  %v4319_v58 = vld [vmem:[#allocation8 + $0x108] sm:$0xff] }
 0x65c   :  { %v4987_v60 = vpop.f32.mrb[112].mxu1  ;;  %v5112_v5 = vpop.f32.mrb[78].mxu0  ;;  %5709 = vmatprep.subr.bf16.mxu0 %v5708_v51  ;;  %v4327_v51 = vld [vmem:[#allocation8 + $0x148] sm:$0xff] }
 0x65d   :  { %v4988_v37 = vpop.f32.mrb[113].mxu1  ;;  %v5113_v23 = vpop.f32.mrb[79].mxu0 }
 0x65e   :  { %v4989_v42 = vadd.f32 %v4988_v37, %v4987_v60  ;;  %v8731_v63 = vadd.f32 %v5113_v23, %v5112_v5  ;;  %v5712_v5 = vpack.c.bf16 %v4321_v18, %v4319_v58  ;;  %v4318_v37 = vld [vmem:[#allocation8 + $0x100] sm:$0xff]  ;;  %v4320_v23 = vld [vmem:[#allocation8 + $0x110] sm:$0xff] }
 0x65f   :  { %v5714_v38 = vpack.c.bf16 %v4320_v23, %v4318_v37 }
 0x660   :  { %v3685_v26 = vadd.f32 %v4989_v42, %v8669_v21  ;;  %v4990_v12 = vpop.f32.mrb[114].mxu1  ;;  %v8743_v21 = vld [vmem:[%s8985_s15] ss:$0 sm:$0xff]  ;;  %v4323_v42 = vld [vmem:[#allocation8 + $0x128] sm:$0xff] }
 0x661   :  { %v4991_v14 = vpop.f32.mrb[115].mxu1 }
 0x662   :  { %v3830_v44 = vadd.f32 %v8673_v46, %v3685_v26  ;;  %v4992_v54 = vadd.f32 %v4991_v14, %v4990_v12  ;;  %v5710_v46 = vpack.c.bf16 %v4316_v50, %v4314_v6  ;;  %v5716_v12 = vpack.c.bf16 %v4325_v11, %v4323_v42  ;;  %v4322_v14 = vld [vmem:[#allocation8 + $0x120] sm:$0xff]  ;;  %v4329_v6 = vld [vmem:[#allocation8 + $0x158] sm:$0xff] }
 0x664   :  { %v3914_v2 = vmul.f32 %v8737_v62, %v3830_v44  ;;  %v3690_v52 = vadd.f32 %v4992_v54, %v8671_v47  ;;  %v4993_v33 = vpop.f32.mrb[116].mxu1  ;;  %5711 = vmatpush1.bf16.msra.mxu0 %v5710_v46  ;;  %v5720_v46 = vpack.c.bf16 %v4329_v6, %v4327_v51  ;;  %v4337_v51 = vld [vmem:[#allocation8 + $0x198] sm:$0xff] }
 0x665   :  { %v4994_v43 = vpop.f32.mrb[117].mxu1  ;;  %5713 = vmatprep.subr.bf16.mxu0 %v5712_v5  ;;  %v4333_v5 = vld [vmem:[#allocation8 + $0x178] sm:$0xff] }
 0x666   :  { %v3835_v39 = vadd.f32 %v8677_v57, %v3690_v52  ;;  %v4995_v60 = vadd.f32 %v4994_v43, %v4993_v33  ;;  %v3936_v1 = vadd.f32 %v8743_v21, %v3914_v2  ;;  %v5718_v2 = vpack.c.bf16 %v4324_v32, %v4322_v14 }
 0x668   :  { %v3915_v24 = vmul.f32 %v8737_v62, %v3835_v39  ;;  %v3695_v27 = vadd.f32 %v4995_v60, %v8675_v31  ;;  %v4996_v47 = vpop.f32.mrb[118].mxu1  ;;  %v3968_v44 = vmul.f32 0.01, %v3936_v1  ;;  %vm3952_vm1 = vcmp.gt.f32.partialorder %v3936_v1, 0.0  ;;  %5715 = vmatpush1.bf16.msra.mxu0 %v5714_v38  ;;  %v4328_v39 = vld [vmem:[#allocation8 + $0x150] sm:$0xff]  ;;  %v4331_v60 = vld [vmem:[#allocation8 + $0x168] sm:$0xff] }
 0x669   :  { %v4997_v45 = vpop.f32.mrb[119].mxu1  ;;  %5717 = vmatprep.subr.bf16.mxu0 %v5716_v12  ;;  %v4332_v12 = vld [vmem:[#allocation8 + $0x170] sm:$0xff] }
 0x66a   :  { %v3840_v26 = vadd.f32 %v8681_v3, %v3695_v27  ;;  %v4998_v57 = vadd.f32 %v4997_v45, %v4996_v47  ;;  %v3937_v54 = vadd.f32 %v8743_v21, %v3915_v24  ;;  %v4326_v3 = vld [vmem:[#allocation8 + $0x140] sm:$0xff]  ;;  %v3984_v37 = vsel %vm3952_vm1, %v3936_v1, %v3968_v44  ;;  %v4335_v44 = vld [vmem:[#allocation8 + $0x188] sm:$0xff] }
 0x66b   :  { %v5724_v47 = vpack.c.bf16 %v4333_v5, %v4331_v60  ;;  %v4330_v1 = vld [vmem:[#allocation8 + $0x160] sm:$0xff]  ;;  %v4000_v14 = vsel %vm1066_vm6, %v3984_v37, -inf  ;;  %v4339_v37 = vld [vmem:[#allocation8 + $0x1a8] sm:$0xff] }
 0x66c   :  { %v3916_v50 = vmul.f32 %v8737_v62, %v3840_v26  ;;  %v3700_v31 = vadd.f32 %v4998_v57, %v8679_v25  ;;  %v4999_v58 = vpop.f32.mrb[120].mxu1  ;;  %vm3953_vm3 = vcmp.gt.f32.partialorder %v3937_v54, 0.0  ;;  %v3969_v23 = vmul.f32 0.01, %v3937_v54  ;;  %5719 = vmatpush1.bf16.msra.mxu0 %v5718_v2 }
 0x66d   :  { %v5000_v18 = vpop.f32.mrb[121].mxu1  ;;  %5721 = vmatprep.subr.bf16.mxu0 %v5720_v46  ;;  %v5726_v2 = vpack.c.bf16 %v4332_v12, %v4330_v1  ;;  %v4336_v46 = vld [vmem:[#allocation8 + $0x190] sm:$0xff] }
 0x66e   :  { %v3938_v52 = vadd.f32 %v8743_v21, %v3916_v50  ;;  %v3845_v33 = vadd.f32 %v8685_v22, %v3700_v31  ;;  %v5001_v43 = vadd.f32 %v5000_v18, %v4999_v58  ;;  %v5722_v22 = vpack.c.bf16 %v4328_v39, %v4326_v3 }
 0x66f   :  { %v3985_v32 = vsel %vm3953_vm3, %v3937_v54, %v3969_v23  ;;  %v5728_v54 = vpack.c.bf16 %v4337_v51, %v4335_v44  ;;  %v4341_v23 = vld [vmem:[#allocation8 + $0x1b8] sm:$0xff]  ;;  %vm4076_vm3 = vcmask 1041409  }
 0x670   :  { %vm3954_vm0 = vcmp.gt.f32.partialorder %v3938_v52, 0.0  ;;  %v3970_v25 = vmul.f32 0.01, %v3938_v52  ;;  %v3917_v42 = vmul.f32 %v8737_v62, %v3845_v33  ;;  %v3705_v11 = vadd.f32 %v5001_v43, %v8683_v53  ;;  %v5002_v24 = vpop.f32.mrb[122].mxu1  ;;  %5723 = vmatpush1.bf16.msra.mxu0 %v5722_v22  ;;  %v4334_v43 = vld [vmem:[#allocation8 + $0x180] sm:$0xff] }
 0x671   :  { %v5003_v27 = vpop.f32.mrb[123].mxu1  ;;  %5725 = vmatprep.subr.bf16.mxu0 %v5724_v47  ;;  %v4001_v39 = vsel %vm1066_vm6, %v3985_v32, -inf  ;;  %v5730_v22 = vpack.c.bf16 %v4336_v46, %v4334_v43 }
 0x672   :  { %v3986_v45 = vsel %vm3954_vm0, %v3938_v52, %v3970_v25  ;;  %v3939_v38 = vadd.f32 %v8743_v21, %v3917_v42  ;;  %v3850_v26 = vadd.f32 %v8689_v20, %v3705_v11  ;;  %v5004_v57 = vadd.f32 %v5003_v27, %v5002_v24 }
 0x673   :  { %v4002_v53 = vsel %vm1066_vm6, %v3986_v45, -inf }
 0x674   :  { %v4003_v6 = vmax.f32 %v4000_v14, %v4002_v53  ;;  %vm3955_vm2 = vcmp.gt.f32.partialorder %v3939_v38, 0.0  ;;  %v3971_v50 = vmul.f32 0.01, %v3939_v38  ;;  %v3918_v31 = vmul.f32 %v8737_v62, %v3850_v26  ;;  %v5005_v58 = vpop.f32.mrb[124].mxu1  ;;  %5727 = vmatpush1.bf16.msra.mxu0 %v5726_v2 }
 0x675   :  { %v3710_v20 = vadd.f32 %v5004_v57, %v8687_v55  ;;  %v5006_v18 = vpop.f32.mrb[125].mxu1  ;;  %5729 = vmatprep.subr.bf16.mxu0 %v5728_v54  ;;  %v5732_v26 = vpack.c.bf16 %v4341_v23, %v4339_v37  ;;  %v4340_v57 = vld [vmem:[#allocation8 + $0x1b0] sm:$0xff] }
 0x676   :  { %v3987_v3 = vsel %vm3955_vm2, %v3939_v38, %v3971_v50  ;;  %v3940_v52 = vadd.f32 %v8743_v21, %v3918_v31  ;;  %v5007_v33 = vadd.f32 %v5006_v18, %v5005_v58 }
 0x677   :  { %v4004_v60 = vsel %vm1066_vm6, %v3987_v3, -inf  ;;  %v3855_v5 = vadd.f32 %v8693_v16, %v3710_v20  ;;  %v4338_v16 = vld [vmem:[#allocation8 + $0x1a0] sm:$0xff] }
 0x678   :  { %v4005_v55 = vmax.f32 %v4001_v39, %v4004_v60  ;;  %vm3956_vm4 = vcmp.gt.f32.partialorder %v3940_v52, 0.0  ;;  %v3972_v25 = vmul.f32 0.01, %v3940_v52  ;;  %v3715_v42 = vadd.f32 %v5007_v33, %v8691_v29  ;;  %v5008_v11 = vpop.f32.mrb[126].mxu1  ;;  %5731 = vmatpush1.bf16.msra.mxu0 %v5730_v22 }
 0x679   :  { %v3919_v24 = vmul.f32 %v8737_v62, %v3855_v5  ;;  %v5009_v27 = vpop.f32.mrb[127].mxu1  ;;  %5733 = vmatprep.subr.bf16.mxu0 %v5732_v26 }
 0x67a   :  { %v3988_v47 = vsel %vm3956_vm4, %v3940_v52, %v3972_v25  ;;  %v3860_v45 = vadd.f32 %v8697_v49, %v3715_v42  ;;  %v5010_v38 = vadd.f32 %v5009_v27, %v5008_v11  ;;  %v5734_v49 = vpack.c.bf16 %v4340_v57, %v4338_v16 }
 0x67b   :  { %v4006_v1 = vsel %vm1066_vm6, %v3988_v47, -inf  ;;  %v3941_v12 = vadd.f32 %v8743_v21, %v3919_v24 }
 0x67c   :  { %v4007_v14 = vmax.f32 %v4003_v6, %v4006_v1  ;;  %v3920_v29 = vmul.f32 %v8737_v62, %v3860_v45  ;;  %v3720_v32 = vadd.f32 %v5010_v38, %v8695_v35  ;;  %v5011_v53 = vpop.f32.mrb[128].mxu1  ;;  %5735 = vmatpush1.bf16.msra.mxu0 %v5734_v49 }
 0x67d   :  { %vm3957_vm5 = vcmp.gt.f32.partialorder %v3941_v12, 0.0  ;;  %v3973_v44 = vmul.f32 0.01, %v3941_v12  ;;  %v5012_v51 = vpop.f32.mrb[129].mxu1 }
 0x67e   :  { %v3942_v50 = vadd.f32 %v8743_v21, %v3920_v29  ;;  %v3865_v31 = vadd.f32 %v8701_v19, %v3720_v32  ;;  %v5013_v58 = vadd.f32 %v5012_v51, %v5011_v53 }
 0x67f   :  { %v3989_v20 = vsel %vm3957_vm5, %v3941_v12, %v3973_v44 }
 0x680   :  { %v4008_v18 = vsel %vm1066_vm6, %v3989_v20, -inf  ;;  %vm3958_vm7 = vcmp.gt.f32.partialorder %v3942_v50, 0.0  ;;  %v3974_v6 = vmul.f32 0.01, %v3942_v50  ;;  %v3921_v2 = vmul.f32 %v8737_v62, %v3865_v31  ;;  %v5014_v35 = vpop.f32.mrb[130].mxu1 }
 0x681   :  { %v4009_v3 = vmax.f32 %v4005_v55, %v4008_v18  ;;  %v3725_v52 = vadd.f32 %v5013_v58, %v8699_v40  ;;  %v5015_v33 = vpop.f32.mrb[131].mxu1 }
 0x682   :  { %v3990_v54 = vsel %vm3958_vm7, %v3942_v50, %v3974_v6  ;;  %v3943_v43 = vadd.f32 %v8743_v21, %v3921_v2  ;;  %v5016_v46 = vadd.f32 %v5015_v33, %v5014_v35 }
 0x683   :  { %v4010_v19 = vsel %vm1066_vm6, %v3990_v54, -inf  ;;  %v3870_v39 = vadd.f32 %v8705_v17, %v3725_v52 }
 0x684   :  { %v4011_v60 = vmax.f32 %v4007_v14, %v4010_v19  ;;  %vm3959_vm8 = vcmp.gt.f32.partialorder %v3943_v43, 0.0  ;;  %v3975_v5 = vmul.f32 0.01, %v3943_v43  ;;  %v3730_v37 = vadd.f32 %v5016_v46, %v8703_v36  ;;  %v5017_v23 = vpop.f32.mrb[132].mxu1 }
 0x685   :  { %v3922_v55 = vmul.f32 %v8737_v62, %v3870_v39  ;;  %v5018_v25 = vpop.f32.mrb[133].mxu1 }
 0x686   :  { %v3991_v40 = vsel %vm3959_vm8, %v3943_v43, %v3975_v5  ;;  %v3875_v42 = vadd.f32 %v8709_v56, %v3730_v37  ;;  %v5019_v11 = vadd.f32 %v5018_v25, %v5017_v23  ;;  %vm4699_vm8 = vcmask 320512  }
 0x687   :  { %v4012_v24 = vsel %vm1066_vm6, %v3991_v40, -inf  ;;  %v3944_v27 = vadd.f32 %v8743_v21, %v3922_v55 }
 0x688   :  { %v4013_v22 = vmax.f32 %v4009_v3, %v4012_v24  ;;  %v3923_v17 = vmul.f32 %v8737_v62, %v3875_v42  ;;  %v3735_v47 = vadd.f32 %v5019_v11, %v8707_v15  ;;  %v5020_v45 = vpop.f32.mrb[134].mxu1 }
 0x689   :  { %v5021_v38 = vpop.f32.mrb[135].mxu1  ;;  %v3976_v57 = vmul.f32 0.01, %v3944_v27  ;;  %vm3960_vm9 = vcmp.gt.f32.partialorder %v3944_v27, 0.0 }
 0x68a   :  { %v8793_v36 = vmax.f32 %v4011_v60, %v4013_v22  ;;  %v3880_v26 = vadd.f32 %v8713_v30, %v3735_v47  ;;  %v5022_v16 = vadd.f32 %v5021_v38, %v5020_v45  ;;  %v3945_v56 = vadd.f32 %v8743_v21, %v3923_v17 }
 0x68b   :  { %v3992_v53 = vsel %vm3960_vm9, %v3944_v27, %v3976_v57 }
 0x68c   :  { %v3924_v1 = vmul.f32 %v8737_v62, %v3880_v26  ;;  %v5023_v12 = vpop.f32.mrb[136].mxu1  ;;  %v3740_v14 = vadd.f32 %v5022_v16, %v8711_v13  ;;  %v3977_v51 = vmul.f32 0.01, %v3945_v56  ;;  %vm3961_vm11 = vcmp.gt.f32.partialorder %v3945_v56, 0.0 }
 0x68d   :  { %v5024_v29 = vpop.f32.mrb[137].mxu1  ;;  %v4021_v6 = vsel %vm1066_vm6, %v3992_v53, -inf }
 0x68e   :  { %v3946_v32 = vadd.f32 %v8743_v21, %v3924_v1  ;;  %v5025_v15 = vadd.f32 %v5024_v29, %v5023_v12  ;;  %v3885_v44 = vadd.f32 %v8717_v4, %v3740_v14  ;;  %v3993_v35 = vsel %vm3961_vm11, %v3945_v56, %v3977_v51 }
 0x68f   :  { %v4022_v39 = vsel %vm1066_vm6, %v3993_v35, -inf  ;;  %v4015_v12 = vrot.slane %v8793_v36, 4 }
 0x690   :  { %vm3962_vm10 = vcmp.gt.f32.partialorder %v3946_v32, 0.0  ;;  %v3978_v30 = vmul.f32 0.01, %v3946_v32  ;;  %v3745_v49 = vadd.f32 %v5025_v15, %v8715_v34  ;;  %v5026_v50 = vpop.f32.mrb[138].mxu1  ;;  %v3925_v31 = vmul.f32 %v8737_v62, %v3885_v44 }
 0x691   :  { %v5027_v58 = vpop.f32.mrb[139].mxu1  ;;  %v4016_v15 = vmax.f32 %v8793_v36, %v4015_v12  ;;  %v4591_v12 = vld [vmem:[%s8992_s22 + $0x8] sm:$0xff] }
 0x692   :  { %v3994_v20 = vsel %vm3962_vm10, %v3946_v32, %v3978_v30  ;;  %v3890_v13 = vadd.f32 %v8721_v9, %v3745_v49  ;;  %v5028_v18 = vadd.f32 %v5027_v58, %v5026_v50  ;;  %v3947_v4 = vadd.f32 %v8743_v21, %v3925_v31 }
 0x693   :  { %v4023_v2 = vsel %vm1066_vm6, %v3994_v20, -inf  ;;  %v4044_v20 = vld [vmem:[#allocation7 + $0x10] sm:$0xff] }
 0x694   :  { %v4024_v3 = vmax.f32 %v4021_v6, %v4023_v2  ;;  %v3926_v52 = vmul.f32 %v8737_v62, %v3890_v13  ;;  %v3750_v34 = vadd.f32 %v5028_v18, %v8719_v8  ;;  %v5029_v33 = vpop.f32.mrb[140].mxu1  ;;  %vm3963_vm12 = vcmp.gt.f32.partialorder %v3947_v4, 0.0  ;;  %v4048_v13 = vld [vmem:[#allocation7 + $0x30] sm:$0xff]  ;;  %v4053_v6 = vld [vmem:[#allocation7 + $0x58] sm:$0xff] }
 0x695   :  { %v3979_v54 = vmul.f32 0.01, %v3947_v4  ;;  %v5030_v43 = vpop.f32.mrb[141].mxu1  ;;  %v4057_v2 = vld [vmem:[#allocation7 + $0x78] sm:$0xff]  ;;  %v5666_v36 = vpack.c.bf16 %v4048_v13, %v4044_v20  ;;  %v4596_v20 = vld [vmem:[%s8992_s22 + $0x30] sm:$0xff]  ;;  %v4597_v13 = vld [vmem:[%s8992_s22 + $0x38] sm:$0xff] }
 0x696   :  { %v3948_v46 = vadd.f32 %v8743_v21, %v3926_v52  ;;  %v3895_v9 = vadd.f32 %v8725_v10, %v3750_v34  ;;  %v5031_v19 = vadd.f32 %v5030_v43, %v5029_v33  ;;  %v4052_v52 = vld [vmem:[#allocation7 + $0x50] sm:$0xff]  ;;  %v4065_v43 = vld [vmem:[#allocation7 + $0xb8] sm:$0xff] }
 0x697   :  { %v3995_v60 = vsel %vm3963_vm12, %v3947_v4, %v3979_v54  ;;  %v4056_v34 = vld [vmem:[#allocation7 + $0x70] sm:$0xff]  ;;  %v4061_v54 = vld [vmem:[#allocation7 + $0x98] sm:$0xff] }
 0x698   :  { %v4025_v5 = vsel %vm1066_vm6, %v3995_v60, -inf  ;;  %vm3964_vm13 = vcmp.gt.f32.partialorder %v3948_v46, 0.0  ;;  %v3980_v37 = vmul.f32 0.01, %v3948_v46  ;;  %v3927_v23 = vmul.f32 %v8737_v62, %v3895_v9  ;;  %v5032_v55 = vpop.f32.mrb[142].mxu1  ;;  %v4069_v60 = vld [vmem:[#allocation7 + $0xd8] sm:$0xff] }
 0x699   :  { %v4026_v8 = vmax.f32 %v4022_v39, %v4025_v5  ;;  %v3755_v25 = vadd.f32 %v5031_v19, %v8723_v41  ;;  %v5033_v40 = vpop.f32.mrb[143].mxu1  ;;  %v5672_v9 = vpack.c.bf16 %v4065_v43, %v4061_v54  ;;  %v4060_v19 = vld [vmem:[#allocation7 + $0x90] sm:$0xff]  ;;  %v4073_v5 = vld [vmem:[#allocation7 + $0xf8] sm:$0xff]  ;;  %v4600_v54 = vld [vmem:[%s8992_s22 + $0x50] sm:$0xff] }
 0x69a   :  { %v3996_v42 = vsel %vm3964_vm13, %v3948_v46, %v3980_v37  ;;  %v3949_v11 = vadd.f32 %v8743_v21, %v3927_v23  ;;  %v5034_v24 = vadd.f32 %v5033_v40, %v5032_v55  ;;  %v5670_v46 = vpack.c.bf16 %v4056_v34, %v4052_v52  ;;  %v4064_v39 = vld [vmem:[#allocation7 + $0xb0] sm:$0xff]  ;;  %v4343_v40 = vld [vmem:[#allocation8 + $0x1c8] sm:$0xff] }
 0x69b   :  { %v4027_v10 = vsel %vm1066_vm6, %v3996_v42, -inf  ;;  %v3900_v27 = vadd.f32 %v8729_v28, %v3755_v25  ;;  %v5674_v37 = vpack.c.bf16 %v4064_v39, %v4060_v19  ;;  %v5676_v23 = vpack.c.bf16 %v4073_v5, %v4069_v60  ;;  %v4068_v55 = vld [vmem:[#allocation7 + $0xd0] sm:$0xff]  ;;  %v4342_v42 = vld [vmem:[#allocation8 + $0x1c0] sm:$0xff]  ;;  %v4617_v52 = vld [vmem:[%s8992_s22 + $0xd8] sm:$0xff] }
 0x69c   :  { %v4028_v22 = vmax.f32 %v4024_v3, %v4027_v10  ;;  %vm3965_vm14 = vcmp.gt.f32.partialorder %v3949_v11, 0.0  ;;  %v3981_v17 = vmul.f32 0.01, %v3949_v11  ;;  %v3760_v47 = vadd.f32 %v5034_v24, %v8727_v7  ;;  %v4344_v24 = vld [vmem:[#allocation8 + $0x1d0] sm:$0xff]  ;;  %v4347_v10 = vld [vmem:[#allocation8 + $0x1e8] sm:$0xff] }
 0x69d   :  { %v3928_v45 = vmul.f32 %v8737_v62, %v3900_v27  ;;  %v5668_v3 = vpack.c.bf16 %v4057_v2, %v4053_v6  ;;  %v4349_v27 = vld [vmem:[#allocation8 + $0x1f8] sm:$0xff]  ;;  %v5822_v2 = vpack.c.bf16 %v4597_v13, %v4596_v20  ;;  %v4601_v43 = vld [vmem:[%s8992_s22 + $0x58] sm:$0xff]  ;;  %v4248_v19 = vld [vmem:[%s8988_s18] sm:$0xf] }
 0x69e   :  { %v3997_v38 = vsel %vm3965_vm14, %v3949_v11, %v3981_v17  ;;  %v3905_v26 = vadd.f32 %v8731_v63, %v3760_v47  ;;  %v5740_v17 = vpack.c.bf16 %v4349_v27, %v4347_v10  ;;  %v4346_v47 = vld [vmem:[#allocation8 + $0x1e0] sm:$0xff]  ;;  %v4615_v6 = vld [vmem:[%s8992_s22 + $0xc8] sm:$0xff]  ;;  %v4253_v5 = vrot.slane %v4248_v19, %v7230_v0  ;;  %v4355_v10 = vld [vmem:[#allocation8 + $0x228] sm:$0xff] }
 0x69f   :  { %v4029_v41 = vsel %vm1066_vm6, %v3997_v38, -inf  ;;  %v3950_v16 = vadd.f32 %v8743_v21, %v3928_v45  ;;  %v4348_v45 = vld [vmem:[#allocation8 + $0x1f0] sm:$0xff]  ;;  %v4357_v27 = vld [vmem:[#allocation8 + $0x238] sm:$0xff] }
 0x6a0   :  { %v4030_v57 = vmax.f32 %v4026_v8, %v4029_v41  ;;  %v3929_v56 = vmul.f32 %v8737_v62, %v3905_v26  ;;  %v4017_v62 = vrot.slane %v4016_v15, 2  ;;  %v4072_v8 = vld [vmem:[#allocation7 + $0xf0] sm:$0xff]  ;;  %v5742_v38 = vpack.c.bf16 %v4348_v45, %v4346_v47  ;;  %v4351_v26 = vld [vmem:[#allocation8 + $0x208] sm:$0xff]  ;;  %v4353_v41 = vld [vmem:[#allocation8 + $0x218] sm:$0xff] }
 0x6a1   :  { %vm3966_vm15 = vcmp.gt.f32.partialorder %v3950_v16, 0.0  ;;  %v3982_v1 = vmul.f32 0.01, %v3950_v16  ;;  %v5678_v25 = vpack.c.bf16 %v4072_v8, %v4068_v55  ;;  %v5748_v45 = vpack.c.bf16 %v4357_v27, %v4355_v10  ;;  %v4382_v27 = vld [vmem:[#allocation8 + $0x300] sm:$0xff] }
 0x6a2   :  { %v3951_v28 = vadd.f32 %v8743_v21, %v3929_v56  ;;  %v4018_v49 = vmax.f32 %v4016_v15, %v4017_v62  ;;  %v4607_v56 = vld [vmem:[%s8992_s22 + $0x88] sm:$0xff]  ;;  %v4593_v15 = vld [vmem:[%s8992_s22 + $0x18] sm:$0xff] }
 0x6a3   :  { %v3998_v14 = vsel %vm3966_vm15, %v3950_v16, %v3982_v1  ;;  %v5744_v16 = vpack.c.bf16 %v4353_v41, %v4351_v26  ;;  %v4590_v1 = vld [vmem:[%s8992_s22] sm:$0xff] }
 0x6a4   :  { %v4031_v7 = vsel %vm1066_vm6, %v3998_v14, -inf  ;;  %vm3967_vm1 = vcmp.gt.f32.partialorder %v3951_v28, 0.0  ;;  %v3983_v29 = vmul.f32 0.01, %v3951_v28  ;;  %v4019_v31 = vrot.slane %v4018_v49, 1  ;;  %v4608_v14 = vld [vmem:[%s8992_s22 + $0x90] sm:$0xff] }
 0x6a5   :  { %v4032_v32 = vmax.f32 %v4028_v22, %v4031_v7  ;;  %v5738_v22 = vpack.c.bf16 %v4344_v24, %v4342_v42  ;;  %v4609_v7 = vld [vmem:[%s8992_s22 + $0x98] sm:$0xff]  ;;  %v4350_v42 = vld [vmem:[#allocation8 + $0x200] sm:$0xff]  ;;  %v4356_v26 = vld [vmem:[#allocation8 + $0x230] sm:$0xff] }
 0x6a6   :  { %v3999_v63 = vsel %vm3967_vm1, %v3951_v28, %v3983_v29  ;;  %v4020_v4 = vmax.f32 %v4018_v49, %v4019_v31  ;;  %v5810_v29 = vpack.c.bf16 %v4591_v12, %v4590_v1  ;;  %v4595_v49 = vld [vmem:[%s8992_s22 + $0x28] sm:$0xff]  ;;  %v4238_v1 = vsub.s32 3, %v7227_v59 }
 0x6a7   :  { %v4033_v53 = vsel %vm1066_vm6, %v3999_v63, -inf  ;;  %v4592_v63 = vld [vmem:[%s8992_s22 + $0x10] sm:$0xff] }
 0x6a8   :  { %v4034_v44 = vmax.f32 %v4030_v57, %v4033_v53  ;;  %v4606_v57 = vld [vmem:[%s8992_s22 + $0x80] sm:$0xff] }
 0x6a9   :  { %v5808_v28 = vpack.c.bf16 %v4607_v56, %v4606_v57  ;;  %v4610_v53 = vld [vmem:[%s8992_s22 + $0xa0] sm:$0xff]  ;;  %v4359_v57 = vld [vmem:[#allocation8 + $0x248] sm:$0xff]  ;;  %v4361_v56 = vld [vmem:[#allocation8 + $0x258] sm:$0xff] }
 0x6aa   :  { %v4035_v51 = vmax.f32 %v4032_v32, %v4034_v44  ;;  %v5812_v32 = vpack.c.bf16 %v4609_v7, %v4608_v14  ;;  %v4611_v44 = vld [vmem:[%s8992_s22 + $0xa8] sm:$0xff]  ;;  %v5752_v12 = vpack.c.bf16 %v4361_v56, %v4359_v57  ;;  %v4358_v14 = vld [vmem:[#allocation8 + $0x240] sm:$0xff]  ;;  %v4360_v7 = vld [vmem:[#allocation8 + $0x250] sm:$0xff] }
 0x6ab   :  { %v5816_v62 = vpack.c.bf16 %v4611_v44, %v4610_v53  ;;  %v5754_v44 = vpack.c.bf16 %v4360_v7, %v4358_v14  ;;  %v4393_v57 = vld [vmem:[#allocation8 + $0x358] sm:$0xff]  ;;  %v4395_v14 = vld [vmem:[#allocation8 + $0x368] sm:$0xff] }
 0x6ac   :  { %v4036_v30 = vrot.slane %v4035_v51, 4  ;;  %v4397_v7 = vld [vmem:[#allocation8 + $0x378] sm:$0xff] }
 0x6ae   :  { %v4037_v50 = vmax.f32 %v4035_v51, %v4036_v30  ;;  %v5814_v51 = vpack.c.bf16 %v4593_v15, %v4592_v63  ;;  %v4594_v30 = vld [vmem:[%s8992_s22 + $0x20] sm:$0xff]  ;;  %v4365_v63 = vld [vmem:[#allocation8 + $0x278] sm:$0xff] }
 0x6af   :  { %v5818_v31 = vpack.c.bf16 %v4595_v49, %v4594_v30  ;;  %v4362_v49 = vld [vmem:[#allocation8 + $0x260] sm:$0xff] }
 0x6b0   :  { %v4038_v21 = vrot.slane %v4037_v50, 2 }
 0x6b2   :  { %v4039_v58 = vmax.f32 %v4037_v50, %v4038_v21  ;;  %v4612_v50 = vld [vmem:[%s8992_s22 + $0xb0] sm:$0xff]  ;;  %v4613_v21 = vld [vmem:[%s8992_s22 + $0xb8] sm:$0xff] }
 0x6b4   :  { %v4040_v18 = vrot.slane %v4039_v58, 1 }
 0x6b6   :  { %v4041_v35 = vmax.f32 %v4039_v58, %v4040_v18  ;;  %v5820_v58 = vpack.c.bf16 %v4613_v21, %v4612_v50  ;;  %v4614_v18 = vld [vmem:[%s8992_s22 + $0xc0] sm:$0xff] }
 0x6b7   :  { %v4364_v50 = vld [vmem:[#allocation8 + $0x270] sm:$0xff] }
 0x6b8   :  { %v4077_v33 = vsel %vm4076_vm3, %v4041_v35, %v4020_v4  ;;  %v5824_v4 = vpack.c.bf16 %v4615_v6, %v4614_v18  ;;  %v4598_v35 = vld [vmem:[%s8992_s22 + $0x40] sm:$0xff]  ;;  %v5758_v18 = vpack.c.bf16 %v4364_v50, %v4362_v49  ;;  %v4403_v50 = vld [vmem:[#allocation8 + $0x3a8] sm:$0xff] }
 0x6b9   :  { %4821 = vmatmul.mubr.msk.f32.vlgmr.msra.gmra.mrb[144].mxu1 %vm1066_vm6, %v4077_v33  ;;  %v4400_v49 = vld [vmem:[#allocation8 + $0x390] sm:$0xff] }
 0x6ba   :  { %5667 = vmatpush1.bf16.msra.mxu1 %v5666_v36  ;;  %4215 = vmatprep.mubr.f32.mxu1 %v9035_v48  ;;  %v4345_v48 = vld [vmem:[#allocation8 + $0x1d8] sm:$0xff] }
 0x6bb   :  { %5669 = vmatprep.subr.bf16.mxu1 %v5668_v3  ;;  %v5736_v11 = vpack.c.bf16 %v4345_v48, %v4343_v40  ;;  %v4599_v36 = vld [vmem:[%s8992_s22 + $0x48] sm:$0xff]  ;;  %v4616_v3 = vld [vmem:[%s8992_s22 + $0xd0] sm:$0xff] }
 0x6bc   :  { %v5826_v34 = vpack.c.bf16 %v4599_v36, %v4598_v35  ;;  %v4368_v35 = vld [vmem:[#allocation8 + $0x290] sm:$0xff]  ;;  %v4371_v36 = vld [vmem:[#allocation8 + $0x2a8] sm:$0xff] }
 0x6bd   :  { %5737 = vmatprep.subr.bf16.mxu0 %v5736_v11  ;;  %v4352_v11 = vld [vmem:[#allocation8 + $0x210] sm:$0xff] }
 0x6be   :  { %5671 = vmatpush1.bf16.msra.mxu1 %v5670_v46  ;;  %5739 = vmatpush1.bf16.msra.mxu0 %v5738_v22  ;;  %v5830_v46 = vpack.c.bf16 %v4601_v43, %v4600_v54  ;;  %v4370_v43 = vld [vmem:[#allocation8 + $0x2a0] sm:$0xff] }
 0x6bf   :  { %5673 = vmatprep.subr.bf16.mxu1 %v5672_v9  ;;  %5741 = vmatprep.subr.bf16.mxu0 %v5740_v17  ;;  %v4222_v9 = vld [vmem:[%s8987_s17] sm:$0xf]  ;;  %v5746_v17 = vpack.c.bf16 %v4352_v11, %v4350_v42  ;;  %v4383_v42 = vld [vmem:[#allocation8 + $0x308] sm:$0xff]  ;;  %v4385_v11 = vld [vmem:[#allocation8 + $0x318] sm:$0xff] }
 0x6c0   :  { %v4227_v39 = vrot.slane %v4222_v9, %v7230_v0  ;;  %v4231_v60 = vrot.slane %v4222_v9, %v7236_v61  ;;  %v4239_v15 = vrot.slane %v4222_v9, %v4238_v1  ;;  %v5776_v10 = vpack.c.bf16 %v4385_v11, %v4383_v42  ;;  %v4556_v11 = vld [vmem:[%s8990_s20] sm:$0x3] }
 0x6c2   :  { %5675 = vmatpush1.bf16.msra.mxu1 %v5674_v37  ;;  %5743 = vmatpush1.bf16.msra.mxu0 %v5742_v38  ;;  %v4354_v38 = vld [vmem:[#allocation8 + $0x220] sm:$0xff] }
 0x6c3   :  { %5677 = vmatprep.subr.bf16.mxu1 %v5676_v23  ;;  %5745 = vmatprep.subr.bf16.mxu0 %v5744_v16  ;;  %v4257_v23 = vrot.slane %v4248_v19, %v7236_v61  ;;  %v4234_v16 = vsub.s32 2, %v7227_v59 }
 0x6c5   :  { %v4261_v53 = vrot.slane %v4248_v19, %v4234_v16 }
 0x6c6   :  { %5679 = vmatpush1.bf16.msra.mxu1 %v5678_v25 }
 0x6c7   :  { %5809 = vmatprep.subr.bf16.mxu1 %v5808_v28  ;;  %v5750_v28 = vpack.c.bf16 %v4356_v26, %v4354_v38  ;;  %v4386_v26 = vld [vmem:[#allocation8 + $0x320] sm:$0xff] }
 0x6c9   :  { %4822 = vmatmul.mubr.msk.f32.vlgmr.msra.gmra.mrb[146].mxu1 %vm1066_vm6, %v4077_v33  ;;  %v5828_v33 = vpack.c.bf16 %v4617_v52, %v4616_v3  ;;  %v4373_v3 = vld [vmem:[#allocation8 + $0x2b8] sm:$0xff] }
 0x6ca   :  { %5811 = vmatpush3.bf16.msra.mxu1 %v5810_v29  ;;  %v4235_v29 = vrot.slane %v4222_v9, %v4234_v16  ;;  %v5764_v54 = vpack.c.bf16 %v4373_v3, %v4371_v36  ;;  %v4375_v9 = vld [vmem:[#allocation8 + $0x2c8] sm:$0xff]  ;;  %v4408_v36 = vld [vmem:[#allocation8 + $0x3d0] sm:$0xff] }
 0x6cb   :  { %5813 = vmatprep.subr.bf16.mxu1 %v5812_v32  ;;  %v4363_v32 = vld [vmem:[#allocation8 + $0x268] sm:$0xff] }
 0x6cc   :  { %v5756_v30 = vpack.c.bf16 %v4365_v63, %v4363_v32  ;;  %v4391_v16 = vld [vmem:[#allocation8 + $0x348] sm:$0xff]  ;;  %v5788_v32 = vpack.c.bf16 %v4397_v7, %v4395_v14  ;;  %v4394_v63 = vld [vmem:[#allocation8 + $0x360] sm:$0xff] }
 0x6cd   :  { %v4411_v3 = vld [vmem:[#allocation8 + $0x3e8] sm:$0xff] }
 0x6ce   :  { %5815 = vmatpush3.bf16.msra.mxu1 %v5814_v51 }
 0x6cf   :  { %5817 = vmatprep.subr.bf16.mxu1 %v5816_v62  ;;  %v4265_v62 = vrot.slane %v4248_v19, %v4238_v1  ;;  %v4377_v19 = vld [vmem:[#allocation8 + $0x2d8] sm:$0xff]  ;;  %v5784_v1 = vpack.c.bf16 %v4393_v57, %v4391_v16 }
 0x6d2   :  { %5819 = vmatpush3.bf16.msra.mxu1 %v5818_v31  ;;  %v4367_v31 = vld [vmem:[#allocation8 + $0x288] sm:$0xff] }
 0x6d3   :  { %5821 = vmatprep.subr.bf16.mxu1 %v5820_v58  ;;  %v4369_v58 = vld [vmem:[#allocation8 + $0x298] sm:$0xff] }
 0x6d6   :  { %5823 = vmatpush3.bf16.msra.mxu1 %v5822_v2  ;;  %v5760_v2 = vpack.c.bf16 %v4369_v58, %v4367_v31  ;;  %v4402_v58 = vld [vmem:[#allocation8 + $0x3a0] sm:$0xff] }
 0x6d7   :  { %5825 = vmatprep.subr.bf16.mxu1 %v5824_v4  ;;  %v4366_v4 = vld [vmem:[#allocation8 + $0x280] sm:$0xff] }
 0x6da   :  { %5827 = vmatpush3.bf16.msra.mxu1 %v5826_v34  ;;  %v5762_v34 = vpack.c.bf16 %v4368_v35, %v4366_v4  ;;  %v4406_v35 = vld [vmem:[#allocation8 + $0x3c0] sm:$0xff] }
 0x6db   :  { %5829 = vmatprep.subr.bf16.mxu1 %v5828_v33 }
 0x6de   :  { %5831 = vmatpush3.bf16.msra.mxu1 %v5830_v46  ;;  %v4372_v46 = vld [vmem:[#allocation8 + $0x2b0] sm:$0xff] }
 0x78c   :  { %v4146_v37 = vpop.f32.mrb[144].mxu1 }
 0x78d   :  { %v4244_v55 = vmul.f32 %v4227_v39, %v4146_v37  ;;  %v4148_v8 = vpop.f32.mrb[145].mxu1  ;;  %v5766_v39 = vpack.c.bf16 %v4372_v46, %v4370_v43  ;;  %v4376_v37 = vld [vmem:[#allocation8 + $0x2d0] sm:$0xff] }
 0x78e   :  { %v4245_v25 = vmul.f32 %v4231_v60, %v4148_v8  ;;  %v5768_v60 = vpack.c.bf16 %v4377_v19, %v4375_v9  ;;  %v4412_v43 = vld [vmem:[#allocation8 + $0x3f0] sm:$0xff] }
 0x78f   :  { %v4270_v40 = vadd.f32 %v4253_v5, %v4244_v55  ;;  %v4374_v5 = vld [vmem:[#allocation8 + $0x2c0] sm:$0xff]  ;;  %v4381_v55 = vld [vmem:[#allocation8 + $0x2f8] sm:$0xff] }
 0x790   :  { %v4271_v48 = vadd.f32 %v4257_v23, %v4245_v25  ;;  %v4379_v23 = vld [vmem:[#allocation8 + $0x2e8] sm:$0xff]  ;;  %v5770_v8 = vpack.c.bf16 %v4376_v37, %v4374_v5  ;;  %v4602_v5 = vld [vmem:[%s8992_s22 + $0x60] sm:$0xff] }
 0x791   :  { %v4278_v24 = vmul.f32 0.01, %v4270_v40  ;;  %vm4274_vm6 = vcmp.gt.f32.partialorder %v4270_v40, 0.0  ;;  %v5772_v25 = vpack.c.bf16 %v4381_v55, %v4379_v23  ;;  %v4603_v23 = vld [vmem:[%s8992_s22 + $0x68] sm:$0xff]  ;;  %v4621_v55 = vld [vmem:[%s8992_s22 + $0xf8] sm:$0xff] }
 0x792   :  { %vm4275_vm0 = vcmp.gt.f32.partialorder %v4271_v48, 0.0  ;;  %v4279_v22 = vmul.f32 0.01, %v4271_v48 }
 0x793   :  { %v4282_v41 = vsel %vm4274_vm6, %v4270_v40, %v4278_v24  ;;  %v4378_v40 = vld [vmem:[#allocation8 + $0x2e0] sm:$0xff] }
 0x794   :  { %v4283_v47 = vsel %vm4275_vm0, %v4271_v48, %v4279_v22  ;;  %v4380_v48 = vld [vmem:[#allocation8 + $0x2f0] sm:$0xff] }
 0x795   :  { %4478 = vmatprep.mubr.f32.mxu0 %v4283_v47  ;;  %v5774_v24 = vpack.c.bf16 %v4380_v48, %v4378_v40  ;;  %v4384_v22 = vld [vmem:[#allocation8 + $0x310] sm:$0xff]  ;;  %v4389_v47 = vld [vmem:[#allocation8 + $0x338] sm:$0xff]  ;;  %v4604_v40 = vld [vmem:[%s8992_s22 + $0x70] sm:$0xff] }
 0x796   :  { %4479 = vmatmul.mubr.f32.vlgmr.msra.gmra.mrb[80].mxu0 %v4282_v41  ;;  %v4388_v41 = vld [vmem:[#allocation8 + $0x330] sm:$0xff]  ;;  %v4605_v48 = vld [vmem:[%s8992_s22 + $0x78] sm:$0xff] }
 0x797   :  { %5747 = vmatpush1.bf16.msra.mxu0 %v5746_v17  ;;  %v4387_v17 = vld [vmem:[#allocation8 + $0x328] sm:$0xff]  ;;  %v5782_v56 = vpack.c.bf16 %v4388_v41, %v4386_v26  ;;  %v5838_v42 = vpack.c.bf16 %v4605_v48, %v4604_v40 }
 0x798   :  { %5749 = vmatprep.subr.bf16.mxu0 %v5748_v45  ;;  %v5778_v45 = vpack.c.bf16 %v4384_v22, %v4382_v27  ;;  %v5780_v38 = vpack.c.bf16 %v4389_v47, %v4387_v17  ;;  %v4565_v27 = vrot.slane %v4556_v11, %v7236_v61 }
 0x79b   :  { %5751 = vmatpush1.bf16.msra.mxu0 %v5750_v28  ;;  %v4390_v28 = vld [vmem:[#allocation8 + $0x340] sm:$0xff] }
 0x79c   :  { %v4217_v51 = vpop.f32.mrb[146].mxu1  ;;  %5753 = vmatprep.subr.bf16.mxu0 %v5752_v12  ;;  %v4392_v12 = vld [vmem:[#allocation8 + $0x350] sm:$0xff] }
 0x79d   :  { %v4246_v59 = vmul.f32 %v4235_v29, %v4217_v51  ;;  %v4219_v21 = vpop.f32.mrb[147].mxu1  ;;  %v5786_v29 = vpack.c.bf16 %v4392_v12, %v4390_v28 }
 0x79e   :  { %v4247_v20 = vmul.f32 %v4239_v15, %v4219_v21  ;;  %v4396_v15 = vld [vmem:[#allocation8 + $0x370] sm:$0xff] }
 0x79f   :  { %v8916_v13 = vadd.f32 %v4261_v53, %v4246_v59  ;;  %5755 = vmatpush1.bf16.msra.mxu0 %v5754_v44  ;;  %v4399_v53 = vld [vmem:[#allocation8 + $0x388] sm:$0xff]  ;;  %v4401_v44 = vld [vmem:[#allocation8 + $0x398] sm:$0xff]  ;;  %v5790_v51 = vpack.c.bf16 %v4396_v15, %v4394_v63 }
 0x7a0   :  { %v4273_v6 = vadd.f32 %v4265_v62, %v4247_v20  ;;  %5757 = vmatprep.subr.bf16.mxu0 %v5756_v30  ;;  %v5792_v62 = vpack.c.bf16 %v4401_v44, %v4399_v53  ;;  %v4398_v30 = vld [vmem:[#allocation8 + $0x380] sm:$0xff]  ;;  %v4405_v59 = vld [vmem:[#allocation8 + $0x3b8] sm:$0xff]  ;;  %v4404_v20 = vld [vmem:[#allocation8 + $0x3b0] sm:$0xff] }
 0x7a1   :  { %v5794_v21 = vpack.c.bf16 %v4400_v49, %v4398_v30  ;;  %v5796_v31 = vpack.c.bf16 %v4405_v59, %v4403_v50  ;;  %v4280_v9 = vmul.f32 0.01, %v8916_v13  ;;  %vm4276_vm4 = vcmp.gt.f32.partialorder %v8916_v13, 0.0 }
 0x7a2   :  { %vm4277_vm2 = vcmp.gt.f32.partialorder %v4273_v6, 0.0  ;;  %v4281_v52 = vmul.f32 0.01, %v4273_v6 }
 0x7a3   :  { %5759 = vmatpush1.bf16.msra.mxu0 %v5758_v18  ;;  %v4407_v18 = vld [vmem:[#allocation8 + $0x3c8] sm:$0xff]  ;;  %v4284_v19 = vsel %vm4276_vm4, %v8916_v13, %v4280_v9  ;;  %v4620_v13 = vld [vmem:[%s8992_s22 + $0xf0] sm:$0xff] }
 0x7a4   :  { %v4285_v33 = vsel %vm4277_vm2, %v4273_v6, %v4281_v52  ;;  %5761 = vmatprep.subr.bf16.mxu0 %v5760_v2  ;;  %v4409_v6 = vld [vmem:[#allocation8 + $0x3d8] sm:$0xff]  ;;  %v5798_v2 = vpack.c.bf16 %v4404_v20, %v4402_v58 }
 0x7a5   :  { %4549 = vmatprep.mubr.f32.mxu0 %v4285_v33  ;;  %v5800_v4 = vpack.c.bf16 %v4409_v6, %v4407_v18  ;;  %v4413_v52 = vld [vmem:[#allocation8 + $0x3f8] sm:$0xff] }
 0x7a6   :  { %v5804_v33 = vpack.c.bf16 %v4413_v52, %v4411_v3 }
 0x7a7   :  { %5763 = vmatpush1.bf16.msra.mxu0 %v5762_v34  ;;  %v5802_v34 = vpack.c.bf16 %v4408_v36, %v4406_v35 }
 0x7a8   :  { %5765 = vmatprep.subr.bf16.mxu0 %v5764_v54  ;;  %v4410_v54 = vld [vmem:[#allocation8 + $0x3e0] sm:$0xff] }
 0x7a9   :  { %v5806_v46 = vpack.c.bf16 %v4412_v43, %v4410_v54 }
 0x7ab   :  { %5767 = vmatpush1.bf16.msra.mxu0 %v5766_v39  ;;  %v4618_v39 = vld [vmem:[%s8992_s22 + $0xe0] sm:$0xff] }
 0x7ac   :  { %5769 = vmatprep.subr.bf16.mxu0 %v5768_v60  ;;  %v4619_v60 = vld [vmem:[%s8992_s22 + $0xe8] sm:$0xff]  ;;  %s9036_s22 = sld [smem:[#allocation24_spill]] }
 0x7ad   :  { %v5832_v37 = vpack.c.bf16 %v4619_v60, %v4618_v39 }
 0x7af   :  { %5771 = vmatpush1.bf16.msra.mxu0 %v5770_v8  ;;  %v5834_v8 = vpack.c.bf16 %v4603_v23, %v4602_v5  ;;  %5833 = vmatprep.subr.bf16.mxu1 %v5832_v37 }
 0x7b0   :  { %5773 = vmatprep.subr.bf16.mxu0 %v5772_v25  ;;  %v5836_v25 = vpack.c.bf16 %v4621_v55, %v4620_v13 }
 0x7b1   :  { %5835 = vmatpush3.bf16.msra.mxu1 %v5834_v8 }
 0x7b2   :  { %5837 = vmatprep.subr.bf16.mxu1 %v5836_v25 }
 0x7b3   :  { %5775 = vmatpush1.bf16.msra.mxu0 %v5774_v24  ;;  %v4570_v24 = vld [vmem:[%s8991_s21] sm:$0x3] }
 0x7b4   :  { %5777 = vmatprep.subr.bf16.mxu0 %v5776_v10  ;;  %v4561_v10 = vrot.slane %v4556_v11, %v7230_v0  ;;  %v4575_v22 = vrot.slane %v4570_v24, %v7230_v0  ;;  %v4579_v47 = vrot.slane %v4570_v24, %v7236_v61  ;;  %v4823_v0 = vld [vmem:[%s9036_s22] ss:$0 sm:$0xff] }
 0x7b5   :  { %5839 = vmatpush3.bf16.msra.mxu1 %v5838_v42 }
 0x7b7   :  { %5779 = vmatpush1.bf16.msra.mxu0 %v5778_v45 }
 0x7b8   :  { %5781 = vmatprep.subr.bf16.mxu0 %v5780_v38 }
 0x7bb   :  { %5783 = vmatpush1.bf16.msra.mxu0 %v5782_v56 }
 0x7bc   :  { %5785 = vmatprep.subr.bf16.mxu0 %v5784_v1 }
 0x7bf   :  { %5787 = vmatpush1.bf16.msra.mxu0 %v5786_v29 }
 0x7c0   :  { %5789 = vmatprep.subr.bf16.mxu0 %v5788_v32 }
 0x7c3   :  { %5791 = vmatpush1.bf16.msra.mxu0 %v5790_v51 }
 0x7c4   :  { %5793 = vmatprep.subr.bf16.mxu0 %v5792_v62 }
 0x7c7   :  { %5795 = vmatpush1.bf16.msra.mxu0 %v5794_v21 }
 0x7c8   :  { %5797 = vmatprep.subr.bf16.mxu0 %v5796_v31 }
 0x7cb   :  { %5799 = vmatpush1.bf16.msra.mxu0 %v5798_v2 }
 0x7cc   :  { %5801 = vmatprep.subr.bf16.mxu0 %v5800_v4 }
 0x7cf   :  { %5803 = vmatpush1.bf16.msra.mxu0 %v5802_v34 }
 0x7d0   :  { %5805 = vmatprep.subr.bf16.mxu0 %v5804_v33 }
 0x7d3   :  { %5807 = vmatpush1.bf16.msra.mxu0 %v5806_v46 }
 0x7d6   :  { %4550 = vmatmul.mubr.f32.vlgmr.msra.gmra.mrb[80].mxu0 %v4284_v19 }
 0x8a9   :  { %v4551_v17 = vpop.f32.mrb[80].mxu0 }
 0x8aa   :  { %v4568_v45 = vmul.f32 %v4561_v10, %v4551_v17  ;;  %v4553_v38 = vpop.f32.mrb[81].mxu0 }
 0x8ab   :  { %v4569_v26 = vmul.f32 %v4565_v27, %v4553_v38 }
 0x8ac   :  { %v4582_v41 = vadd.f32 %v4575_v22, %v4568_v45 }
 0x8ad   :  { %v4583_v16 = vadd.f32 %v4579_v47, %v4569_v26 }
 0x8ae   :  { %v4586_v57 = vmul.f32 0.01, %v4582_v41  ;;  %vm4584_vm7 = vcmp.gt.f32.partialorder %v4582_v41, 0.0 }
 0x8af   :  { %vm4585_vm5 = vcmp.gt.f32.partialorder %v4583_v16, 0.0  ;;  %v4587_v56 = vmul.f32 0.01, %v4583_v16 }
 0x8b0   :  { %v4588_v28 = vsel %vm4584_vm7, %v4582_v41, %v4586_v57 }
 0x8b1   :  { %v4589_v1 = vsel %vm4585_vm5, %v4583_v16, %v4587_v56 }
 0x8b2   :  { %4693 = vmatprep.mubr.f32.mxu1 %v4589_v1 }
 0x8b3   :  { %4694 = vmatmul.mubr.f32.vlgmr.msra.gmra.mrb[148].mxu1 %v4588_v28 }
 0x986   :  { %v5147_v12 = vpop.f32.mrb[148].mxu1 }
 0x987   :  { %v5148_v14 = vpop.f32.mrb[149].mxu1 }
 0x988   :  { %v5149_v61 = vadd.f32 %v5148_v14, %v5147_v12 }
 0x98a   :  { %v4696_v7 = vadd.f32 %v5149_v61, %v4823_v0 }
 0x98c   :  { %4700 = vst.msk [vmem:[#allocation10] sm:$0x3] %vm4699_vm8, %v4696_v7 }
 0x98d   :  { %6083 = shalt.err (!%p6080_p8)
}
 0x98e   :  { %s9037_s23 = sld [smem:[#allocation25_spill]] }
 0x994   :  { %s6084_s16 = scalar_lea.hbm %s9037_s23, 32 }
 0x995   :  { %p6085_p9 = scmp.ne.s32.totalorder %s9037_s23, %s6084_s16  ;;  %p6088_p10 = scmp.lt.u32.totalorder %s6084_s16, %s9037_s23 }
 0x997   :  { %p6090_p11 = pnand %p6088_p10, %p6085_p9 }
 0x999   :  { %6093 = shalt.err (!%p6090_p11)
}
 0x99a   :  { %4710 = dma.vmem_to_hbm [thread:$0]  %s4708_s7, 32, %s9037_s23, [#allocation4]  }
 0x99b   :  { %6100 = dma.done.wait [#allocation4], 32  }
 0x99c   :  { %6101 = vsyncadd [#allocation4], 4294967264 }
 0x99d   :  { %4714 = vsyncpa [#allocation3], 1 }
 0x99e   :  { %4715 = vsyncpa [#allocation6], 1 }
 0x99f   :  { %4716 = vsyncpa [#allocation9], 1 }
 0x9a0   :  { %4717 = vsyncpa [#allocation4], 1 }

</bundles_post_ra>
